<compile_context>
chip_gen: v7x
topology: tpu7x:2x2x1
jax: 0.10.0
libtpu: 0.0.40
codegen_flags: <defaults>
</compile_context>

<pallas_src>
import functools

import jax
import jax.numpy as jnp
import numpy as np
from jax import lax
from jax.experimental import pallas as pl
from jax.experimental.pallas import tpu as pltpu


def _round_up(x, m):
    return (x + m - 1) // m * m


def _conv_block_kernel(x_ref, cmask_ref, w1_ref, s1_ref, t1_ref,
                       w2_ref, s2_ref, t2_ref, o_ref, hpad_ref, acc_ref,
                       *, H, W):
    """One batch element per grid step.  Flat "wide row" layout: row = h*(W+2)+w.

    x_ref    : (1, PF, Cp)  fully padded input, flattened; PF = (H+2)*(W+2)+2
    cmask_ref: (Q, 1)       1.0 for valid wide columns (w < W), 0.0 for junk columns
    w1_ref   : (9, Cp, Co)  conv1 taps (ky*3+kx, in, out), channel-padded
    s1/t1_ref: (1, Co)      folded BN1 scale / shift (includes conv1 bias)
    w2_ref   : (9, Co, Co)  conv2 taps
    s2/t2_ref: (1, Co)      folded BN2 scale / shift (includes conv2 bias)
    o_ref    : (1, Q, Co)   wide-row output slab (junk cols / pad chans cut in wrapper)
    hpad_ref : (PF, Co) f32 scratch: zero-padded conv1 activation, flat
    acc_ref  : (Q, Co)  f32 scratch: matmul accumulator (reused by both convs)
    """
    Wp = W + 2
    Q = H * Wp                         # number of wide-grid output rows
    PF = hpad_ref.shape[0]             # (H+2)*Wp + 2
    Co = o_ref.shape[2]

    # ---- conv1: 9 shifted contiguous slices -> accumulating MXU matmuls (K = Cp) ----
    for k in range(9):
        off = (k // 3) * Wp + (k % 3)                      # static flat tap offset
        patch = x_ref[0, off:off + Q, :]                   # (Q, Cp), contiguous rows
        contrib = jnp.dot(patch, w1_ref[k],
                          preferred_element_type=jnp.float32)
        if k == 0:
            acc_ref[...] = contrib
        else:
            acc_ref[...] += contrib

    # ---- BN1 (folded) + ReLU; junk wide-columns are zeroed (they land exactly on the
    #      left/right halo cells of hpad), then write the padded intermediate ----
    h = jnp.maximum(acc_ref[...] * s1_ref[...] + t1_ref[...], 0.0)
    h = h * cmask_ref[...]                                  # exact zeros on junk cols

    # top / bottom halo rows only (tiny); re-done every step so the kernel stays
    # correct when the "parallel" batch axis is split across TensorCores.
    hpad_ref[0:Wp + 1, :] = jnp.zeros((Wp + 1, Co), jnp.float32)
    hpad_ref[Wp + 1 + Q:PF, :] = jnp.zeros((PF - Wp - 1 - Q, Co), jnp.float32)
    hpad_ref[Wp + 1:Wp + 1 + Q, :] = h

    # ---- conv2: same structure, reading the padded intermediate from VMEM ----
    for k in range(9):
        off = (k // 3) * Wp + (k % 3)
        patch = hpad_ref[off:off + Q, :]                   # (Q, Co)
        contrib = jnp.dot(patch, w2_ref[k],
                          preferred_element_type=jnp.float32)
        if k == 0:
            acc_ref[...] = contrib
        else:
            acc_ref[...] += contrib

    # ---- BN2 (folded) + ReLU; one fully lane-dense store of the wide slab ----
    y = jnp.maximum(acc_ref[...] * s2_ref[...] + t2_ref[...], 0.0)
    o_ref[...] = y.reshape(1, Q, Co)


@jax.jit
def conv_block_forward(x_nchw, w1, b1, g1, beta1, m1, v1,
                       w2, b2, g2, beta2, m2, v2, eps=1e-5):
    """x_nchw: (N, Cin, H, W) float32.  Conv weights in PyTorch OIHW layout."""
    N, Cin, H, W = x_nchw.shape
    Cout = w1.shape[0]
    Hp, Wp = H + 2, W + 2
    Q = H * Wp                       # wide-grid rows actually computed
    PF = Hp * Wp + 2                 # +2 keeps the largest tap slice (off = 2*Wp+2) in-bounds
    Cp = _round_up(Cin, 128)         # lane-dense in-channels
    Co = _round_up(Cout, 128)        # lane-dense out-channels
    f32 = jnp.float32

    # --- activations: NCHW -> NHWC -> halo + channel pad -> flat wide rows.
    #     This is one fused XLA copy (the NCHW->NHWC relayout is mandatory anyway).
    x = jnp.transpose(x_nchw, (0, 2, 3, 1)).astype(f32)                 # (N,H,W,Cin)
    xp = jnp.pad(x, ((0, 0), (1, 1), (1, 1), (0, Cp - Cin)))            # (N,Hp,Wp,Cp)
    x_flat = jnp.pad(xp.reshape(N, Hp * Wp, Cp), ((0, 0), (0, 2), (0, 0)))  # (N,PF,Cp)

    # --- weights: OIHW -> (ky,kx,in,out), zero-pad channels, flatten the 9 taps ---
    w1_hwio = jnp.transpose(w1, (2, 3, 1, 0)).astype(f32)               # (3,3,Cin,Cout)
    w2_hwio = jnp.transpose(w2, (2, 3, 1, 0)).astype(f32)               # (3,3,Cout,Cout)
    w1p = jnp.pad(w1_hwio, ((0, 0), (0, 0), (0, Cp - Cin), (0, Co - Cout))
                  ).reshape(9, Cp, Co)
    w2p = jnp.pad(w2_hwio, ((0, 0), (0, 0), (0, Co - Cout), (0, Co - Cout))
                  ).reshape(9, Co, Co)

    # --- fold conv bias + inference-mode BN into scale/shift:  y = relu(conv(x)*s + t)
    s1 = g1 / jnp.sqrt(v1 + eps)
    t1 = (b1 - m1) * s1 + beta1
    s2 = g2 / jnp.sqrt(v2 + eps)
    t2 = (b2 - m2) * s2 + beta2
    pad_c = lambda v: jnp.pad(v.astype(f32), (0, Co - Cout)).reshape(1, Co)
    s1p, t1p, s2p, t2p = pad_c(s1), pad_c(t1), pad_c(s2), pad_c(t2)

    # --- validity mask for the wide-row junk columns (w in {W, W+1}) ---
    cmask = ((jnp.arange(Q, dtype=jnp.int32) % Wp) < W).astype(f32).reshape(Q, 1)

    kernel = functools.partial(_conv_block_kernel, H=H, W=W)

    out_wide = pl.pallas_call(
        kernel,
        out_shape=jax.ShapeDtypeStruct((N, Q, Co), f32),
        grid_spec=pltpu.PrefetchScalarGridSpec(
            num_scalar_prefetch=0,
            grid=(N,),
            in_specs=[
                pl.BlockSpec((1, PF, Cp), lambda n: (n, 0, 0)),   # padded input slab
                pl.BlockSpec((Q, 1), lambda n: (0, 0)),           # wide-column mask
                pl.BlockSpec((9, Cp, Co), lambda n: (0, 0, 0)),   # conv1 weights
                pl.BlockSpec((1, Co), lambda n: (0, 0)),          # s1
                pl.BlockSpec((1, Co), lambda n: (0, 0)),          # t1
                pl.BlockSpec((9, Co, Co), lambda n: (0, 0, 0)),   # conv2 weights
                pl.BlockSpec((1, Co), lambda n: (0, 0)),          # s2
                pl.BlockSpec((1, Co), lambda n: (0, 0)),          # t2
            ],
            out_specs=pl.BlockSpec((1, Q, Co), lambda n: (n, 0, 0)),
            scratch_shapes=[
                pltpu.VMEM((PF, Co), jnp.float32),   # padded conv1 activation
                pltpu.VMEM((Q, Co), jnp.float32),    # shared matmul accumulator
            ],
        ),
        compiler_params=pltpu.CompilerParams(
            dimension_semantics=("parallel",)),      # batch elems -> cores on v7x
    )(x_flat, cmask, w1p, s1p, t1p, w2p, s2p, t2p)

    # drop the wide-row junk columns and the channel padding, back to NCHW
    out = out_wide.reshape(N, H, Wp, Co)[:, :, :W, :Cout]
    return jnp.transpose(out, (0, 3, 1, 2))


def _reference(x_nchw, w1, b1, g1, beta1, m1, v1,
               w2, b2, g2, beta2, m2, v2, eps=1e-5):
    """Pure-JAX NCHW reference (matches PyTorch eval-mode semantics)."""
    def conv(x, w, b):
        y = lax.conv_general_dilated(
            x, w, window_strides=(1, 1), padding=((1, 1), (1, 1)),
            dimension_numbers=("NCHW", "OIHW", "NCHW"))
        return y + b[None, :, None, None]

    def bn(x, g, beta, m, v):
        return (x - m[None, :, None, None]) / jnp.sqrt(v[None, :, None, None] + eps) \
            * g[None, :, None, None] + beta[None, :, None, None]

    h = jax.nn.relu(bn(conv(x_nchw, w1, b1), g1, beta1, m1, v1))
    return jax.nn.relu(bn(conv(h, w2, b2), g2, beta2, m2, v2))


if __name__ == "__main__":
    key = jax.random.PRNGKey(0)
    N, Cin, Cout, H, W = 2, 4, 8, 16, 16

    ks = jax.random.split(key, 12)
    x = jax.random.normal(ks[0], (N, Cin, H, W), jnp.float32)

    # deterministic parameter init (shapes from nn.Conv2d / nn.BatchNorm2d)
    w1 = jax.random.normal(ks[1], (Cout, Cin, 3, 3), jnp.float32) * 0.2
    b1 = jax.random.normal(ks[2], (Cout,), jnp.float32) * 0.1
    g1 = jax.random.uniform(ks[3], (Cout,), jnp.float32, 0.5, 1.5)
    beta1 = jax.random.normal(ks[4], (Cout,), jnp.float32) * 0.1
    m1 = jax.random.normal(ks[5], (Cout,), jnp.float32) * 0.1
    v1 = jax.random.uniform(ks[6], (Cout,), jnp.float32, 0.5, 1.5)

    w2 = jax.random.normal(ks[7], (Cout, Cout, 3, 3), jnp.float32) * 0.2
    b2 = jax.random.normal(ks[8], (Cout,), jnp.float32) * 0.1
    g2 = jax.random.uniform(ks[9], (Cout,), jnp.float32, 0.5, 1.5)
    beta2 = jax.random.normal(ks[10], (Cout,), jnp.float32) * 0.1
    m2 = jax.random.normal(ks[11], (Cout,), jnp.float32) * 0.1
    v2 = jnp.ones((Cout,), jnp.float32) * 0.9

    args = (x, w1, b1, g1, beta1, m1, v1, w2, b2, g2, beta2, m2, v2)

    out = conv_block_forward(*args)
    out = jax.block_until_ready(out)

    ref = jax.block_until_ready(_reference(*args))
    np.testing.assert_allclose(np.asarray(out), np.asarray(ref),
                               rtol=1e-4, atol=1e-4)

    print("KERNEL_OK")
</pallas_src>

<mosaic_0001>
module attributes {stable_mosaic.version = 11 : i64} {
  func.func @_conv_block_kernel(%arg0: i32, %arg1: memref<1x326x128xf32, #tpu.memory_space<vmem>>, %arg2: memref<288x1xf32, #tpu.memory_space<vmem>>, %arg3: memref<9x128x128xf32, #tpu.memory_space<vmem>>, %arg4: memref<1x128xf32, #tpu.memory_space<vmem>>, %arg5: memref<1x128xf32, #tpu.memory_space<vmem>>, %arg6: memref<9x128x128xf32, #tpu.memory_space<vmem>>, %arg7: memref<1x128xf32, #tpu.memory_space<vmem>>, %arg8: memref<1x128xf32, #tpu.memory_space<vmem>>, %arg9: memref<1x288x128xf32, #tpu.memory_space<vmem>>, %arg10: memref<326x128xf32, #tpu.memory_space<vmem>>, %arg11: memref<288x128xf32, #tpu.memory_space<vmem>>) attributes {dimension_semantics = [#tpu.dimension_semantics<parallel>], iteration_bounds = array<i64: 2>, scalar_prefetch = 0 : i64, scratch_operands = 2 : i64, tpu.core_type = #tpu.core_type<tc>, window_params = [{transform_indices = @transform_0, window_bounds = array<i64: 1, 326, 128>}, {pipeline_mode = #tpu.pipeline_mode<synchronous>, transform_indices = @transform_1, window_bounds = array<i64: 288, 1>}, {pipeline_mode = #tpu.pipeline_mode<synchronous>, transform_indices = @transform_2, window_bounds = array<i64: 9, 128, 128>}, {pipeline_mode = #tpu.pipeline_mode<synchronous>, transform_indices = @transform_3, window_bounds = array<i64: 1, 128>}, {pipeline_mode = #tpu.pipeline_mode<synchronous>, transform_indices = @transform_4, window_bounds = array<i64: 1, 128>}, {pipeline_mode = #tpu.pipeline_mode<synchronous>, transform_indices = @transform_5, window_bounds = array<i64: 9, 128, 128>}, {pipeline_mode = #tpu.pipeline_mode<synchronous>, transform_indices = @transform_6, window_bounds = array<i64: 1, 128>}, {pipeline_mode = #tpu.pipeline_mode<synchronous>, transform_indices = @transform_7, window_bounds = array<i64: 1, 128>}, {transform_indices = @transform_8, window_bounds = array<i64: 1, 288, 128>}]} {
    %c0 = arith.constant 0 : index
    %c0_0 = arith.constant 0 : index
    %c0_1 = arith.constant 0 : index
    %0 = vector.load %arg1[%c0, %c0_0, %c0_1] : memref<1x326x128xf32, #tpu.memory_space<vmem>>, vector<1x288x128xf32>
    %1 = vector.shape_cast %0 : vector<1x288x128xf32> to vector<288x128xf32>
    %c0_2 = arith.constant 0 : index
    %c0_3 = arith.constant 0 : index
    %c0_4 = arith.constant 0 : index
    %2 = vector.load %arg3[%c0_2, %c0_3, %c0_4] : memref<9x128x128xf32, #tpu.memory_space<vmem>>, vector<1x128x128xf32>
    %3 = vector.shape_cast %2 : vector<1x128x128xf32> to vector<128x128xf32>
    %cst = arith.constant dense<0.000000e+00> : vector<288x128xf32>
    %4 = tpu.matmul %1, %3, %cst {dimension_numbers = #tpu.dot_dimension_numbers<[1], [0], [0], [1], [0, 0, 1, 1], [], []>} : vector<288x128xf32>, vector<128x128xf32>, vector<288x128xf32> -> vector<288x128xf32>
    %c0_5 = arith.constant 0 : index
    %c0_6 = arith.constant 0 : index
    %5 = vector.load %arg11[%c0_5, %c0_6] : memref<288x128xf32, #tpu.memory_space<vmem>>, vector<288x128xf32>
    tpu.vector_store %arg11[%c0_5, %c0_6], %4 {strides = array<i32>} : memref<288x128xf32, #tpu.memory_space<vmem>>, vector<288x128xf32>,
    %c0_7 = arith.constant 0 : index
    %c1 = arith.constant 1 : index
    %c0_8 = arith.constant 0 : index
    %6 = vector.load %arg1[%c0_7, %c1, %c0_8] : memref<1x326x128xf32, #tpu.memory_space<vmem>>, vector<1x288x128xf32>
    %7 = vector.shape_cast %6 : vector<1x288x128xf32> to vector<288x128xf32>
    %c1_9 = arith.constant 1 : index
    %c0_10 = arith.constant 0 : index
    %c0_11 = arith.constant 0 : index
    %8 = vector.load %arg3[%c1_9, %c0_10, %c0_11] : memref<9x128x128xf32, #tpu.memory_space<vmem>>, vector<1x128x128xf32>
    %9 = vector.shape_cast %8 : vector<1x128x128xf32> to vector<128x128xf32>
    %cst_12 = arith.constant dense<0.000000e+00> : vector<288x128xf32>
    %10 = tpu.matmul %7, %9, %cst_12 {dimension_numbers = #tpu.dot_dimension_numbers<[1], [0], [0], [1], [0, 0, 1, 1], [], []>} : vector<288x128xf32>, vector<128x128xf32>, vector<288x128xf32> -> vector<288x128xf32>
    %c0_13 = arith.constant 0 : index
    %c0_14 = arith.constant 0 : index
    %11 = vector.load %arg11[%c0_13, %c0_14] : memref<288x128xf32, #tpu.memory_space<vmem>>, vector<288x128xf32>
    %12 = arith.addf %11, %10 : vector<288x128xf32>
    %c0_15 = arith.constant 0 : index
    %c0_16 = arith.constant 0 : index
    %13 = vector.load %arg11[%c0_15, %c0_16] : memref<288x128xf32, #tpu.memory_space<vmem>>, vector<288x128xf32>
    tpu.vector_store %arg11[%c0_15, %c0_16], %12 {strides = array<i32>} : memref<288x128xf32, #tpu.memory_space<vmem>>, vector<288x128xf32>,
    %c0_17 = arith.constant 0 : index
    %c2 = arith.constant 2 : index
    %c0_18 = arith.constant 0 : index
    %14 = vector.load %arg1[%c0_17, %c2, %c0_18] : memref<1x326x128xf32, #tpu.memory_space<vmem>>, vector<1x288x128xf32>
    %15 = vector.shape_cast %14 : vector<1x288x128xf32> to vector<288x128xf32>
    %c2_19 = arith.constant 2 : index
    %c0_20 = arith.constant 0 : index
    %c0_21 = arith.constant 0 : index
    %16 = vector.load %arg3[%c2_19, %c0_20, %c0_21] : memref<9x128x128xf32, #tpu.memory_space<vmem>>, vector<1x128x128xf32>
    %17 = vector.shape_cast %16 : vector<1x128x128xf32> to vector<128x128xf32>
    %cst_22 = arith.constant dense<0.000000e+00> : vector<288x128xf32>
    %18 = tpu.matmul %15, %17, %cst_22 {dimension_numbers = #tpu.dot_dimension_numbers<[1], [0], [0], [1], [0, 0, 1, 1], [], []>} : vector<288x128xf32>, vector<128x128xf32>, vector<288x128xf32> -> vector<288x128xf32>
    %c0_23 = arith.constant 0 : index
    %c0_24 = arith.constant 0 : index
    %19 = vector.load %arg11[%c0_23, %c0_24] : memref<288x128xf32, #tpu.memory_space<vmem>>, vector<288x128xf32>
    %20 = arith.addf %19, %18 : vector<288x128xf32>
    %c0_25 = arith.constant 0 : index
    %c0_26 = arith.constant 0 : index
    %21 = vector.load %arg11[%c0_25, %c0_26] : memref<288x128xf32, #tpu.memory_space<vmem>>, vector<288x128xf32>
    tpu.vector_store %arg11[%c0_25, %c0_26], %20 {strides = array<i32>} : memref<288x128xf32, #tpu.memory_space<vmem>>, vector<288x128xf32>,
    %c0_27 = arith.constant 0 : index
    %c18 = arith.constant 18 : index
    %c0_28 = arith.constant 0 : index
    %22 = vector.load %arg1[%c0_27, %c18, %c0_28] : memref<1x326x128xf32, #tpu.memory_space<vmem>>, vector<1x288x128xf32>
    %23 = vector.shape_cast %22 : vector<1x288x128xf32> to vector<288x128xf32>
    %c3 = arith.constant 3 : index
    %c0_29 = arith.constant 0 : index
    %c0_30 = arith.constant 0 : index
    %24 = vector.load %arg3[%c3, %c0_29, %c0_30] : memref<9x128x128xf32, #tpu.memory_space<vmem>>, vector<1x128x128xf32>
    %25 = vector.shape_cast %24 : vector<1x128x128xf32> to vector<128x128xf32>
    %cst_31 = arith.constant dense<0.000000e+00> : vector<288x128xf32>
    %26 = tpu.matmul %23, %25, %cst_31 {dimension_numbers = #tpu.dot_dimension_numbers<[1], [0], [0], [1], [0, 0, 1, 1], [], []>} : vector<288x128xf32>, vector<128x128xf32>, vector<288x128xf32> -> vector<288x128xf32>
    %c0_32 = arith.constant 0 : index
    %c0_33 = arith.constant 0 : index
    %27 = vector.load %arg11[%c0_32, %c0_33] : memref<288x128xf32, #tpu.memory_space<vmem>>, vector<288x128xf32>
    %28 = arith.addf %27, %26 : vector<288x128xf32>
    %c0_34 = arith.constant 0 : index
    %c0_35 = arith.constant 0 : index
    %29 = vector.load %arg11[%c0_34, %c0_35] : memref<288x128xf32, #tpu.memory_space<vmem>>, vector<288x128xf32>
    tpu.vector_store %arg11[%c0_34, %c0_35], %28 {strides = array<i32>} : memref<288x128xf32, #tpu.memory_space<vmem>>, vector<288x128xf32>,
    %c0_36 = arith.constant 0 : index
    %c19 = arith.constant 19 : index
    %c0_37 = arith.constant 0 : index
    %30 = vector.load %arg1[%c0_36, %c19, %c0_37] : memref<1x326x128xf32, #tpu.memory_space<vmem>>, vector<1x288x128xf32>
    %31 = vector.shape_cast %30 : vector<1x288x128xf32> to vector<288x128xf32>
    %c4 = arith.constant 4 : index
    %c0_38 = arith.constant 0 : index
    %c0_39 = arith.constant 0 : index
    %32 = vector.load %arg3[%c4, %c0_38, %c0_39] : memref<9x128x128xf32, #tpu.memory_space<vmem>>, vector<1x128x128xf32>
    %33 = vector.shape_cast %32 : vector<1x128x128xf32> to vector<128x128xf32>
    %cst_40 = arith.constant dense<0.000000e+00> : vector<288x128xf32>
    %34 = tpu.matmul %31, %33, %cst_40 {dimension_numbers = #tpu.dot_dimension_numbers<[1], [0], [0], [1], [0, 0, 1, 1], [], []>} : vector<288x128xf32>, vector<128x128xf32>, vector<288x128xf32> -> vector<288x128xf32>
    %c0_41 = arith.constant 0 : index
    %c0_42 = arith.constant 0 : index
    %35 = vector.load %arg11[%c0_41, %c0_42] : memref<288x128xf32, #tpu.memory_space<vmem>>, vector<288x128xf32>
    %36 = arith.addf %35, %34 : vector<288x128xf32>
    %c0_43 = arith.constant 0 : index
    %c0_44 = arith.constant 0 : index
    %37 = vector.load %arg11[%c0_43, %c0_44] : memref<288x128xf32, #tpu.memory_space<vmem>>, vector<288x128xf32>
    tpu.vector_store %arg11[%c0_43, %c0_44], %36 {strides = array<i32>} : memref<288x128xf32, #tpu.memory_space<vmem>>, vector<288x128xf32>,
    %c0_45 = arith.constant 0 : index
    %c20 = arith.constant 20 : index
    %c0_46 = arith.constant 0 : index
    %38 = vector.load %arg1[%c0_45, %c20, %c0_46] : memref<1x326x128xf32, #tpu.memory_space<vmem>>, vector<1x288x128xf32>
    %39 = vector.shape_cast %38 : vector<1x288x128xf32> to vector<288x128xf32>
    %c5 = arith.constant 5 : index
    %c0_47 = arith.constant 0 : index
    %c0_48 = arith.constant 0 : index
    %40 = vector.load %arg3[%c5, %c0_47, %c0_48] : memref<9x128x128xf32, #tpu.memory_space<vmem>>, vector<1x128x128xf32>
    %41 = vector.shape_cast %40 : vector<1x128x128xf32> to vector<128x128xf32>
    %cst_49 = arith.constant dense<0.000000e+00> : vector<288x128xf32>
    %42 = tpu.matmul %39, %41, %cst_49 {dimension_numbers = #tpu.dot_dimension_numbers<[1], [0], [0], [1], [0, 0, 1, 1], [], []>} : vector<288x128xf32>, vector<128x128xf32>, vector<288x128xf32> -> vector<288x128xf32>
    %c0_50 = arith.constant 0 : index
    %c0_51 = arith.constant 0 : index
    %43 = vector.load %arg11[%c0_50, %c0_51] : memref<288x128xf32, #tpu.memory_space<vmem>>, vector<288x128xf32>
    %44 = arith.addf %43, %42 : vector<288x128xf32>
    %c0_52 = arith.constant 0 : index
    %c0_53 = arith.constant 0 : index
    %45 = vector.load %arg11[%c0_52, %c0_53] : memref<288x128xf32, #tpu.memory_space<vmem>>, vector<288x128xf32>
    tpu.vector_store %arg11[%c0_52, %c0_53], %44 {strides = array<i32>} : memref<288x128xf32, #tpu.memory_space<vmem>>, vector<288x128xf32>,
    %c0_54 = arith.constant 0 : index
    %c36 = arith.constant 36 : index
    %c0_55 = arith.constant 0 : index
    %46 = vector.load %arg1[%c0_54, %c36, %c0_55] : memref<1x326x128xf32, #tpu.memory_space<vmem>>, vector<1x288x128xf32>
    %47 = vector.shape_cast %46 : vector<1x288x128xf32> to vector<288x128xf32>
    %c6 = arith.constant 6 : index
    %c0_56 = arith.constant 0 : index
    %c0_57 = arith.constant 0 : index
    %48 = vector.load %arg3[%c6, %c0_56, %c0_57] : memref<9x128x128xf32, #tpu.memory_space<vmem>>, vector<1x128x128xf32>
    %49 = vector.shape_cast %48 : vector<1x128x128xf32> to vector<128x128xf32>
    %cst_58 = arith.constant dense<0.000000e+00> : vector<288x128xf32>
    %50 = tpu.matmul %47, %49, %cst_58 {dimension_numbers = #tpu.dot_dimension_numbers<[1], [0], [0], [1], [0, 0, 1, 1], [], []>} : vector<288x128xf32>, vector<128x128xf32>, vector<288x128xf32> -> vector<288x128xf32>
    %c0_59 = arith.constant 0 : index
    %c0_60 = arith.constant 0 : index
    %51 = vector.load %arg11[%c0_59, %c0_60] : memref<288x128xf32, #tpu.memory_space<vmem>>, vector<288x128xf32>
    %52 = arith.addf %51, %50 : vector<288x128xf32>
    %c0_61 = arith.constant 0 : index
    %c0_62 = arith.constant 0 : index
    %53 = vector.load %arg11[%c0_61, %c0_62] : memref<288x128xf32, #tpu.memory_space<vmem>>, vector<288x128xf32>
    tpu.vector_store %arg11[%c0_61, %c0_62], %52 {strides = array<i32>} : memref<288x128xf32, #tpu.memory_space<vmem>>, vector<288x128xf32>,
    %c0_63 = arith.constant 0 : index
    %c37 = arith.constant 37 : index
    %c0_64 = arith.constant 0 : index
    %54 = vector.load %arg1[%c0_63, %c37, %c0_64] : memref<1x326x128xf32, #tpu.memory_space<vmem>>, vector<1x288x128xf32>
    %55 = vector.shape_cast %54 : vector<1x288x128xf32> to vector<288x128xf32>
    %c7 = arith.constant 7 : index
    %c0_65 = arith.constant 0 : index
    %c0_66 = arith.constant 0 : index
    %56 = vector.load %arg3[%c7, %c0_65, %c0_66] : memref<9x128x128xf32, #tpu.memory_space<vmem>>, vector<1x128x128xf32>
    %57 = vector.shape_cast %56 : vector<1x128x128xf32> to vector<128x128xf32>
    %cst_67 = arith.constant dense<0.000000e+00> : vector<288x128xf32>
    %58 = tpu.matmul %55, %57, %cst_67 {dimension_numbers = #tpu.dot_dimension_numbers<[1], [0], [0], [1], [0, 0, 1, 1], [], []>} : vector<288x128xf32>, vector<128x128xf32>, vector<288x128xf32> -> vector<288x128xf32>
    %c0_68 = arith.constant 0 : index
    %c0_69 = arith.constant 0 : index
    %59 = vector.load %arg11[%c0_68, %c0_69] : memref<288x128xf32, #tpu.memory_space<vmem>>, vector<288x128xf32>
    %60 = arith.addf %59, %58 : vector<288x128xf32>
    %c0_70 = arith.constant 0 : index
    %c0_71 = arith.constant 0 : index
    %61 = vector.load %arg11[%c0_70, %c0_71] : memref<288x128xf32, #tpu.memory_space<vmem>>, vector<288x128xf32>
    tpu.vector_store %arg11[%c0_70, %c0_71], %60 {strides = array<i32>} : memref<288x128xf32, #tpu.memory_space<vmem>>, vector<288x128xf32>,
    %c0_72 = arith.constant 0 : index
    %c38 = arith.constant 38 : index
    %c0_73 = arith.constant 0 : index
    %62 = vector.load %arg1[%c0_72, %c38, %c0_73] : memref<1x326x128xf32, #tpu.memory_space<vmem>>, vector<1x288x128xf32>
    %63 = vector.shape_cast %62 : vector<1x288x128xf32> to vector<288x128xf32>
    %c8 = arith.constant 8 : index
    %c0_74 = arith.constant 0 : index
    %c0_75 = arith.constant 0 : index
    %64 = vector.load %arg3[%c8, %c0_74, %c0_75] : memref<9x128x128xf32, #tpu.memory_space<vmem>>, vector<1x128x128xf32>
    %65 = vector.shape_cast %64 : vector<1x128x128xf32> to vector<128x128xf32>
    %cst_76 = arith.constant dense<0.000000e+00> : vector<288x128xf32>
    %66 = tpu.matmul %63, %65, %cst_76 {dimension_numbers = #tpu.dot_dimension_numbers<[1], [0], [0], [1], [0, 0, 1, 1], [], []>} : vector<288x128xf32>, vector<128x128xf32>, vector<288x128xf32> -> vector<288x128xf32>
    %c0_77 = arith.constant 0 : index
    %c0_78 = arith.constant 0 : index
    %67 = vector.load %arg11[%c0_77, %c0_78] : memref<288x128xf32, #tpu.memory_space<vmem>>, vector<288x128xf32>
    %68 = arith.addf %67, %66 : vector<288x128xf32>
    %c0_79 = arith.constant 0 : index
    %c0_80 = arith.constant 0 : index
    %69 = vector.load %arg11[%c0_79, %c0_80] : memref<288x128xf32, #tpu.memory_space<vmem>>, vector<288x128xf32>
    tpu.vector_store %arg11[%c0_79, %c0_80], %68 {strides = array<i32>} : memref<288x128xf32, #tpu.memory_space<vmem>>, vector<288x128xf32>,
    %c0_81 = arith.constant 0 : index
    %c0_82 = arith.constant 0 : index
    %70 = vector.load %arg11[%c0_81, %c0_82] : memref<288x128xf32, #tpu.memory_space<vmem>>, vector<288x128xf32>
    %c0_83 = arith.constant 0 : index
    %c0_84 = arith.constant 0 : index
    %71 = vector.load %arg4[%c0_83, %c0_84] : memref<1x128xf32, #tpu.memory_space<vmem>>, vector<1x128xf32>
    %72 = vector.broadcast %71 : vector<1x128xf32> to vector<288x128xf32>
    %73 = arith.mulf %70, %72 : vector<288x128xf32>
    %c0_85 = arith.constant 0 : index
    %c0_86 = arith.constant 0 : index
    %74 = vector.load %arg5[%c0_85, %c0_86] : memref<1x128xf32, #tpu.memory_space<vmem>>, vector<1x128xf32>
    %75 = vector.broadcast %74 : vector<1x128xf32> to vector<288x128xf32>
    %76 = arith.addf %73, %75 : vector<288x128xf32>
    %cst_87 = arith.constant 0.000000e+00 : f32
    %77 = vector.broadcast %cst_87 : f32 to vector<288x128xf32>
    %78 = arith.maximumf %76, %77 : vector<288x128xf32>
    %c0_88 = arith.constant 0 : index
    %c0_89 = arith.constant 0 : index
    %79 = vector.load %arg2[%c0_88, %c0_89] : memref<288x1xf32, #tpu.memory_space<vmem>>, vector<288x1xf32>
    %80 = vector.broadcast %79 : vector<288x1xf32> to vector<288x128xf32>
    %81 = arith.mulf %78, %80 : vector<288x128xf32>
    %cst_90 = arith.constant 0.000000e+00 : f32
    %82 = vector.broadcast %cst_90 : f32 to vector<19x128xf32>
    %c0_91 = arith.constant 0 : index
    %c0_92 = arith.constant 0 : index
    %83 = vector.load %arg10[%c0_91, %c0_92] : memref<326x128xf32, #tpu.memory_space<vmem>>, vector<19x128xf32>
    tpu.vector_store %arg10[%c0_91, %c0_92], %82 {strides = array<i32>} : memref<326x128xf32, #tpu.memory_space<vmem>>, vector<19x128xf32>,
    %cst_93 = arith.constant 0.000000e+00 : f32
    %84 = vector.broadcast %cst_93 : f32 to vector<19x128xf32>
    %c307 = arith.constant 307 : index
    %c0_94 = arith.constant 0 : index
    %85 = vector.load %arg10[%c307, %c0_94] : memref<326x128xf32, #tpu.memory_space<vmem>>, vector<19x128xf32>
    tpu.vector_store %arg10[%c307, %c0_94], %84 {strides = array<i32>} : memref<326x128xf32, #tpu.memory_space<vmem>>, vector<19x128xf32>,
    %c19_95 = arith.constant 19 : index
    %c0_96 = arith.constant 0 : index
    %86 = vector.load %arg10[%c19_95, %c0_96] : memref<326x128xf32, #tpu.memory_space<vmem>>, vector<288x128xf32>
    tpu.vector_store %arg10[%c19_95, %c0_96], %81 {strides = array<i32>} : memref<326x128xf32, #tpu.memory_space<vmem>>, vector<288x128xf32>,
    %c0_97 = arith.constant 0 : index
    %c0_98 = arith.constant 0 : index
    %87 = vector.load %arg10[%c0_97, %c0_98] : memref<326x128xf32, #tpu.memory_space<vmem>>, vector<288x128xf32>
    %c0_99 = arith.constant 0 : index
    %c0_100 = arith.constant 0 : index
    %c0_101 = arith.constant 0 : index
    %88 = vector.load %arg6[%c0_99, %c0_100, %c0_101] : memref<9x128x128xf32, #tpu.memory_space<vmem>>, vector<1x128x128xf32>
    %89 = vector.shape_cast %88 : vector<1x128x128xf32> to vector<128x128xf32>
    %cst_102 = arith.constant dense<0.000000e+00> : vector<288x128xf32>
    %90 = tpu.matmul %87, %89, %cst_102 {dimension_numbers = #tpu.dot_dimension_numbers<[1], [0], [0], [1], [0, 0, 1, 1], [], []>} : vector<288x128xf32>, vector<128x128xf32>, vector<288x128xf32> -> vector<288x128xf32>
    %c0_103 = arith.constant 0 : index
    %c0_104 = arith.constant 0 : index
    %91 = vector.load %arg11[%c0_103, %c0_104] : memref<288x128xf32, #tpu.memory_space<vmem>>, vector<288x128xf32>
    tpu.vector_store %arg11[%c0_103, %c0_104], %90 {strides = array<i32>} : memref<288x128xf32, #tpu.memory_space<vmem>>, vector<288x128xf32>,
    %c1_105 = arith.constant 1 : index
    %c0_106 = arith.constant 0 : index
    %92 = vector.load %arg10[%c1_105, %c0_106] : memref<326x128xf32, #tpu.memory_space<vmem>>, vector<288x128xf32>
    %c1_107 = arith.constant 1 : index
    %c0_108 = arith.constant 0 : index
    %c0_109 = arith.constant 0 : index
    %93 = vector.load %arg6[%c1_107, %c0_108, %c0_109] : memref<9x128x128xf32, #tpu.memory_space<vmem>>, vector<1x128x128xf32>
    %94 = vector.shape_cast %93 : vector<1x128x128xf32> to vector<128x128xf32>
    %cst_110 = arith.constant dense<0.000000e+00> : vector<288x128xf32>
    %95 = tpu.matmul %92, %94, %cst_110 {dimension_numbers = #tpu.dot_dimension_numbers<[1], [0], [0], [1], [0, 0, 1, 1], [], []>} : vector<288x128xf32>, vector<128x128xf32>, vector<288x128xf32> -> vector<288x128xf32>
    %c0_111 = arith.constant 0 : index
    %c0_112 = arith.constant 0 : index
    %96 = vector.load %arg11[%c0_111, %c0_112] : memref<288x128xf32, #tpu.memory_space<vmem>>, vector<288x128xf32>
    %97 = arith.addf %96, %95 : vector<288x128xf32>
    %c0_113 = arith.constant 0 : index
    %c0_114 = arith.constant 0 : index
    %98 = vector.load %arg11[%c0_113, %c0_114] : memref<288x128xf32, #tpu.memory_space<vmem>>, vector<288x128xf32>
    tpu.vector_store %arg11[%c0_113, %c0_114], %97 {strides = array<i32>} : memref<288x128xf32, #tpu.memory_space<vmem>>, vector<288x128xf32>,
    %c2_115 = arith.constant 2 : index
    %c0_116 = arith.constant 0 : index
    %99 = vector.load %arg10[%c2_115, %c0_116] : memref<326x128xf32, #tpu.memory_space<vmem>>, vector<288x128xf32>
    %c2_117 = arith.constant 2 : index
    %c0_118 = arith.constant 0 : index
    %c0_119 = arith.constant 0 : index
    %100 = vector.load %arg6[%c2_117, %c0_118, %c0_119] : memref<9x128x128xf32, #tpu.memory_space<vmem>>, vector<1x128x128xf32>
    %101 = vector.shape_cast %100 : vector<1x128x128xf32> to vector<128x128xf32>
    %cst_120 = arith.constant dense<0.000000e+00> : vector<288x128xf32>
    %102 = tpu.matmul %99, %101, %cst_120 {dimension_numbers = #tpu.dot_dimension_numbers<[1], [0], [0], [1], [0, 0, 1, 1], [], []>} : vector<288x128xf32>, vector<128x128xf32>, vector<288x128xf32> -> vector<288x128xf32>
    %c0_121 = arith.constant 0 : index
    %c0_122 = arith.constant 0 : index
    %103 = vector.load %arg11[%c0_121, %c0_122] : memref<288x128xf32, #tpu.memory_space<vmem>>, vector<288x128xf32>
    %104 = arith.addf %103, %102 : vector<288x128xf32>
    %c0_123 = arith.constant 0 : index
    %c0_124 = arith.constant 0 : index
    %105 = vector.load %arg11[%c0_123, %c0_124] : memref<288x128xf32, #tpu.memory_space<vmem>>, vector<288x128xf32>
    tpu.vector_store %arg11[%c0_123, %c0_124], %104 {strides = array<i32>} : memref<288x128xf32, #tpu.memory_space<vmem>>, vector<288x128xf32>,
    %c18_125 = arith.constant 18 : index
    %c0_126 = arith.constant 0 : index
    %106 = vector.load %arg10[%c18_125, %c0_126] : memref<326x128xf32, #tpu.memory_space<vmem>>, vector<288x128xf32>
    %c3_127 = arith.constant 3 : index
    %c0_128 = arith.constant 0 : index
    %c0_129 = arith.constant 0 : index
    %107 = vector.load %arg6[%c3_127, %c0_128, %c0_129] : memref<9x128x128xf32, #tpu.memory_space<vmem>>, vector<1x128x128xf32>
    %108 = vector.shape_cast %107 : vector<1x128x128xf32> to vector<128x128xf32>
    %cst_130 = arith.constant dense<0.000000e+00> : vector<288x128xf32>
    %109 = tpu.matmul %106, %108, %cst_130 {dimension_numbers = #tpu.dot_dimension_numbers<[1], [0], [0], [1], [0, 0, 1, 1], [], []>} : vector<288x128xf32>, vector<128x128xf32>, vector<288x128xf32> -> vector<288x128xf32>
    %c0_131 = arith.constant 0 : index
    %c0_132 = arith.constant 0 : index
    %110 = vector.load %arg11[%c0_131, %c0_132] : memref<288x128xf32, #tpu.memory_space<vmem>>, vector<288x128xf32>
    %111 = arith.addf %110, %109 : vector<288x128xf32>
    %c0_133 = arith.constant 0 : index
    %c0_134 = arith.constant 0 : index
    %112 = vector.load %arg11[%c0_133, %c0_134] : memref<288x128xf32, #tpu.memory_space<vmem>>, vector<288x128xf32>
    tpu.vector_store %arg11[%c0_133, %c0_134], %111 {strides = array<i32>} : memref<288x128xf32, #tpu.memory_space<vmem>>, vector<288x128xf32>,
    %c19_135 = arith.constant 19 : index
    %c0_136 = arith.constant 0 : index
    %113 = vector.load %arg10[%c19_135, %c0_136] : memref<326x128xf32, #tpu.memory_space<vmem>>, vector<288x128xf32>
    %c4_137 = arith.constant 4 : index
    %c0_138 = arith.constant 0 : index
    %c0_139 = arith.constant 0 : index
    %114 = vector.load %arg6[%c4_137, %c0_138, %c0_139] : memref<9x128x128xf32, #tpu.memory_space<vmem>>, vector<1x128x128xf32>
    %115 = vector.shape_cast %114 : vector<1x128x128xf32> to vector<128x128xf32>
    %cst_140 = arith.constant dense<0.000000e+00> : vector<288x128xf32>
    %116 = tpu.matmul %113, %115, %cst_140 {dimension_numbers = #tpu.dot_dimension_numbers<[1], [0], [0], [1], [0, 0, 1, 1], [], []>} : vector<288x128xf32>, vector<128x128xf32>, vector<288x128xf32> -> vector<288x128xf32>
    %c0_141 = arith.constant 0 : index
    %c0_142 = arith.constant 0 : index
    %117 = vector.load %arg11[%c0_141, %c0_142] : memref<288x128xf32, #tpu.memory_space<vmem>>, vector<288x128xf32>
    %118 = arith.addf %117, %116 : vector<288x128xf32>
    %c0_143 = arith.constant 0 : index
    %c0_144 = arith.constant 0 : index
    %119 = vector.load %arg11[%c0_143, %c0_144] : memref<288x128xf32, #tpu.memory_space<vmem>>, vector<288x128xf32>
    tpu.vector_store %arg11[%c0_143, %c0_144], %118 {strides = array<i32>} : memref<288x128xf32, #tpu.memory_space<vmem>>, vector<288x128xf32>,
    %c20_145 = arith.constant 20 : index
    %c0_146 = arith.constant 0 : index
    %120 = vector.load %arg10[%c20_145, %c0_146] : memref<326x128xf32, #tpu.memory_space<vmem>>, vector<288x128xf32>
    %c5_147 = arith.constant 5 : index
    %c0_148 = arith.constant 0 : index
    %c0_149 = arith.constant 0 : index
    %121 = vector.load %arg6[%c5_147, %c0_148, %c0_149] : memref<9x128x128xf32, #tpu.memory_space<vmem>>, vector<1x128x128xf32>
    %122 = vector.shape_cast %121 : vector<1x128x128xf32> to vector<128x128xf32>
    %cst_150 = arith.constant dense<0.000000e+00> : vector<288x128xf32>
    %123 = tpu.matmul %120, %122, %cst_150 {dimension_numbers = #tpu.dot_dimension_numbers<[1], [0], [0], [1], [0, 0, 1, 1], [], []>} : vector<288x128xf32>, vector<128x128xf32>, vector<288x128xf32> -> vector<288x128xf32>
    %c0_151 = arith.constant 0 : index
    %c0_152 = arith.constant 0 : index
    %124 = vector.load %arg11[%c0_151, %c0_152] : memref<288x128xf32, #tpu.memory_space<vmem>>, vector<288x128xf32>
    %125 = arith.addf %124, %123 : vector<288x128xf32>
    %c0_153 = arith.constant 0 : index
    %c0_154 = arith.constant 0 : index
    %126 = vector.load %arg11[%c0_153, %c0_154] : memref<288x128xf32, #tpu.memory_space<vmem>>, vector<288x128xf32>
    tpu.vector_store %arg11[%c0_153, %c0_154], %125 {strides = array<i32>} : memref<288x128xf32, #tpu.memory_space<vmem>>, vector<288x128xf32>,
    %c36_155 = arith.constant 36 : index
    %c0_156 = arith.constant 0 : index
    %127 = vector.load %arg10[%c36_155, %c0_156] : memref<326x128xf32, #tpu.memory_space<vmem>>, vector<288x128xf32>
    %c6_157 = arith.constant 6 : index
    %c0_158 = arith.constant 0 : index
    %c0_159 = arith.constant 0 : index
    %128 = vector.load %arg6[%c6_157, %c0_158, %c0_159] : memref<9x128x128xf32, #tpu.memory_space<vmem>>, vector<1x128x128xf32>
    %129 = vector.shape_cast %128 : vector<1x128x128xf32> to vector<128x128xf32>
    %cst_160 = arith.constant dense<0.000000e+00> : vector<288x128xf32>
    %130 = tpu.matmul %127, %129, %cst_160 {dimension_numbers = #tpu.dot_dimension_numbers<[1], [0], [0], [1], [0, 0, 1, 1], [], []>} : vector<288x128xf32>, vector<128x128xf32>, vector<288x128xf32> -> vector<288x128xf32>
    %c0_161 = arith.constant 0 : index
    %c0_162 = arith.constant 0 : index
    %131 = vector.load %arg11[%c0_161, %c0_162] : memref<288x128xf32, #tpu.memory_space<vmem>>, vector<288x128xf32>
    %132 = arith.addf %131, %130 : vector<288x128xf32>
    %c0_163 = arith.constant 0 : index
    %c0_164 = arith.constant 0 : index
    %133 = vector.load %arg11[%c0_163, %c0_164] : memref<288x128xf32, #tpu.memory_space<vmem>>, vector<288x128xf32>
    tpu.vector_store %arg11[%c0_163, %c0_164], %132 {strides = array<i32>} : memref<288x128xf32, #tpu.memory_space<vmem>>, vector<288x128xf32>,
    %c37_165 = arith.constant 37 : index
    %c0_166 = arith.constant 0 : index
    %134 = vector.load %arg10[%c37_165, %c0_166] : memref<326x128xf32, #tpu.memory_space<vmem>>, vector<288x128xf32>
    %c7_167 = arith.constant 7 : index
    %c0_168 = arith.constant 0 : index
    %c0_169 = arith.constant 0 : index
    %135 = vector.load %arg6[%c7_167, %c0_168, %c0_169] : memref<9x128x128xf32, #tpu.memory_space<vmem>>, vector<1x128x128xf32>
    %136 = vector.shape_cast %135 : vector<1x128x128xf32> to vector<128x128xf32>
    %cst_170 = arith.constant dense<0.000000e+00> : vector<288x128xf32>
    %137 = tpu.matmul %134, %136, %cst_170 {dimension_numbers = #tpu.dot_dimension_numbers<[1], [0], [0], [1], [0, 0, 1, 1], [], []>} : vector<288x128xf32>, vector<128x128xf32>, vector<288x128xf32> -> vector<288x128xf32>
    %c0_171 = arith.constant 0 : index
    %c0_172 = arith.constant 0 : index
    %138 = vector.load %arg11[%c0_171, %c0_172] : memref<288x128xf32, #tpu.memory_space<vmem>>, vector<288x128xf32>
    %139 = arith.addf %138, %137 : vector<288x128xf32>
    %c0_173 = arith.constant 0 : index
    %c0_174 = arith.constant 0 : index
    %140 = vector.load %arg11[%c0_173, %c0_174] : memref<288x128xf32, #tpu.memory_space<vmem>>, vector<288x128xf32>
    tpu.vector_store %arg11[%c0_173, %c0_174], %139 {strides = array<i32>} : memref<288x128xf32, #tpu.memory_space<vmem>>, vector<288x128xf32>,
    %c38_175 = arith.constant 38 : index
    %c0_176 = arith.constant 0 : index
    %141 = vector.load %arg10[%c38_175, %c0_176] : memref<326x128xf32, #tpu.memory_space<vmem>>, vector<288x128xf32>
    %c8_177 = arith.constant 8 : index
    %c0_178 = arith.constant 0 : index
    %c0_179 = arith.constant 0 : index
    %142 = vector.load %arg6[%c8_177, %c0_178, %c0_179] : memref<9x128x128xf32, #tpu.memory_space<vmem>>, vector<1x128x128xf32>
    %143 = vector.shape_cast %142 : vector<1x128x128xf32> to vector<128x128xf32>
    %cst_180 = arith.constant dense<0.000000e+00> : vector<288x128xf32>
    %144 = tpu.matmul %141, %143, %cst_180 {dimension_numbers = #tpu.dot_dimension_numbers<[1], [0], [0], [1], [0, 0, 1, 1], [], []>} : vector<288x128xf32>, vector<128x128xf32>, vector<288x128xf32> -> vector<288x128xf32>
    %c0_181 = arith.constant 0 : index
    %c0_182 = arith.constant 0 : index
    %145 = vector.load %arg11[%c0_181, %c0_182] : memref<288x128xf32, #tpu.memory_space<vmem>>, vector<288x128xf32>
    %146 = arith.addf %145, %144 : vector<288x128xf32>
    %c0_183 = arith.constant 0 : index
    %c0_184 = arith.constant 0 : index
    %147 = vector.load %arg11[%c0_183, %c0_184] : memref<288x128xf32, #tpu.memory_space<vmem>>, vector<288x128xf32>
    tpu.vector_store %arg11[%c0_183, %c0_184], %146 {strides = array<i32>} : memref<288x128xf32, #tpu.memory_space<vmem>>, vector<288x128xf32>,
    %c0_185 = arith.constant 0 : index
    %c0_186 = arith.constant 0 : index
    %148 = vector.load %arg11[%c0_185, %c0_186] : memref<288x128xf32, #tpu.memory_space<vmem>>, vector<288x128xf32>
    %c0_187 = arith.constant 0 : index
    %c0_188 = arith.constant 0 : index
    %149 = vector.load %arg7[%c0_187, %c0_188] : memref<1x128xf32, #tpu.memory_space<vmem>>, vector<1x128xf32>
    %150 = vector.broadcast %149 : vector<1x128xf32> to vector<288x128xf32>
    %151 = arith.mulf %148, %150 : vector<288x128xf32>
    %c0_189 = arith.constant 0 : index
    %c0_190 = arith.constant 0 : index
    %152 = vector.load %arg8[%c0_189, %c0_190] : memref<1x128xf32, #tpu.memory_space<vmem>>, vector<1x128xf32>
    %153 = vector.broadcast %152 : vector<1x128xf32> to vector<288x128xf32>
    %154 = arith.addf %151, %153 : vector<288x128xf32>
    %cst_191 = arith.constant 0.000000e+00 : f32
    %155 = vector.broadcast %cst_191 : f32 to vector<288x128xf32>
    %156 = arith.maximumf %154, %155 : vector<288x128xf32>
    %157 = vector.shape_cast %156 : vector<288x128xf32> to vector<1x288x128xf32>
    %c0_192 = arith.constant 0 : index
    %c0_193 = arith.constant 0 : index
    %c0_194 = arith.constant 0 : index
    %158 = vector.load %arg9[%c0_192, %c0_193, %c0_194] : memref<1x288x128xf32, #tpu.memory_space<vmem>>, vector<1x288x128xf32>
    tpu.vector_store %arg9[%c0_192, %c0_193, %c0_194], %157 {strides = array<i32>} : memref<1x288x128xf32, #tpu.memory_space<vmem>>, vector<1x288x128xf32>,
    return
  }
  func.func @transform_0(%arg0: i32) -> (i32, i32, i32) {
    %c0_i32 = arith.constant 0 : i32
    %c0_i32_0 = arith.constant 0 : i32
    %c0_i32_1 = arith.constant 0 : i32
    return %arg0, %c0_i32, %c0_i32_0 : i32, i32, i32
  }
  func.func @transform_1(%arg0: i32) -> (i32, i32) {
    %c0_i32 = arith.constant 0 : i32
    %c0_i32_0 = arith.constant 0 : i32
    %c0_i32_1 = arith.constant 0 : i32
    return %c0_i32, %c0_i32_0 : i32, i32
  }
  func.func @transform_2(%arg0: i32) -> (i32, i32, i32) {
    %c0_i32 = arith.constant 0 : i32
    %c0_i32_0 = arith.constant 0 : i32
    %c0_i32_1 = arith.constant 0 : i32
    %c0_i32_2 = arith.constant 0 : i32
    return %c0_i32, %c0_i32_0, %c0_i32_1 : i32, i32, i32
  }
  func.func @transform_3(%arg0: i32) -> (i32, i32) {
    %c0_i32 = arith.constant 0 : i32
    %c0_i32_0 = arith.constant 0 : i32
    %c0_i32_1 = arith.constant 0 : i32
    return %c0_i32, %c0_i32_0 : i32, i32
  }
  func.func @transform_4(%arg0: i32) -> (i32, i32) {
    %c0_i32 = arith.constant 0 : i32
    %c0_i32_0 = arith.constant 0 : i32
    %c0_i32_1 = arith.constant 0 : i32
    return %c0_i32, %c0_i32_0 : i32, i32
  }
  func.func @transform_5(%arg0: i32) -> (i32, i32, i32) {
    %c0_i32 = arith.constant 0 : i32
    %c0_i32_0 = arith.constant 0 : i32
    %c0_i32_1 = arith.constant 0 : i32
    %c0_i32_2 = arith.constant 0 : i32
    return %c0_i32, %c0_i32_0, %c0_i32_1 : i32, i32, i32
  }
  func.func @transform_6(%arg0: i32) -> (i32, i32) {
    %c0_i32 = arith.constant 0 : i32
    %c0_i32_0 = arith.constant 0 : i32
    %c0_i32_1 = arith.constant 0 : i32
    return %c0_i32, %c0_i32_0 : i32, i32
  }
  func.func @transform_7(%arg0: i32) -> (i32, i32) {
    %c0_i32 = arith.constant 0 : i32
    %c0_i32_0 = arith.constant 0 : i32
    %c0_i32_1 = arith.constant 0 : i32
    return %c0_i32, %c0_i32_0 : i32, i32
  }
  func.func @transform_8(%arg0: i32) -> (i32, i32, i32) {
    %c0_i32 = arith.constant 0 : i32
    %c0_i32_0 = arith.constant 0 : i32
    %c0_i32_1 = arith.constant 0 : i32
    return %arg0, %c0_i32, %c0_i32_0 : i32, i32, i32
  }
}

</mosaic_0001>

<bundles_post_ra>
// kernel: conv_block_forward.1
= control target key start
LH: loop header
LB: loop body
LE: loop exit
PB: predicated region body
PF: predicated region fallthrough
CT: control target
= control target key end

     0   :  { %s12143_s27 = smov 0   ;;  %s14224_s0 = inlined_call_operand.vmem [shape: f32[2,326,128], index: 0, kind: input, shape index: {}]   ;;  %s14225_s1 = inlined_call_operand.vmem [shape: f32[288,1], index: 1, kind: input, shape index: {}]   ;;  %s14226_s2 = inlined_call_operand.vmem [shape: f32[9,128,128], index: 2, kind: input, shape index: {}]   ;;  %s14227_s3 = inlined_call_operand.vmem [shape: f32[1,128], index: 3, kind: input, shape index: {}]   ;;  %s14228_s4 = inlined_call_operand.vmem [shape: f32[1,128], index: 4, kind: input, shape index: {}]   ;;  %s14229_s5 = inlined_call_operand.vmem [shape: f32[9,128,128], index: 5, kind: input, shape index: {}]   ;;  %s14230_s6 = inlined_call_operand.vmem [shape: f32[1,128], index: 6, kind: input, shape index: {}]   ;;  %s14231_s7 = inlined_call_operand.vmem [shape: f32[1,128], index: 7, kind: input, shape index: {}]   ;;  %s14232_s8 = inlined_call_operand.vmem [shape: f32[2,288,128], index: 8, kind: output, shape index: {}]  }
   0x1 LB: > { %s8169_s28 = sadd.s32 4294967295, %s12094_s27   ;;  %p8173_p0 = scmp.ge.s32.totalorder %s12094_s27, 1  ;;  %s12094_s27 = sphi %s12143_s27, %s18_s27  }
   0x2   : > { %p262_p1 = scmp.lt.s32.totalorder %s12094_s27, 3 }
   0x4   : > { %p263_p2 = pnand %p8173_p0, %p262_p1 }
   0x5   : > { %v342_v0 = vld [vmem:[%s14226_s2] sm:$0xff] (!%p263_p2)  ;;  %v343_v1 = vld [vmem:[%s14226_s2 + $0x8] sm:$0xff] (!%p263_p2)  ;;  %v344_v2 = vld [vmem:[%s14226_s2 + $0x10] sm:$0xff] (!%p263_p2)  ;;  %p296_p3 = scmp.lt.s32.totalorder (!%p263_p2), %s8169_s28, 1 }
   0x6   : > { %266 = sbr.rel (%p263_p2) target bundleno = 1706 (0x6aa), region = 52  ;;  %v10922_v3 = vpack.c.bf16 (!%p263_p2), %v343_v1, %v342_v0  ;;  %v345_v4 = vld [vmem:[%s14226_s2 + $0x18] sm:$0xff] (!%p263_p2)  ;;  %v346_v6 = vld [vmem:[%s14226_s2 + $0x20] sm:$0xff] (!%p263_p2)  ;;  %v347_v7 = vld [vmem:[%s14226_s2 + $0x28] sm:$0xff] (!%p263_p2) }
   0x7   : > { %v10926_v5 = vpack.c.bf16 (!%p263_p2), %v345_v4, %v344_v2  ;;  %v10930_v8 = vpack.c.bf16 (!%p263_p2), %v347_v7, %v346_v6  ;;  %v348_v9 = vld [vmem:[%s14226_s2 + $0x30] sm:$0xff] (!%p263_p2)  ;;  %v349_v10 = vld [vmem:[%s14226_s2 + $0x38] sm:$0xff] (!%p263_p2)  ;;  %v350_v13 = vld [vmem:[%s14226_s2 + $0x40] sm:$0xff] (!%p263_p2) }
   0x8   : > { %10923 = vmatprep.subr.bf16.mxu0 (!%p263_p2), %v10922_v3  ;;  %v10934_v12 = vpack.c.bf16 (!%p263_p2), %v349_v10, %v348_v9  ;;  %v351_v14 = vld [vmem:[%s14226_s2 + $0x48] sm:$0xff] (!%p263_p2)  ;;  %v352_v16 = vld [vmem:[%s14226_s2 + $0x50] sm:$0xff] (!%p263_p2)  ;;  %v353_v17 = vld [vmem:[%s14226_s2 + $0x58] sm:$0xff] (!%p263_p2) }
   0x9   : > { %10925 = vmatpush3.bf16.msra.mxu0 (!%p263_p2), %v10922_v3  ;;  %v10938_v15 = vpack.c.bf16 (!%p263_p2), %v351_v14, %v350_v13  ;;  %v10942_v18 = vpack.c.bf16 (!%p263_p2), %v353_v17, %v352_v16  ;;  %v354_v19 = vld [vmem:[%s14226_s2 + $0x60] sm:$0xff] (!%p263_p2)  ;;  %v355_v20 = vld [vmem:[%s14226_s2 + $0x68] sm:$0xff] (!%p263_p2)  ;;  %v356_v22 = vld [vmem:[%s14226_s2 + $0x70] sm:$0xff] (!%p263_p2) }
   0xa   : > { %10927 = vmatprep.subr.bf16.mxu0 (!%p263_p2), %v10926_v5  ;;  %v10946_v21 = vpack.c.bf16 (!%p263_p2), %v355_v20, %v354_v19  ;;  %v357_v23 = vld [vmem:[%s14226_s2 + $0x78] sm:$0xff] (!%p263_p2)  ;;  %v8176_v25 = vld [vmem:[%s14226_s2 + $0x80] sm:$0xff] (!%p263_p2)  ;;  %v8177_v26 = vld [vmem:[%s14226_s2 + $0x88] sm:$0xff] (!%p263_p2) }
   0xb   : > { %v10950_v24 = vpack.c.bf16 (!%p263_p2), %v357_v23, %v356_v22  ;;  %v10954_v27 = vpack.c.bf16 (!%p263_p2), %v8177_v26, %v8176_v25  ;;  %v8178_v28 = vld [vmem:[%s14226_s2 + $0x90] sm:$0xff] (!%p263_p2)  ;;  %v8179_v29 = vld [vmem:[%s14226_s2 + $0x98] sm:$0xff] (!%p263_p2)  ;;  %v8180_v33 = vld [vmem:[%s14226_s2 + $0xa0] sm:$0xff] (!%p263_p2) }
   0xc   : > { %v10958_v32 = vpack.c.bf16 (!%p263_p2), %v8179_v29, %v8178_v28  ;;  %v8181_v34 = vld [vmem:[%s14226_s2 + $0xa8] sm:$0xff] (!%p263_p2)  ;;  %v8182_v38 = vld [vmem:[%s14226_s2 + $0xb0] sm:$0xff] (!%p263_p2)  ;;  %v8183_v39 = vld [vmem:[%s14226_s2 + $0xb8] sm:$0xff] (!%p263_p2) }
   0xd   : > { %s14234_s28 = smov (!%p296_p3, %s8169_s28), 1  ;;  %10929 = vmatpush3.bf16.msra.mxu0 %v10926_v5  ;;  %v10962_v37 = vpack.c.bf16 %v8181_v34, %v8180_v33  ;;  %v10966_v42 = vpack.c.bf16 %v8183_v39, %v8182_v38  ;;  %v8184_v43 = vld [vmem:[%s14226_s2 + $0xc0] sm:$0xff]  ;;  %v8185_v44 = vld [vmem:[%s14226_s2 + $0xc8] sm:$0xff]  ;;  %v8186_v48 = vld [vmem:[%s14226_s2 + $0xd0] sm:$0xff] }
   0xe   : > { %s12074_s19 = smul.u32 328, %s14234_s28  ;;  %10931 = vmatprep.subr.bf16.mxu0 %v10930_v8  ;;  %v10970_v47 = vpack.c.bf16 %v8185_v44, %v8184_v43  ;;  %v8187_v49 = vld [vmem:[%s14226_s2 + $0xd8] sm:$0xff]  ;;  %v8188_v53 = vld [vmem:[%s14226_s2 + $0xe0] sm:$0xff]  ;;  %v8189_v54 = vld [vmem:[%s14226_s2 + $0xe8] sm:$0xff] }
   0xf   : > { %v10974_v52 = vpack.c.bf16 %v8187_v49, %v8186_v48  ;;  %v10978_v57 = vpack.c.bf16 %v8189_v54, %v8188_v53  ;;  %v8190_v58 = vld [vmem:[%s14226_s2 + $0xf0] sm:$0xff]  ;;  %v8191_v59 = vld [vmem:[%s14226_s2 + $0xf8] sm:$0xff]  ;;  %v8192_v63 = vld [vmem:[%s14226_s2 + $0x100] sm:$0xff]  ;;  %s12075_s23 = smul.u32 288, %s14234_s28 }
  0x10   : > { %s12181_s26 = scalar_lea.vmem %s14224_s0, %s12074_s19  ;;  %v10982_v62 = vpack.c.bf16 %v8191_v59, %v8190_v58  ;;  %v8193_v0 = vld [vmem:[%s14226_s2 + $0x108] sm:$0xff]  ;;  %v8195_v25 = vld [vmem:[%s14226_s2 + $0x118] sm:$0xff]  ;;  %v8196_v29 = vld [vmem:[%s14226_s2 + $0x120] sm:$0xff] }
  0x11   : > { %v306_v11 = vld [vmem:[%s12181_s26] sm:$0xff]  ;;  %10933 = vmatpush3.bf16.msra.mxu0 %v10930_v8  ;;  %v307_v30 = vld [vmem:[%s12181_s26 + $0x8] sm:$0xff]  ;;  %v308_v31 = vld [vmem:[%s12181_s26 + $0x10] sm:$0xff]  ;;  %v10986_v3 = vpack.c.bf16 %v8193_v0, %v8192_v63  ;;  %s14114_s9 = scalar_lea.vmem %s14232_s8, %s12075_s23 }
  0x12   : > { %9406 = vmatprep.mubr.f32.mxu0 %v306_v11  ;;  %10935 = vmatprep.subr.bf16.mxu0 %v10934_v12  ;;  %v309_v35 = vld [vmem:[%s12181_s26 + $0x18] sm:$0xff]  ;;  %v310_v36 = vld [vmem:[%s12181_s26 + $0x20] sm:$0xff]  ;;  %v311_v40 = vld [vmem:[%s12181_s26 + $0x28] sm:$0xff] }
  0x13   : > { %v312_v41 = vld [vmem:[%s12181_s26 + $0x30] sm:$0xff]  ;;  %v313_v45 = vld [vmem:[%s12181_s26 + $0x38] sm:$0xff]  ;;  %v314_v46 = vld [vmem:[%s12181_s26 + $0x40] sm:$0xff] }
  0x14   : > { %v315_v50 = vld [vmem:[%s12181_s26 + $0x48] sm:$0xff]  ;;  %v316_v51 = vld [vmem:[%s12181_s26 + $0x50] sm:$0xff]  ;;  %v317_v55 = vld [vmem:[%s12181_s26 + $0x58] sm:$0xff] }
  0x15   : > { %10937 = vmatpush3.bf16.msra.mxu0 %v10934_v12  ;;  %v318_v56 = vld [vmem:[%s12181_s26 + $0x60] sm:$0xff]  ;;  %v319_v60 = vld [vmem:[%s12181_s26 + $0x68] sm:$0xff]  ;;  %v320_v61 = vld [vmem:[%s12181_s26 + $0x70] sm:$0xff] }
  0x16   : > { %10939 = vmatprep.subr.bf16.mxu0 %v10938_v15  ;;  %v321_v1 = vld [vmem:[%s12181_s26 + $0x78] sm:$0xff]  ;;  %v322_v2 = vld [vmem:[%s12181_s26 + $0x80] sm:$0xff]  ;;  %v323_v4 = vld [vmem:[%s12181_s26 + $0x88] sm:$0xff] }
  0x17   : > { %v324_v5 = vld [vmem:[%s12181_s26 + $0x90] sm:$0xff]  ;;  %v325_v6 = vld [vmem:[%s12181_s26 + $0x98] sm:$0xff]  ;;  %v326_v7 = vld [vmem:[%s12181_s26 + $0xa0] sm:$0xff] }
  0x18   : > { %v327_v8 = vld [vmem:[%s12181_s26 + $0xa8] sm:$0xff]  ;;  %v328_v9 = vld [vmem:[%s12181_s26 + $0xb0] sm:$0xff]  ;;  %v329_v10 = vld [vmem:[%s12181_s26 + $0xb8] sm:$0xff] }
  0x19   : > { %10941 = vmatpush3.bf16.msra.mxu0 %v10938_v15  ;;  %v330_v11 = vld [vmem:[%s12181_s26 + $0xc0] sm:$0xff]  ;;  %v331_v12 = vld [vmem:[%s12181_s26 + $0xc8] sm:$0xff]  ;;  %v332_v13 = vld [vmem:[%s12181_s26 + $0xd0] sm:$0xff] }
  0x1a   : > { %10943 = vmatprep.subr.bf16.mxu0 %v10942_v18  ;;  %v333_v14 = vld [vmem:[%s12181_s26 + $0xd8] sm:$0xff]  ;;  %v334_v15 = vld [vmem:[%s12181_s26 + $0xe0] sm:$0xff]  ;;  %v335_v16 = vld [vmem:[%s12181_s26 + $0xe8] sm:$0xff] }
  0x1b   : > { %v336_v17 = vld [vmem:[%s12181_s26 + $0xf0] sm:$0xff]  ;;  %v338_v19 = vld [vmem:[%s12181_s26 + $0x100] sm:$0xff]  ;;  %v339_v20 = vld [vmem:[%s12181_s26 + $0x108] sm:$0xff] }
  0x1c   : > { %v341_v22 = vld [vmem:[%s12181_s26 + $0x118] sm:$0xff]  ;;  %v639_v23 = vld [vmem:[%s12181_s26 + $0x1] sm:$0xff]  ;;  %v640_v26 = vld [vmem:[%s12181_s26 + $0x9] sm:$0xff] }
  0x1d   : > { %10945 = vmatpush3.bf16.msra.mxu0 %v10942_v18  ;;  %v337_v18 = vld [vmem:[%s12181_s26 + $0xf8] sm:$0xff]  ;;  %v8198_v34 = vld [vmem:[%s14226_s2 + $0x130] sm:$0xff]  ;;  %v8200_v39 = vld [vmem:[%s14226_s2 + $0x140] sm:$0xff] }
  0x1e   : > { %10947 = vmatprep.subr.bf16.mxu0 %v10946_v21  ;;  %v8202_v44 = vld [vmem:[%s14226_s2 + $0x150] sm:$0xff]  ;;  %v8204_v49 = vld [vmem:[%s14226_s2 + $0x160] sm:$0xff] }
  0x1f   : > { %v8206_v54 = vld [vmem:[%s14226_s2 + $0x170] sm:$0xff]  ;;  %v8208_v59 = vld [vmem:[%s14226_s2 + $0x180] sm:$0xff] }
  0x20   : > { %v656_v0 = vld [vmem:[%s12181_s26 + $0x89] sm:$0xff] }
  0x21   : > { %10949 = vmatpush3.bf16.msra.mxu0 %v10946_v21  ;;  %v340_v21 = vld [vmem:[%s12181_s26 + $0x110] sm:$0xff] }
  0x22   : > { %10951 = vmatprep.subr.bf16.mxu0 %v10950_v24 }
  0x25   : > { %10953 = vmatpush3.bf16.msra.mxu0 %v10950_v24  ;;  %v8194_v24 = vld [vmem:[%s14226_s2 + $0x110] sm:$0xff] }
  0x26   : > { %10955 = vmatprep.subr.bf16.mxu0 %v10954_v27  ;;  %v10990_v28 = vpack.c.bf16 %v8195_v25, %v8194_v24  ;;  %v8212_v25 = vld [vmem:[%s14226_s2 + $0x1a0] sm:$0xff] }
  0x28   : > { %9407 = vmatmul.mubr.f32.vlgmr.msra.gmra.mrb[0].mxu0 %v307_v30  ;;  %v8197_v30 = vld [vmem:[%s14226_s2 + $0x128] sm:$0xff] }
  0x29   : > { %10957 = vmatpush3.bf16.msra.mxu0 %v10954_v27  ;;  %9409 = vmatprep.mubr.f32.mxu0 %v308_v31  ;;  %v641_v27 = vld [vmem:[%s12181_s26 + $0x11] sm:$0xff]  ;;  %v642_v31 = vld [vmem:[%s12181_s26 + $0x19] sm:$0xff]  ;;  %v10994_v33 = vpack.c.bf16 %v8197_v30, %v8196_v29 }
  0x2a   : > { %10959 = vmatprep.subr.bf16.mxu0 %v10958_v32  ;;  %v8214_v30 = vld [vmem:[%s14226_s2 + $0x1b0] sm:$0xff] }
  0x2c   : > { %9410 = vmatmul.mubr.f32.gmra.mrb[2].mxu0 %v309_v35  ;;  %v8199_v35 = vld [vmem:[%s14226_s2 + $0x138] sm:$0xff] }
  0x2d   : > { %9412 = vmatprep.mubr.f32.mxu0 %v310_v36  ;;  %10961 = vmatpush3.bf16.msra.mxu0 %v10958_v32  ;;  %v643_v32 = vld [vmem:[%s12181_s26 + $0x21] sm:$0xff]  ;;  %v644_v36 = vld [vmem:[%s12181_s26 + $0x29] sm:$0xff]  ;;  %v10998_v38 = vpack.c.bf16 %v8199_v35, %v8198_v34 }
  0x2e   : > { %10963 = vmatprep.subr.bf16.mxu0 %v10962_v37  ;;  %v8216_v35 = vld [vmem:[%s14226_s2 + $0x1c0] sm:$0xff] }
  0x30   : > { %9413 = vmatmul.mubr.f32.gmra.mrb[4].mxu0 %v311_v40  ;;  %v8201_v40 = vld [vmem:[%s14226_s2 + $0x148] sm:$0xff] }
  0x31   : > { %9415 = vmatprep.mubr.f32.mxu0 %v312_v41  ;;  %10965 = vmatpush3.bf16.msra.mxu0 %v10962_v37  ;;  %v645_v37 = vld [vmem:[%s12181_s26 + $0x31] sm:$0xff]  ;;  %v646_v41 = vld [vmem:[%s12181_s26 + $0x39] sm:$0xff]  ;;  %v11002_v43 = vpack.c.bf16 %v8201_v40, %v8200_v39 }
  0x32   : > { %10967 = vmatprep.subr.bf16.mxu0 %v10966_v42  ;;  %v8218_v40 = vld [vmem:[%s14226_s2 + $0x1d0] sm:$0xff] }
  0x34   : > { %9416 = vmatmul.mubr.f32.gmra.mrb[6].mxu0 %v313_v45  ;;  %v8203_v45 = vld [vmem:[%s14226_s2 + $0x158] sm:$0xff] }
  0x35   : > { %9418 = vmatprep.mubr.f32.mxu0 %v314_v46  ;;  %10969 = vmatpush3.bf16.msra.mxu0 %v10966_v42  ;;  %v647_v42 = vld [vmem:[%s12181_s26 + $0x41] sm:$0xff]  ;;  %v648_v46 = vld [vmem:[%s12181_s26 + $0x49] sm:$0xff]  ;;  %v11006_v48 = vpack.c.bf16 %v8203_v45, %v8202_v44 }
  0x36   : > { %10971 = vmatprep.subr.bf16.mxu0 %v10970_v47  ;;  %v8220_v45 = vld [vmem:[%s14226_s2 + $0x1e0] sm:$0xff] }
  0x38   : > { %9419 = vmatmul.mubr.f32.gmra.mrb[8].mxu0 %v315_v50  ;;  %v8205_v50 = vld [vmem:[%s14226_s2 + $0x168] sm:$0xff] }
  0x39   : > { %9421 = vmatprep.mubr.f32.mxu0 %v316_v51  ;;  %10973 = vmatpush3.bf16.msra.mxu0 %v10970_v47  ;;  %v649_v47 = vld [vmem:[%s12181_s26 + $0x51] sm:$0xff]  ;;  %v650_v51 = vld [vmem:[%s12181_s26 + $0x59] sm:$0xff]  ;;  %v11010_v53 = vpack.c.bf16 %v8205_v50, %v8204_v49 }
  0x3a   : > { %10975 = vmatprep.subr.bf16.mxu0 %v10974_v52  ;;  %v8222_v50 = vld [vmem:[%s14226_s2 + $0x1f0] sm:$0xff] }
  0x3c   : > { %9422 = vmatmul.mubr.f32.gmra.mrb[10].mxu0 %v317_v55  ;;  %v8207_v55 = vld [vmem:[%s14226_s2 + $0x178] sm:$0xff] }
  0x3d   : > { %9424 = vmatprep.mubr.f32.mxu0 %v318_v56  ;;  %10977 = vmatpush3.bf16.msra.mxu0 %v10974_v52  ;;  %v651_v52 = vld [vmem:[%s12181_s26 + $0x61] sm:$0xff]  ;;  %v652_v56 = vld [vmem:[%s12181_s26 + $0x69] sm:$0xff]  ;;  %v11014_v58 = vpack.c.bf16 %v8207_v55, %v8206_v54 }
  0x3e   : > { %10979 = vmatprep.subr.bf16.mxu0 %v10978_v57  ;;  %v8224_v55 = vld [vmem:[%s14226_s2 + $0x200] sm:$0xff] }
  0x40   : > { %9425 = vmatmul.mubr.f32.gmra.mrb[12].mxu0 %v319_v60  ;;  %v8209_v60 = vld [vmem:[%s14226_s2 + $0x188] sm:$0xff] }
  0x41   : > { %9427 = vmatprep.mubr.f32.mxu0 %v320_v61  ;;  %10981 = vmatpush3.bf16.msra.mxu0 %v10978_v57  ;;  %v653_v57 = vld [vmem:[%s12181_s26 + $0x71] sm:$0xff]  ;;  %v654_v61 = vld [vmem:[%s12181_s26 + $0x79] sm:$0xff]  ;;  %v11018_v63 = vpack.c.bf16 %v8209_v60, %v8208_v59 }
  0x42   : > { %10983 = vmatprep.subr.bf16.mxu0 %v10982_v62  ;;  %v12492_v60 = vld [vmem:[%s12181_s26 + $0x8a] sm:$0xff] }
  0x44   : > { %9428 = vmatmul.mubr.f32.gmra.mrb[14].mxu0 %v321_v1  ;;  %v657_v1 = vld [vmem:[%s12181_s26 + $0x91] sm:$0xff] }
  0x45   : > { %9430 = vmatprep.mubr.f32.mxu0 %v322_v2  ;;  %10985 = vmatpush3.bf16.msra.mxu0 %v10982_v62  ;;  %v655_v62 = vld [vmem:[%s12181_s26 + $0x81] sm:$0xff]  ;;  %v658_v2 = vld [vmem:[%s12181_s26 + $0x99] sm:$0xff] }
  0x46   : > { %10987 = vmatprep.subr.bf16.mxu0 %v10986_v3 }
  0x48   : > { %9431 = vmatmul.mubr.f32.gmra.mrb[16].mxu0 %v323_v4  ;;  %v660_v4 = vld [vmem:[%s12181_s26 + $0xa9] sm:$0xff] }
  0x49   : > { %9433 = vmatprep.mubr.f32.mxu0 %v324_v5  ;;  %v661_v5 = vld [vmem:[%s12181_s26 + $0xb1] sm:$0xff] }
  0x4c   : > { %9434 = vmatmul.mubr.f32.gmra.mrb[18].mxu0 %v325_v6  ;;  %v662_v6 = vld [vmem:[%s12181_s26 + $0xb9] sm:$0xff] }
  0x4d   : > { %9436 = vmatprep.mubr.f32.mxu0 %v326_v7  ;;  %v663_v7 = vld [vmem:[%s12181_s26 + $0xc1] sm:$0xff] }
  0x50   : > { %9437 = vmatmul.mubr.f32.gmra.mrb[20].mxu0 %v327_v8  ;;  %v664_v8 = vld [vmem:[%s12181_s26 + $0xc9] sm:$0xff] }
  0x51   : > { %9439 = vmatprep.mubr.f32.mxu0 %v328_v9  ;;  %v665_v9 = vld [vmem:[%s12181_s26 + $0xd1] sm:$0xff] }
  0x54   : > { %9440 = vmatmul.mubr.f32.gmra.mrb[22].mxu0 %v329_v10  ;;  %v666_v10 = vld [vmem:[%s12181_s26 + $0xd9] sm:$0xff] }
  0x55   : > { %9442 = vmatprep.mubr.f32.mxu0 %v330_v11  ;;  %v667_v11 = vld [vmem:[%s12181_s26 + $0xe1] sm:$0xff] }
  0x58   : > { %9443 = vmatmul.mubr.f32.gmra.mrb[24].mxu0 %v331_v12  ;;  %v668_v12 = vld [vmem:[%s12181_s26 + $0xe9] sm:$0xff] }
  0x59   : > { %9445 = vmatprep.mubr.f32.mxu0 %v332_v13  ;;  %v669_v13 = vld [vmem:[%s12181_s26 + $0xf1] sm:$0xff] }
  0x5c   : > { %9446 = vmatmul.mubr.f32.gmra.mrb[26].mxu0 %v333_v14  ;;  %v670_v14 = vld [vmem:[%s12181_s26 + $0xf9] sm:$0xff] }
  0x5d   : > { %9448 = vmatprep.mubr.f32.mxu0 %v334_v15  ;;  %v671_v15 = vld [vmem:[%s12181_s26 + $0x101] sm:$0xff] }
  0x60   : > { %9449 = vmatmul.mubr.f32.gmra.mrb[28].mxu0 %v335_v16  ;;  %v672_v16 = vld [vmem:[%s12181_s26 + $0x109] sm:$0xff] }
  0x61   : > { %9451 = vmatprep.mubr.f32.mxu0 %v336_v17  ;;  %v673_v17 = vld [vmem:[%s12181_s26 + $0x111] sm:$0xff] }
  0x64   : > { %9452 = vmatmul.mubr.f32.gmra.mrb[30].mxu0 %v337_v18  ;;  %v674_v18 = vld [vmem:[%s12181_s26 + $0x119] sm:$0xff] }
  0x65   : > { %9454 = vmatprep.mubr.f32.mxu0 %v338_v19  ;;  %v1045_v19 = vld [vmem:[%s12181_s26 + $0x2] sm:$0xff] }
  0x68   : > { %9455 = vmatmul.mubr.f32.gmra.mrb[32].mxu0 %v339_v20  ;;  %v8210_v20 = vld [vmem:[%s14226_s2 + $0x190] sm:$0xff] }
  0x69   : > { %9457 = vmatprep.mubr.f32.mxu0 %v340_v21  ;;  %v8211_v21 = vld [vmem:[%s14226_s2 + $0x198] sm:$0xff] }
  0x6a   : > { %v11022_v24 = vpack.c.bf16 %v8211_v21, %v8210_v20  ;;  %v8230_v21 = vld [vmem:[%s14226_s2 + $0x230] sm:$0xff] }
  0x6c   : > { %9458 = vmatmul.mubr.f32.gmra.mrb[34].mxu0 %v341_v22  ;;  %v1046_v22 = vld [vmem:[%s12181_s26 + $0xa] sm:$0xff] }
  0x6d   : > { %9492 = vmatprep.mubr.f32.mxu0 %v639_v23  ;;  %v12390_v23 = vld [vmem:[%s12181_s26 + $0x12] sm:$0xff] }
  0x70   : > { %9493 = vmatmul.mubr.f32.vlgmr.msra.gmra.mrb[0].mxu0 %v640_v26  ;;  %v8213_v26 = vld [vmem:[%s14226_s2 + $0x1a8] sm:$0xff] }
  0x71   : > { %10989 = vmatpush3.bf16.msra.mxu0 %v10986_v3  ;;  %9495 = vmatprep.mubr.f32.mxu0 %v641_v27  ;;  %v659_v3 = vld [vmem:[%s12181_s26 + $0xa1] sm:$0xff]  ;;  %v11026_v29 = vpack.c.bf16 %v8213_v26, %v8212_v25 }
  0x72   : > { %10991 = vmatprep.subr.bf16.mxu0 %v10990_v28  ;;  %v12400_v27 = vld [vmem:[%s12181_s26 + $0x1a] sm:$0xff]  ;;  %v8233_v25 = vld [vmem:[%s14226_s2 + $0x248] sm:$0xff] }
  0x74   : > { %9496 = vmatmul.mubr.f32.gmra.mrb[2].mxu0 %v642_v31  ;;  %v8215_v31 = vld [vmem:[%s14226_s2 + $0x1b8] sm:$0xff] }
  0x75   : > { %9498 = vmatprep.mubr.f32.mxu0 %v643_v32  ;;  %10993 = vmatpush3.bf16.msra.mxu0 %v10990_v28  ;;  %v12403_v28 = vld [vmem:[%s12181_s26 + $0x22] sm:$0xff]  ;;  %v12414_v32 = vld [vmem:[%s12181_s26 + $0x2a] sm:$0xff]  ;;  %v11030_v34 = vpack.c.bf16 %v8215_v31, %v8214_v30 }
  0x76   : > { %10995 = vmatprep.subr.bf16.mxu0 %v10994_v33  ;;  %v8236_v30 = vld [vmem:[%s14226_s2 + $0x260] sm:$0xff]  ;;  %v8237_v31 = vld [vmem:[%s14226_s2 + $0x268] sm:$0xff] }
  0x78   : > { %9499 = vmatmul.mubr.f32.gmra.mrb[4].mxu0 %v644_v36  ;;  %v8217_v36 = vld [vmem:[%s14226_s2 + $0x1c8] sm:$0xff] }
  0x79   : > { %9501 = vmatprep.mubr.f32.mxu0 %v645_v37  ;;  %10997 = vmatpush3.bf16.msra.mxu0 %v10994_v33  ;;  %v12417_v33 = vld [vmem:[%s12181_s26 + $0x32] sm:$0xff]  ;;  %v12428_v37 = vld [vmem:[%s12181_s26 + $0x3a] sm:$0xff]  ;;  %v11034_v39 = vpack.c.bf16 %v8217_v36, %v8216_v35 }
  0x7a   : > { %10999 = vmatprep.subr.bf16.mxu0 %v10998_v38  ;;  %v8240_v36 = vld [vmem:[%s14226_s2 + $0x280] sm:$0xff] }
  0x7c   : > { %9502 = vmatmul.mubr.f32.gmra.mrb[6].mxu0 %v646_v41  ;;  %v8219_v41 = vld [vmem:[%s14226_s2 + $0x1d8] sm:$0xff] }
  0x7d   : > { %9504 = vmatprep.mubr.f32.mxu0 %v647_v42  ;;  %11001 = vmatpush3.bf16.msra.mxu0 %v10998_v38  ;;  %v12431_v38 = vld [vmem:[%s12181_s26 + $0x42] sm:$0xff]  ;;  %v12442_v42 = vld [vmem:[%s12181_s26 + $0x4a] sm:$0xff]  ;;  %v11038_v44 = vpack.c.bf16 %v8219_v41, %v8218_v40  ;;  %v1857_v41 = vld [vmem:[%s12181_s26 + $0x13] sm:$0xff] }
  0x7e   : > { %11003 = vmatprep.subr.bf16.mxu0 %v11002_v43  ;;  %v1486_v40 = vld [vmem:[%s12181_s26 + $0x12a] sm:$0xff] }
  0x80   : > { %9505 = vmatmul.mubr.f32.gmra.mrb[8].mxu0 %v648_v46  ;;  %v8221_v46 = vld [vmem:[%s14226_s2 + $0x1e8] sm:$0xff] }
  0x81   : > { %9507 = vmatprep.mubr.f32.mxu0 %v649_v47  ;;  %11005 = vmatpush3.bf16.msra.mxu0 %v11002_v43  ;;  %v12445_v43 = vld [vmem:[%s12181_s26 + $0x52] sm:$0xff]  ;;  %v12456_v47 = vld [vmem:[%s12181_s26 + $0x5a] sm:$0xff]  ;;  %v11042_v49 = vpack.c.bf16 %v8221_v46, %v8220_v45  ;;  %v1859_v45 = vld [vmem:[%s12181_s26 + $0x23] sm:$0xff] }
  0x82   : > { %11007 = vmatprep.subr.bf16.mxu0 %v11006_v48 }
  0x84   : > { %9508 = vmatmul.mubr.f32.gmra.mrb[10].mxu0 %v650_v51  ;;  %v8223_v51 = vld [vmem:[%s14226_s2 + $0x1f8] sm:$0xff] }
  0x85   : > { %9510 = vmatprep.mubr.f32.mxu0 %v651_v52  ;;  %11009 = vmatpush3.bf16.msra.mxu0 %v11006_v48  ;;  %v12459_v48 = vld [vmem:[%s12181_s26 + $0x62] sm:$0xff]  ;;  %v12470_v52 = vld [vmem:[%s12181_s26 + $0x6a] sm:$0xff]  ;;  %v11046_v54 = vpack.c.bf16 %v8223_v51, %v8222_v50  ;;  %v1861_v50 = vld [vmem:[%s12181_s26 + $0x33] sm:$0xff] }
  0x86   : > { %11011 = vmatprep.subr.bf16.mxu0 %v11010_v53 }
  0x88   : > { %9511 = vmatmul.mubr.f32.gmra.mrb[12].mxu0 %v652_v56  ;;  %v8225_v56 = vld [vmem:[%s14226_s2 + $0x208] sm:$0xff] }
  0x89   : > { %9513 = vmatprep.mubr.f32.mxu0 %v653_v57  ;;  %11013 = vmatpush3.bf16.msra.mxu0 %v11010_v53  ;;  %v12473_v53 = vld [vmem:[%s12181_s26 + $0x72] sm:$0xff]  ;;  %v12484_v57 = vld [vmem:[%s12181_s26 + $0x7a] sm:$0xff]  ;;  %v11050_v59 = vpack.c.bf16 %v8225_v56, %v8224_v55  ;;  %v1863_v55 = vld [vmem:[%s12181_s26 + $0x43] sm:$0xff] }
  0x8a   : > { %11015 = vmatprep.subr.bf16.mxu0 %v11014_v58 }
  0x8c   : > { %9514 = vmatmul.mubr.f32.gmra.mrb[14].mxu0 %v654_v61  ;;  %v12495_v61 = vld [vmem:[%s12181_s26 + $0x92] sm:$0xff] }
  0x8d   : > { %9516 = vmatprep.mubr.f32.mxu0 %v655_v62  ;;  %11017 = vmatpush3.bf16.msra.mxu0 %v11014_v58  ;;  %v12487_v58 = vld [vmem:[%s12181_s26 + $0x82] sm:$0xff]  ;;  %v12500_v62 = vld [vmem:[%s12181_s26 + $0x9a] sm:$0xff] }
  0x8e   : > { %11019 = vmatprep.subr.bf16.mxu0 %v11018_v63 }
  0x90   : > { %9517 = vmatmul.mubr.f32.gmra.mrb[16].mxu0 %v656_v0  ;;  %v12508_v0 = vld [vmem:[%s12181_s26 + $0xaa] sm:$0xff] }
  0x91   : > { %9519 = vmatprep.mubr.f32.mxu0 %v657_v1  ;;  %v12511_v1 = vld [vmem:[%s12181_s26 + $0xb2] sm:$0xff] }
  0x94   : > { %9520 = vmatmul.mubr.f32.gmra.mrb[18].mxu0 %v658_v2  ;;  %v12516_v2 = vld [vmem:[%s12181_s26 + $0xba] sm:$0xff] }
  0x95   : > { %9522 = vmatprep.mubr.f32.mxu0 %v659_v3  ;;  %v12519_v3 = vld [vmem:[%s12181_s26 + $0xc2] sm:$0xff] }
  0x98   : > { %9523 = vmatmul.mubr.f32.gmra.mrb[20].mxu0 %v660_v4  ;;  %v12524_v4 = vld [vmem:[%s12181_s26 + $0xca] sm:$0xff] }
  0x99   : > { %9525 = vmatprep.mubr.f32.mxu0 %v661_v5  ;;  %v12527_v5 = vld [vmem:[%s12181_s26 + $0xd2] sm:$0xff] }
  0x9c   : > { %9526 = vmatmul.mubr.f32.gmra.mrb[22].mxu0 %v662_v6  ;;  %v12532_v6 = vld [vmem:[%s12181_s26 + $0xda] sm:$0xff] }
  0x9d   : > { %9528 = vmatprep.mubr.f32.mxu0 %v663_v7  ;;  %v12535_v7 = vld [vmem:[%s12181_s26 + $0xe2] sm:$0xff] }
  0xa0   : > { %9529 = vmatmul.mubr.f32.gmra.mrb[24].mxu0 %v664_v8  ;;  %v12540_v8 = vld [vmem:[%s12181_s26 + $0xea] sm:$0xff] }
  0xa1   : > { %9531 = vmatprep.mubr.f32.mxu0 %v665_v9  ;;  %v12543_v9 = vld [vmem:[%s12181_s26 + $0xf2] sm:$0xff] }
  0xa4   : > { %9532 = vmatmul.mubr.f32.gmra.mrb[26].mxu0 %v666_v10  ;;  %v12548_v10 = vld [vmem:[%s12181_s26 + $0xfa] sm:$0xff] }
  0xa5   : > { %9534 = vmatprep.mubr.f32.mxu0 %v667_v11  ;;  %v12551_v11 = vld [vmem:[%s12181_s26 + $0x102] sm:$0xff] }
  0xa8   : > { %9535 = vmatmul.mubr.f32.gmra.mrb[28].mxu0 %v668_v12  ;;  %v12556_v12 = vld [vmem:[%s12181_s26 + $0x10a] sm:$0xff] }
  0xa9   : > { %9537 = vmatprep.mubr.f32.mxu0 %v669_v13  ;;  %v12559_v13 = vld [vmem:[%s12181_s26 + $0x112] sm:$0xff] }
  0xac   : > { %9538 = vmatmul.mubr.f32.gmra.mrb[30].mxu0 %v670_v14  ;;  %v12564_v14 = vld [vmem:[%s12181_s26 + $0x11a] sm:$0xff] }
  0xad   : > { %9540 = vmatprep.mubr.f32.mxu0 %v671_v15  ;;  %v8226_v15 = vld [vmem:[%s14226_s2 + $0x210] sm:$0xff] }
  0xb0   : > { %9541 = vmatmul.mubr.f32.gmra.mrb[32].mxu0 %v672_v16  ;;  %v8227_v16 = vld [vmem:[%s14226_s2 + $0x218] sm:$0xff] }
  0xb1   : > { %9543 = vmatprep.mubr.f32.mxu0 %v673_v17  ;;  %v11054_v17 = vpack.c.bf16 %v8227_v16, %v8226_v15  ;;  %v1872_v15 = vld [vmem:[%s12181_s26 + $0x8b] sm:$0xff]  ;;  %v1873_v16 = vld [vmem:[%s12181_s26 + $0x93] sm:$0xff] }
  0xb4   : > { %9544 = vmatmul.mubr.f32.gmra.mrb[34].mxu0 %v674_v18  ;;  %v8228_v18 = vld [vmem:[%s14226_s2 + $0x220] sm:$0xff] }
  0xb5   : > { %9578 = vmatprep.mubr.f32.mxu0 %v1045_v19  ;;  %v8229_v19 = vld [vmem:[%s14226_s2 + $0x228] sm:$0xff] }
  0xb6   : > { %v11058_v20 = vpack.c.bf16 %v8229_v19, %v8228_v18  ;;  %v1874_v18 = vld [vmem:[%s12181_s26 + $0x9b] sm:$0xff]  ;;  %v1875_v19 = vld [vmem:[%s12181_s26 + $0xa3] sm:$0xff] }
  0xb8   : > { %9579 = vmatmul.mubr.f32.vlgmr.msra.gmra.mrb[0].mxu0 %v1046_v22  ;;  %v8231_v22 = vld [vmem:[%s14226_s2 + $0x238] sm:$0xff] }
  0xb9   : > { %11021 = vmatpush3.bf16.msra.mxu0 %v11018_v63  ;;  %9581 = vmatprep.mubr.f32.mxu0 %v12390_v23  ;;  %v12503_v63 = vld [vmem:[%s12181_s26 + $0xa2] sm:$0xff] }
  0xba   : > { %11023 = vmatprep.subr.bf16.mxu0 %v11022_v24 }
  0xbc   : > { %9582 = vmatmul.mubr.f32.gmra.mrb[2].mxu0 %v12400_v27 }
  0xbd   : > { %9584 = vmatprep.mubr.f32.mxu0 %v12403_v28  ;;  %11025 = vmatpush3.bf16.msra.mxu0 %v11022_v24  ;;  %v8232_v24 = vld [vmem:[%s14226_s2 + $0x240] sm:$0xff] }
  0xbe   : > { %11027 = vmatprep.subr.bf16.mxu0 %v11026_v29  ;;  %v11066_v26 = vpack.c.bf16 %v8233_v25, %v8232_v24  ;;  %v1880_v24 = vld [vmem:[%s12181_s26 + $0xcb] sm:$0xff]  ;;  %v1881_v25 = vld [vmem:[%s12181_s26 + $0xd3] sm:$0xff] }
  0xc0   : > { %9585 = vmatmul.mubr.f32.gmra.mrb[4].mxu0 %v12414_v32 }
  0xc1   : > { %9587 = vmatprep.mubr.f32.mxu0 %v12417_v33  ;;  %11029 = vmatpush3.bf16.msra.mxu0 %v11026_v29 }
  0xc2   : > { %11031 = vmatprep.subr.bf16.mxu0 %v11030_v34 }
  0xc4   : > { %9588 = vmatmul.mubr.f32.gmra.mrb[6].mxu0 %v12428_v37 }
  0xc5   : > { %9590 = vmatprep.mubr.f32.mxu0 %v12431_v38  ;;  %11033 = vmatpush3.bf16.msra.mxu0 %v11030_v34  ;;  %v8239_v34 = vld [vmem:[%s14226_s2 + $0x278] sm:$0xff] }
  0xc6   : > { %11035 = vmatprep.subr.bf16.mxu0 %v11034_v39 }
  0xc8   : > { %9591 = vmatmul.mubr.f32.gmra.mrb[8].mxu0 %v12442_v42 }
  0xc9   : > { %9593 = vmatprep.mubr.f32.mxu0 %v12445_v43  ;;  %11037 = vmatpush3.bf16.msra.mxu0 %v11034_v39  ;;  %v1485_v39 = vld [vmem:[%s12181_s26 + $0x122] sm:$0xff] }
  0xca   : > { %11039 = vmatprep.subr.bf16.mxu0 %v11038_v44 }
  0xcc   : > { %9594 = vmatmul.mubr.f32.gmra.mrb[10].mxu0 %v12456_v47 }
  0xcd   : > { %9596 = vmatprep.mubr.f32.mxu0 %v12459_v48  ;;  %11041 = vmatpush3.bf16.msra.mxu0 %v11038_v44  ;;  %v1858_v44 = vld [vmem:[%s12181_s26 + $0x1b] sm:$0xff] }
  0xce   : > { %11043 = vmatprep.subr.bf16.mxu0 %v11042_v49 }
  0xd0   : > { %9597 = vmatmul.mubr.f32.gmra.mrb[12].mxu0 %v12470_v52 }
  0xd1   : > { %9599 = vmatprep.mubr.f32.mxu0 %v12473_v53  ;;  %11045 = vmatpush3.bf16.msra.mxu0 %v11042_v49  ;;  %v1860_v49 = vld [vmem:[%s12181_s26 + $0x2b] sm:$0xff] }
  0xd2   : > { %11047 = vmatprep.subr.bf16.mxu0 %v11046_v54 }
  0xd4   : > { %9600 = vmatmul.mubr.f32.gmra.mrb[14].mxu0 %v12484_v57 }
  0xd5   : > { %9602 = vmatprep.mubr.f32.mxu0 %v12487_v58  ;;  %11049 = vmatpush3.bf16.msra.mxu0 %v11046_v54  ;;  %v1862_v54 = vld [vmem:[%s12181_s26 + $0x3b] sm:$0xff] }
  0xd6   : > { %11051 = vmatprep.subr.bf16.mxu0 %v11050_v59 }
  0xd8   : > { %9603 = vmatmul.mubr.f32.gmra.mrb[16].mxu0 %v12492_v60 }
  0xd9   : > { %9605 = vmatprep.mubr.f32.mxu0 %v12495_v61 }
  0xdc   : > { %9606 = vmatmul.mubr.f32.gmra.mrb[18].mxu0 %v12500_v62 }
  0xdd   : > { %9608 = vmatprep.mubr.f32.mxu0 %v12503_v63 }
  0xe0   : > { %9609 = vmatmul.mubr.f32.gmra.mrb[20].mxu0 %v12508_v0 }
  0xe1   : > { %9611 = vmatprep.mubr.f32.mxu0 %v12511_v1 }
  0xe4   : > { %9612 = vmatmul.mubr.f32.gmra.mrb[22].mxu0 %v12516_v2 }
  0xe5   : > { %9614 = vmatprep.mubr.f32.mxu0 %v12519_v3 }
  0xe8   : > { %9615 = vmatmul.mubr.f32.gmra.mrb[24].mxu0 %v12524_v4 }
  0xe9   : > { %9617 = vmatprep.mubr.f32.mxu0 %v12527_v5 }
  0xec   : > { %9618 = vmatmul.mubr.f32.gmra.mrb[26].mxu0 %v12532_v6 }
  0xed   : > { %9620 = vmatprep.mubr.f32.mxu0 %v12535_v7 }
  0xf0   : > { %9621 = vmatmul.mubr.f32.gmra.mrb[28].mxu0 %v12540_v8 }
  0xf1   : > { %9623 = vmatprep.mubr.f32.mxu0 %v12543_v9 }
  0xf4   : > { %9624 = vmatmul.mubr.f32.gmra.mrb[30].mxu0 %v12548_v10 }
  0xf5   : > { %9626 = vmatprep.mubr.f32.mxu0 %v12551_v11 }
  0xf8   : > { %9627 = vmatmul.mubr.f32.gmra.mrb[32].mxu0 %v12556_v12 }
  0xf9   : > { %9629 = vmatprep.mubr.f32.mxu0 %v12559_v13 }
  0xfc   : > { %9630 = vmatmul.mubr.f32.gmra.mrb[34].mxu0 %v12564_v14 }
  0xfd   : > { %9664 = vmatprep.mubr.f32.mxu0 %v12390_v23  ;;  %v11062_v23 = vpack.c.bf16 %v8231_v22, %v8230_v21  ;;  %v1877_v21 = vld [vmem:[%s12181_s26 + $0xb3] sm:$0xff]  ;;  %v1878_v22 = vld [vmem:[%s12181_s26 + $0xbb] sm:$0xff] }
 0x100   : > { %9665 = vmatmul.mubr.f32.vlgmr.msra.gmra.mrb[0].mxu0 %v12400_v27  ;;  %v8234_v27 = vld [vmem:[%s14226_s2 + $0x250] sm:$0xff] }
 0x101   : > { %11053 = vmatpush3.bf16.msra.mxu0 %v11050_v59  ;;  %9667 = vmatprep.mubr.f32.mxu0 %v12403_v28  ;;  %v8235_v28 = vld [vmem:[%s14226_s2 + $0x258] sm:$0xff]  ;;  %v1864_v59 = vld [vmem:[%s12181_s26 + $0x4b] sm:$0xff] }
 0x102   : > { %11055 = vmatprep.subr.bf16.mxu0 %v11054_v17  ;;  %v11070_v29 = vpack.c.bf16 %v8235_v28, %v8234_v27  ;;  %v1883_v27 = vld [vmem:[%s12181_s26 + $0xe3] sm:$0xff]  ;;  %v1884_v28 = vld [vmem:[%s12181_s26 + $0xeb] sm:$0xff] }
 0x104   : > { %9668 = vmatmul.mubr.f32.gmra.mrb[2].mxu0 %v12414_v32  ;;  %v11074_v32 = vpack.c.bf16 %v8237_v31, %v8236_v30  ;;  %v1886_v30 = vld [vmem:[%s12181_s26 + $0xfb] sm:$0xff]  ;;  %v1887_v31 = vld [vmem:[%s12181_s26 + $0x103] sm:$0xff] }
 0x105   : > { %9670 = vmatprep.mubr.f32.mxu0 %v12417_v33  ;;  %11057 = vmatpush3.bf16.msra.mxu0 %v11054_v17  ;;  %v8238_v33 = vld [vmem:[%s14226_s2 + $0x270] sm:$0xff] }
 0x106   : > { %11059 = vmatprep.subr.bf16.mxu0 %v11058_v20  ;;  %v11078_v35 = vpack.c.bf16 %v8239_v34, %v8238_v33  ;;  %v1889_v33 = vld [vmem:[%s12181_s26 + $0x113] sm:$0xff]  ;;  %v1890_v34 = vld [vmem:[%s12181_s26 + $0x11b] sm:$0xff] }
 0x108   : > { %9671 = vmatmul.mubr.f32.gmra.mrb[4].mxu0 %v12428_v37  ;;  %v8241_v37 = vld [vmem:[%s14226_s2 + $0x288] sm:$0xff] }
 0x109   : > { %9673 = vmatprep.mubr.f32.mxu0 %v12431_v38  ;;  %11061 = vmatpush3.bf16.msra.mxu0 %v11058_v20  ;;  %v11082_v38 = vpack.c.bf16 %v8241_v37, %v8240_v36  ;;  %v1876_v20 = vld [vmem:[%s12181_s26 + $0xab] sm:$0xff]  ;;  %v2263_v37 = vld [vmem:[%s12181_s26 + $0x14] sm:$0xff] }
 0x10a   : > { %11063 = vmatprep.subr.bf16.mxu0 %v11062_v23  ;;  %v1892_v36 = vld [vmem:[%s12181_s26 + $0x12b] sm:$0xff] }
 0x10c   : > { %9674 = vmatmul.mubr.f32.gmra.mrb[6].mxu0 %v12442_v42  ;;  %v8242_v42 = vld [vmem:[%s14226_s2 + $0x290] sm:$0xff] }
 0x10d   : > { %9676 = vmatprep.mubr.f32.mxu0 %v12445_v43  ;;  %11065 = vmatpush3.bf16.msra.mxu0 %v11062_v23  ;;  %v8243_v43 = vld [vmem:[%s14226_s2 + $0x298] sm:$0xff]  ;;  %v1879_v23 = vld [vmem:[%s12181_s26 + $0xc3] sm:$0xff] }
 0x10e   : > { %11067 = vmatprep.subr.bf16.mxu0 %v11066_v26  ;;  %v11086_v46 = vpack.c.bf16 %v8243_v43, %v8242_v42  ;;  %v8260_v43 = vld [vmem:[%s14226_s2 + $0x320] sm:$0xff] }
 0x110   : > { %9677 = vmatmul.mubr.f32.gmra.mrb[8].mxu0 %v12456_v47  ;;  %v8244_v47 = vld [vmem:[%s14226_s2 + $0x2a0] sm:$0xff] }
 0x111   : > { %9679 = vmatprep.mubr.f32.mxu0 %v12459_v48  ;;  %11069 = vmatpush3.bf16.msra.mxu0 %v11066_v26  ;;  %v8245_v48 = vld [vmem:[%s14226_s2 + $0x2a8] sm:$0xff]  ;;  %v1882_v26 = vld [vmem:[%s12181_s26 + $0xdb] sm:$0xff] }
 0x112   : > { %11071 = vmatprep.subr.bf16.mxu0 %v11070_v29  ;;  %v11090_v51 = vpack.c.bf16 %v8245_v48, %v8244_v47  ;;  %v8262_v48 = vld [vmem:[%s14226_s2 + $0x330] sm:$0xff] }
 0x114   : > { %9680 = vmatmul.mubr.f32.gmra.mrb[10].mxu0 %v12470_v52  ;;  %v8246_v52 = vld [vmem:[%s14226_s2 + $0x2b0] sm:$0xff] }
 0x115   : > { %9682 = vmatprep.mubr.f32.mxu0 %v12473_v53  ;;  %11073 = vmatpush3.bf16.msra.mxu0 %v11070_v29  ;;  %v8247_v53 = vld [vmem:[%s14226_s2 + $0x2b8] sm:$0xff] }
 0x116   : > { %11075 = vmatprep.subr.bf16.mxu0 %v11074_v32  ;;  %v11094_v56 = vpack.c.bf16 %v8247_v53, %v8246_v52  ;;  %v1885_v29 = vld [vmem:[%s12181_s26 + $0xf3] sm:$0xff]  ;;  %v8264_v53 = vld [vmem:[%s14226_s2 + $0x340] sm:$0xff] }
 0x118   : > { %9683 = vmatmul.mubr.f32.gmra.mrb[12].mxu0 %v12484_v57  ;;  %v8248_v57 = vld [vmem:[%s14226_s2 + $0x2c0] sm:$0xff] }
 0x119   : > { %9685 = vmatprep.mubr.f32.mxu0 %v12487_v58  ;;  %11077 = vmatpush3.bf16.msra.mxu0 %v11074_v32  ;;  %v8249_v58 = vld [vmem:[%s14226_s2 + $0x2c8] sm:$0xff] }
 0x11a   : > { %11079 = vmatprep.subr.bf16.mxu0 %v11078_v35  ;;  %v1888_v32 = vld [vmem:[%s12181_s26 + $0x10b] sm:$0xff] }
 0x11c   : > { %9686 = vmatmul.mubr.f32.gmra.mrb[14].mxu0 %v12492_v60  ;;  %v1865_v60 = vld [vmem:[%s12181_s26 + $0x53] sm:$0xff] }
 0x11d   : > { %9688 = vmatprep.mubr.f32.mxu0 %v12495_v61  ;;  %11081 = vmatpush3.bf16.msra.mxu0 %v11078_v35  ;;  %v11098_v61 = vpack.c.bf16 %v8249_v58, %v8248_v57  ;;  %v1891_v35 = vld [vmem:[%s12181_s26 + $0x123] sm:$0xff]  ;;  %v8266_v58 = vld [vmem:[%s14226_s2 + $0x350] sm:$0xff] }
 0x11e   : > { %11083 = vmatprep.subr.bf16.mxu0 %v11082_v38 }
 0x120   : > { %9689 = vmatmul.mubr.f32.gmra.mrb[16].mxu0 %v12500_v62  ;;  %v8250_v62 = vld [vmem:[%s14226_s2 + $0x2d0] sm:$0xff] }
 0x121   : > { %9691 = vmatprep.mubr.f32.mxu0 %v12503_v63  ;;  %v8251_v63 = vld [vmem:[%s14226_s2 + $0x2d8] sm:$0xff] }
 0x124   : > { %9692 = vmatmul.mubr.f32.gmra.mrb[18].mxu0 %v12508_v0  ;;  %v1866_v0 = vld [vmem:[%s12181_s26 + $0x5b] sm:$0xff] }
 0x125   : > { %9694 = vmatprep.mubr.f32.mxu0 %v12511_v1  ;;  %v1867_v1 = vld [vmem:[%s12181_s26 + $0x63] sm:$0xff] }
 0x128   : > { %9695 = vmatmul.mubr.f32.gmra.mrb[20].mxu0 %v12516_v2  ;;  %v11102_v2 = vpack.c.bf16 %v8251_v63, %v8250_v62  ;;  %v8268_v63 = vld [vmem:[%s14226_s2 + $0x360] sm:$0xff] }
 0x129   : > { %9697 = vmatprep.mubr.f32.mxu0 %v12519_v3  ;;  %v8252_v3 = vld [vmem:[%s14226_s2 + $0x2e0] sm:$0xff] }
 0x12c   : > { %9698 = vmatmul.mubr.f32.gmra.mrb[22].mxu0 %v12524_v4  ;;  %v8253_v4 = vld [vmem:[%s14226_s2 + $0x2e8] sm:$0xff] }
 0x12d   : > { %9700 = vmatprep.mubr.f32.mxu0 %v12527_v5  ;;  %v1868_v5 = vld [vmem:[%s12181_s26 + $0x6b] sm:$0xff] }
 0x130   : > { %9701 = vmatmul.mubr.f32.gmra.mrb[24].mxu0 %v12532_v6  ;;  %v1869_v6 = vld [vmem:[%s12181_s26 + $0x73] sm:$0xff] }
 0x131   : > { %9703 = vmatprep.mubr.f32.mxu0 %v12535_v7  ;;  %v11106_v7 = vpack.c.bf16 %v8253_v4, %v8252_v3  ;;  %v8270_v4 = vld [vmem:[%s14226_s2 + $0x370] sm:$0xff] }
 0x134   : > { %9704 = vmatmul.mubr.f32.gmra.mrb[26].mxu0 %v12540_v8  ;;  %v8254_v8 = vld [vmem:[%s14226_s2 + $0x2f0] sm:$0xff] }
 0x135   : > { %9706 = vmatprep.mubr.f32.mxu0 %v12543_v9  ;;  %v8255_v9 = vld [vmem:[%s14226_s2 + $0x2f8] sm:$0xff] }
 0x138   : > { %9707 = vmatmul.mubr.f32.gmra.mrb[28].mxu0 %v12548_v10  ;;  %v1870_v10 = vld [vmem:[%s12181_s26 + $0x7b] sm:$0xff] }
 0x139   : > { %9709 = vmatprep.mubr.f32.mxu0 %v12551_v11  ;;  %v1871_v11 = vld [vmem:[%s12181_s26 + $0x83] sm:$0xff] }
 0x13c   : > { %9710 = vmatmul.mubr.f32.gmra.mrb[30].mxu0 %v12556_v12  ;;  %v11110_v12 = vpack.c.bf16 %v8255_v9, %v8254_v8  ;;  %v8272_v9 = vld [vmem:[%s14226_s2 + $0x380] sm:$0xff] }
 0x13d   : > { %9712 = vmatprep.mubr.f32.mxu0 %v12559_v13  ;;  %v8256_v13 = vld [vmem:[%s14226_s2 + $0x300] sm:$0xff] }
 0x140   : > { %9713 = vmatmul.mubr.f32.gmra.mrb[32].mxu0 %v12564_v14  ;;  %v8257_v14 = vld [vmem:[%s14226_s2 + $0x308] sm:$0xff] }
 0x141   : > { %9715 = vmatprep.mubr.f32.mxu0 %v1485_v39  ;;  %v11114_v17 = vpack.c.bf16 %v8257_v14, %v8256_v13  ;;  %v8259_v39 = vld [vmem:[%s14226_s2 + $0x318] sm:$0xff] }
 0x142   : > { %v12846_v14 = vld [vmem:[%s12181_s26 + $0x9c] sm:$0xff] }
 0x144   : > { %9716 = vmatmul.mubr.f32.gmra.mrb[34].mxu0 %v1486_v40  ;;  %v2264_v40 = vld [vmem:[%s12181_s26 + $0x1c] sm:$0xff] }
 0x145   : > { %9750 = vmatprep.mubr.f32.mxu0 %v1857_v41  ;;  %v12744_v41 = vld [vmem:[%s12181_s26 + $0x24] sm:$0xff] }
 0x148   : > { %9751 = vmatmul.mubr.f32.vlgmr.msra.gmra.mrb[0].mxu0 %v1858_v44  ;;  %v8261_v44 = vld [vmem:[%s14226_s2 + $0x328] sm:$0xff] }
 0x149   : > { %11085 = vmatpush3.bf16.msra.mxu0 %v11082_v38  ;;  %9753 = vmatprep.mubr.f32.mxu0 %v1859_v45  ;;  %v8258_v38 = vld [vmem:[%s14226_s2 + $0x310] sm:$0xff]  ;;  %v11122_v47 = vpack.c.bf16 %v8261_v44, %v8260_v43  ;;  %v8281_v43 = vld [vmem:[%s14226_s2 + $0x3c8] sm:$0xff] }
 0x14a   : > { %11087 = vmatprep.subr.bf16.mxu0 %v11086_v46  ;;  %v11118_v42 = vpack.c.bf16 %v8259_v39, %v8258_v38  ;;  %v12754_v45 = vld [vmem:[%s12181_s26 + $0x2c] sm:$0xff] }
 0x14b   : > { %v8278_v39 = vld [vmem:[%s14226_s2 + $0x3b0] sm:$0xff] }
 0x14c   : > { %9754 = vmatmul.mubr.f32.gmra.mrb[2].mxu0 %v1860_v49  ;;  %v8263_v49 = vld [vmem:[%s14226_s2 + $0x338] sm:$0xff] }
 0x14d   : > { %9756 = vmatprep.mubr.f32.mxu0 %v1861_v50  ;;  %11089 = vmatpush3.bf16.msra.mxu0 %v11086_v46  ;;  %v12757_v46 = vld [vmem:[%s12181_s26 + $0x34] sm:$0xff]  ;;  %v12768_v50 = vld [vmem:[%s12181_s26 + $0x3c] sm:$0xff]  ;;  %v11126_v52 = vpack.c.bf16 %v8263_v49, %v8262_v48  ;;  %v8285_v49 = vld [vmem:[%s14226_s2 + $0x3e8] sm:$0xff] }
 0x14e   : > { %11091 = vmatprep.subr.bf16.mxu0 %v11090_v51  ;;  %v8284_v48 = vld [vmem:[%s14226_s2 + $0x3e0] sm:$0xff] }
 0x150   : > { %9757 = vmatmul.mubr.f32.gmra.mrb[4].mxu0 %v1862_v54  ;;  %v8265_v54 = vld [vmem:[%s14226_s2 + $0x348] sm:$0xff] }
 0x151   : > { %9759 = vmatprep.mubr.f32.mxu0 %v1863_v55  ;;  %11093 = vmatpush3.bf16.msra.mxu0 %v11090_v51  ;;  %v12771_v51 = vld [vmem:[%s12181_s26 + $0x44] sm:$0xff]  ;;  %v12782_v55 = vld [vmem:[%s12181_s26 + $0x4c] sm:$0xff]  ;;  %v11130_v57 = vpack.c.bf16 %v8265_v54, %v8264_v53 }
 0x152   : > { %11095 = vmatprep.subr.bf16.mxu0 %v11094_v56  ;;  %v8288_v54 = vld [vmem:[%s14226_s2 + $0x400] sm:$0xff] }
 0x154   : > { %9760 = vmatmul.mubr.f32.gmra.mrb[6].mxu0 %v1864_v59  ;;  %v8267_v59 = vld [vmem:[%s14226_s2 + $0x358] sm:$0xff] }
 0x155   : > { %9762 = vmatprep.mubr.f32.mxu0 %v1865_v60  ;;  %11097 = vmatpush3.bf16.msra.mxu0 %v11094_v56  ;;  %v12785_v56 = vld [vmem:[%s12181_s26 + $0x54] sm:$0xff]  ;;  %v12796_v60 = vld [vmem:[%s12181_s26 + $0x5c] sm:$0xff]  ;;  %v11134_v62 = vpack.c.bf16 %v8267_v59, %v8266_v58 }
 0x156   : > { %11099 = vmatprep.subr.bf16.mxu0 %v11098_v61  ;;  %v4045_v58 = vld [vmem:[%s14225_s1] sm:$0xff]  ;;  %v4047_v59 = vld [vmem:[%s14225_s1 + $0x10] sm:$0xff] }
 0x158   : > { %9763 = vmatmul.mubr.f32.gmra.mrb[8].mxu0 %v1866_v0  ;;  %v8269_v0 = vld [vmem:[%s14226_s2 + $0x368] sm:$0xff] }
 0x159   : > { %9765 = vmatprep.mubr.f32.mxu0 %v1867_v1  ;;  %11101 = vmatpush3.bf16.msra.mxu0 %v11098_v61  ;;  %v12799_v61 = vld [vmem:[%s12181_s26 + $0x64] sm:$0xff]  ;;  %v12810_v1 = vld [vmem:[%s12181_s26 + $0x6c] sm:$0xff]  ;;  %v11138_v3 = vpack.c.bf16 %v8269_v0, %v8268_v63 }
 0x15a   : > { %11103 = vmatprep.subr.bf16.mxu0 %v11102_v2  ;;  %v4050_v63 = vld [vmem:[%s14225_s1 + $0x28] sm:$0xff]  ;;  %v4051_v0 = vld [vmem:[%s14225_s1 + $0x30] sm:$0xff] }
 0x15c   : > { %9766 = vmatmul.mubr.f32.gmra.mrb[10].mxu0 %v1868_v5  ;;  %v8271_v5 = vld [vmem:[%s14226_s2 + $0x378] sm:$0xff] }
 0x15d   : > { %9768 = vmatprep.mubr.f32.mxu0 %v1869_v6  ;;  %11105 = vmatpush3.bf16.msra.mxu0 %v11102_v2  ;;  %v12813_v2 = vld [vmem:[%s12181_s26 + $0x74] sm:$0xff]  ;;  %v12824_v6 = vld [vmem:[%s12181_s26 + $0x7c] sm:$0xff]  ;;  %v11142_v8 = vpack.c.bf16 %v8271_v5, %v8270_v4 }
 0x15e   : > { %11107 = vmatprep.subr.bf16.mxu0 %v11106_v7  ;;  %v4055_v4 = vld [vmem:[%s14225_s1 + $0x50] sm:$0xff]  ;;  %v4056_v5 = vld [vmem:[%s14225_s1 + $0x58] sm:$0xff] }
 0x160   : > { %9769 = vmatmul.mubr.f32.gmra.mrb[12].mxu0 %v1870_v10  ;;  %v8273_v10 = vld [vmem:[%s14226_s2 + $0x388] sm:$0xff] }
 0x161   : > { %9771 = vmatprep.mubr.f32.mxu0 %v1871_v11  ;;  %11109 = vmatpush3.bf16.msra.mxu0 %v11106_v7  ;;  %v12827_v7 = vld [vmem:[%s12181_s26 + $0x84] sm:$0xff]  ;;  %v12838_v11 = vld [vmem:[%s12181_s26 + $0x8c] sm:$0xff]  ;;  %v11146_v13 = vpack.c.bf16 %v8273_v10, %v8272_v9  ;;  %v2704_v10 = vld [vmem:[%s12181_s26 + $0x13c] sm:$0xff] }
 0x162   : > { %11111 = vmatprep.subr.bf16.mxu0 %v11110_v12  ;;  %v4059_v9 = vld [vmem:[%s14225_s1 + $0x70] sm:$0xff] }
 0x164   : > { %9772 = vmatmul.mubr.f32.gmra.mrb[14].mxu0 %v1872_v15  ;;  %v12849_v15 = vld [vmem:[%s12181_s26 + $0xa4] sm:$0xff] }
 0x165   : > { %9774 = vmatprep.mubr.f32.mxu0 %v1873_v16  ;;  %11113 = vmatpush3.bf16.msra.mxu0 %v11110_v12  ;;  %v12841_v12 = vld [vmem:[%s12181_s26 + $0x94] sm:$0xff]  ;;  %v12854_v16 = vld [vmem:[%s12181_s26 + $0xac] sm:$0xff] }
 0x166   : > { %11115 = vmatprep.subr.bf16.mxu0 %v11114_v17 }
 0x168   : > { %9775 = vmatmul.mubr.f32.gmra.mrb[16].mxu0 %v1874_v18  ;;  %v12862_v18 = vld [vmem:[%s12181_s26 + $0xbc] sm:$0xff] }
 0x169   : > { %9777 = vmatprep.mubr.f32.mxu0 %v1875_v19  ;;  %v12865_v19 = vld [vmem:[%s12181_s26 + $0xc4] sm:$0xff] }
 0x16c   : > { %9778 = vmatmul.mubr.f32.gmra.mrb[18].mxu0 %v1876_v20  ;;  %v12870_v20 = vld [vmem:[%s12181_s26 + $0xcc] sm:$0xff] }
 0x16d   : > { %9780 = vmatprep.mubr.f32.mxu0 %v1877_v21  ;;  %v12873_v21 = vld [vmem:[%s12181_s26 + $0xd4] sm:$0xff] }
 0x170   : > { %9781 = vmatmul.mubr.f32.gmra.mrb[20].mxu0 %v1878_v22  ;;  %v12878_v22 = vld [vmem:[%s12181_s26 + $0xdc] sm:$0xff] }
 0x171   : > { %9783 = vmatprep.mubr.f32.mxu0 %v1879_v23  ;;  %v12881_v23 = vld [vmem:[%s12181_s26 + $0xe4] sm:$0xff] }
 0x174   : > { %9784 = vmatmul.mubr.f32.gmra.mrb[22].mxu0 %v1880_v24  ;;  %v12886_v24 = vld [vmem:[%s12181_s26 + $0xec] sm:$0xff] }
 0x175   : > { %9786 = vmatprep.mubr.f32.mxu0 %v1881_v25  ;;  %v12889_v25 = vld [vmem:[%s12181_s26 + $0xf4] sm:$0xff] }
 0x178   : > { %9787 = vmatmul.mubr.f32.gmra.mrb[24].mxu0 %v1882_v26  ;;  %v12894_v26 = vld [vmem:[%s12181_s26 + $0xfc] sm:$0xff] }
 0x179   : > { %9789 = vmatprep.mubr.f32.mxu0 %v1883_v27  ;;  %v12897_v27 = vld [vmem:[%s12181_s26 + $0x104] sm:$0xff] }
 0x17c   : > { %9790 = vmatmul.mubr.f32.gmra.mrb[26].mxu0 %v1884_v28  ;;  %v12902_v28 = vld [vmem:[%s12181_s26 + $0x10c] sm:$0xff] }
 0x17d   : > { %9792 = vmatprep.mubr.f32.mxu0 %v1885_v29  ;;  %v12905_v29 = vld [vmem:[%s12181_s26 + $0x114] sm:$0xff] }
 0x180   : > { %9793 = vmatmul.mubr.f32.gmra.mrb[28].mxu0 %v1886_v30  ;;  %v12910_v30 = vld [vmem:[%s12181_s26 + $0x11c] sm:$0xff] }
 0x181   : > { %9795 = vmatprep.mubr.f32.mxu0 %v1887_v31  ;;  %v12913_v31 = vld [vmem:[%s12181_s26 + $0x124] sm:$0xff] }
 0x184   : > { %9796 = vmatmul.mubr.f32.gmra.mrb[30].mxu0 %v1888_v32  ;;  %v12918_v32 = vld [vmem:[%s12181_s26 + $0x12c] sm:$0xff] }
 0x185   : > { %9798 = vmatprep.mubr.f32.mxu0 %v1889_v33  ;;  %v8274_v33 = vld [vmem:[%s14226_s2 + $0x390] sm:$0xff] }
 0x188   : > { %9799 = vmatmul.mubr.f32.gmra.mrb[32].mxu0 %v1890_v34  ;;  %v8275_v34 = vld [vmem:[%s14226_s2 + $0x398] sm:$0xff] }
 0x189   : > { %9801 = vmatprep.mubr.f32.mxu0 %v1891_v35  ;;  %v11150_v35 = vpack.c.bf16 %v8275_v34, %v8274_v33  ;;  %v8296_v33 = vld [vmem:[%s14226_s2 + $0x440] sm:$0xff]  ;;  %v8297_v34 = vld [vmem:[%s14226_s2 + $0x448] sm:$0xff] }
 0x18c   : > { %9802 = vmatmul.mubr.f32.gmra.mrb[34].mxu0 %v1892_v36  ;;  %v8276_v36 = vld [vmem:[%s14226_s2 + $0x3a0] sm:$0xff] }
 0x18d   : > { %9836 = vmatprep.mubr.f32.mxu0 %v2263_v37  ;;  %v8277_v37 = vld [vmem:[%s14226_s2 + $0x3a8] sm:$0xff] }
 0x18e   : > { %v11154_v38 = vpack.c.bf16 %v8277_v37, %v8276_v36  ;;  %v4067_v36 = vld [vmem:[%s14225_s1 + $0xb0] sm:$0xff]  ;;  %v3082_v37 = vld [vmem:[%s12181_s26 + $0x5d] sm:$0xff] }
 0x190   : > { %9837 = vmatmul.mubr.f32.vlgmr.msra.gmra.mrb[0].mxu0 %v2264_v40  ;;  %v8279_v40 = vld [vmem:[%s14226_s2 + $0x3b8] sm:$0xff] }
 0x191   : > { %11117 = vmatpush3.bf16.msra.mxu0 %v11114_v17  ;;  %9839 = vmatprep.mubr.f32.mxu0 %v12744_v41  ;;  %v12857_v17 = vld [vmem:[%s12181_s26 + $0xb4] sm:$0xff] }
 0x192   : > { %11119 = vmatprep.subr.bf16.mxu0 %v11118_v42 }
 0x194   : > { %9840 = vmatmul.mubr.f32.gmra.mrb[2].mxu0 %v12754_v45 }
 0x195   : > { %9842 = vmatprep.mubr.f32.mxu0 %v12757_v46  ;;  %11121 = vmatpush3.bf16.msra.mxu0 %v11118_v42  ;;  %v8280_v42 = vld [vmem:[%s14226_s2 + $0x3c0] sm:$0xff] }
 0x196   : > { %11123 = vmatprep.subr.bf16.mxu0 %v11122_v47  ;;  %v11162_v44 = vpack.c.bf16 %v8281_v43, %v8280_v42  ;;  %v4068_v42 = vld [vmem:[%s14225_s1 + $0xb8] sm:$0xff]  ;;  %v4069_v43 = vld [vmem:[%s14225_s1 + $0xc0] sm:$0xff] }
 0x198   : > { %9843 = vmatmul.mubr.f32.gmra.mrb[4].mxu0 %v12768_v50 }
 0x199   : > { %9845 = vmatprep.mubr.f32.mxu0 %v12771_v51  ;;  %11125 = vmatpush3.bf16.msra.mxu0 %v11122_v47 }
 0x19a   : > { %11127 = vmatprep.subr.bf16.mxu0 %v11126_v52 }
 0x19c   : > { %9846 = vmatmul.mubr.f32.gmra.mrb[6].mxu0 %v12782_v55 }
 0x19d   : > { %9848 = vmatprep.mubr.f32.mxu0 %v12785_v56  ;;  %11129 = vmatpush3.bf16.msra.mxu0 %v11126_v52  ;;  %v8287_v52 = vld [vmem:[%s14226_s2 + $0x3f8] sm:$0xff] }
 0x19e   : > { %11131 = vmatprep.subr.bf16.mxu0 %v11130_v57 }
 0x1a0   : > { %9849 = vmatmul.mubr.f32.gmra.mrb[8].mxu0 %v12796_v60 }
 0x1a1   : > { %9851 = vmatprep.mubr.f32.mxu0 %v12799_v61  ;;  %11133 = vmatpush3.bf16.msra.mxu0 %v11130_v57  ;;  %v12096_v57 = vmov 0  }
 0x1a2   : > { %11135 = vmatprep.subr.bf16.mxu0 %v11134_v62  ;;  %12086 = vset.pattern.permute.xlu0 %v12096_v57 }
 0x1a3   : > { %12087 = vset.pattern.permute.xlu1 %v12096_v57  ;;  %4083 = vperm.xlu0 %12086, %v4045_v58   ;;  %v8302_v58 = vld [vmem:[%s14226_s2 + $0x470] sm:$0xff] }
 0x1a4   : > { %9852 = vmatmul.mubr.f32.gmra.mrb[10].mxu0 %v12810_v1  ;;  %4093 = vperm.xlu1 %12087, %v4047_v59   ;;  %v8303_v59 = vld [vmem:[%s14226_s2 + $0x478] sm:$0xff] }
 0x1a5   : > { %9854 = vmatprep.mubr.f32.mxu0 %v12813_v2  ;;  %11137 = vmatpush3.bf16.msra.mxu0 %v11134_v62  ;;  %v4049_v62 = vld [vmem:[%s14225_s1 + $0x20] sm:$0xff] }
 0x1a6   : > { %11139 = vmatprep.subr.bf16.mxu0 %v11138_v3 }
 0x1a8   : > { %9855 = vmatmul.mubr.f32.gmra.mrb[12].mxu0 %v12824_v6 }
 0x1a9   : > { %9857 = vmatprep.mubr.f32.mxu0 %v12827_v7  ;;  %11141 = vmatpush3.bf16.msra.mxu0 %v11138_v3  ;;  %v4054_v3 = vld [vmem:[%s14225_s1 + $0x48] sm:$0xff] }
 0x1aa   : > { %11143 = vmatprep.subr.bf16.mxu0 %v11142_v8 }
 0x1ac   : > { %9858 = vmatmul.mubr.f32.gmra.mrb[14].mxu0 %v12838_v11 }
 0x1ad   : > { %9860 = vmatprep.mubr.f32.mxu0 %v12841_v12  ;;  %11145 = vmatpush3.bf16.msra.mxu0 %v11142_v8  ;;  %v4058_v8 = vld [vmem:[%s14225_s1 + $0x68] sm:$0xff] }
 0x1ae   : > { %11147 = vmatprep.subr.bf16.mxu0 %v11146_v13 }
 0x1b0   : > { %9861 = vmatmul.mubr.f32.gmra.mrb[16].mxu0 %v12846_v14 }
 0x1b1   : > { %9863 = vmatprep.mubr.f32.mxu0 %v12849_v15 }
 0x1b4   : > { %9864 = vmatmul.mubr.f32.gmra.mrb[18].mxu0 %v12854_v16 }
 0x1b5   : > { %9866 = vmatprep.mubr.f32.mxu0 %v12857_v17 }
 0x1b8   : > { %9867 = vmatmul.mubr.f32.gmra.mrb[20].mxu0 %v12862_v18 }
 0x1b9   : > { %9869 = vmatprep.mubr.f32.mxu0 %v12865_v19 }
 0x1bc   : > { %9870 = vmatmul.mubr.f32.gmra.mrb[22].mxu0 %v12870_v20 }
 0x1bd   : > { %9872 = vmatprep.mubr.f32.mxu0 %v12873_v21 }
 0x1c0   : > { %9873 = vmatmul.mubr.f32.gmra.mrb[24].mxu0 %v12878_v22 }
 0x1c1   : > { %9875 = vmatprep.mubr.f32.mxu0 %v12881_v23 }
 0x1c4   : > { %9876 = vmatmul.mubr.f32.gmra.mrb[26].mxu0 %v12886_v24 }
 0x1c5   : > { %9878 = vmatprep.mubr.f32.mxu0 %v12889_v25 }
 0x1c8   : > { %9879 = vmatmul.mubr.f32.gmra.mrb[28].mxu0 %v12894_v26 }
 0x1c9   : > { %9881 = vmatprep.mubr.f32.mxu0 %v12897_v27 }
 0x1cc   : > { %9882 = vmatmul.mubr.f32.gmra.mrb[30].mxu0 %v12902_v28 }
 0x1cd   : > { %9884 = vmatprep.mubr.f32.mxu0 %v12905_v29 }
 0x1d0   : > { %9885 = vmatmul.mubr.f32.gmra.mrb[32].mxu0 %v12910_v30 }
 0x1d1   : > { %9887 = vmatprep.mubr.f32.mxu0 %v12913_v31 }
 0x1d4   : > { %9888 = vmatmul.mubr.f32.gmra.mrb[34].mxu0 %v12918_v32 }
 0x1d5   : > { %9922 = vmatprep.mubr.f32.mxu0 %v12744_v41  ;;  %v11158_v41 = vpack.c.bf16 %v8279_v40, %v8278_v39  ;;  %v11194_v39 = vpack.c.bf16 %v8297_v34, %v8296_v33  ;;  %v8298_v40 = vld [vmem:[%s14226_s2 + $0x450] sm:$0xff] }
 0x1d6   : > { %v3104_v33 = vld [vmem:[%s12181_s26 + $0x10d] sm:$0xff]  ;;  %v3105_v34 = vld [vmem:[%s12181_s26 + $0x115] sm:$0xff] }
 0x1d8   : > { %9923 = vmatmul.mubr.f32.vlgmr.msra.gmra.mrb[0].mxu0 %v12754_v45  ;;  %v8282_v45 = vld [vmem:[%s14226_s2 + $0x3d0] sm:$0xff] }
 0x1d9   : > { %11149 = vmatpush3.bf16.msra.mxu0 %v11146_v13  ;;  %9925 = vmatprep.mubr.f32.mxu0 %v12757_v46  ;;  %v8283_v46 = vld [vmem:[%s14226_s2 + $0x3d8] sm:$0xff] }
 0x1da   : > { %11151 = vmatprep.subr.bf16.mxu0 %v11150_v35  ;;  %v11166_v47 = vpack.c.bf16 %v8283_v46, %v8282_v45  ;;  %v8291_v13 = vld [vmem:[%s14226_s2 + $0x418] sm:$0xff]  ;;  %v4070_v45 = vld [vmem:[%s14225_s1 + $0xc8] sm:$0xff] }
 0x1db   : > { %v3085_v46 = vld [vmem:[%s12181_s26 + $0x75] sm:$0xff] }
 0x1dc   : > { %9926 = vmatmul.mubr.f32.gmra.mrb[2].mxu0 %v12768_v50  ;;  %v11170_v50 = vpack.c.bf16 %v8285_v49, %v8284_v48  ;;  %v8300_v48 = vld [vmem:[%s14226_s2 + $0x460] sm:$0xff]  ;;  %v8301_v49 = vld [vmem:[%s14226_s2 + $0x468] sm:$0xff] }
 0x1dd   : > { %9928 = vmatprep.mubr.f32.mxu0 %v12771_v51  ;;  %11153 = vmatpush3.bf16.msra.mxu0 %v11150_v35  ;;  %v8286_v51 = vld [vmem:[%s14226_s2 + $0x3f0] sm:$0xff]  ;;  %v4066_v35 = vld [vmem:[%s14225_s1 + $0xa8] sm:$0xff]  ;;  %v11202_v57 = vpack.c.bf16 %v8301_v49, %v8300_v48 }
 0x1de   : > { %11155 = vmatprep.subr.bf16.mxu0 %v11154_v38  ;;  %v11174_v53 = vpack.c.bf16 %v8287_v52, %v8286_v51  ;;  %v4375_v51 = vld [vmem:[%s14229_s5] sm:$0xff]  ;;  %v4376_v52 = vld [vmem:[%s14229_s5 + $0x8] sm:$0xff] }
 0x1df   : > { %v3489_v48 = vld [vmem:[%s12181_s26 + $0x66] sm:$0xff]  ;;  %v3490_v49 = vld [vmem:[%s12181_s26 + $0x6e] sm:$0xff] }
 0x1e0   : > { %9929 = vmatmul.mubr.f32.gmra.mrb[4].mxu0 %v12782_v55  ;;  %v8289_v55 = vld [vmem:[%s14226_s2 + $0x408] sm:$0xff] }
 0x1e1   : > { %9931 = vmatprep.mubr.f32.mxu0 %v12785_v56  ;;  %11157 = vmatpush3.bf16.msra.mxu0 %v11154_v38  ;;  %v12984_v56 = vpack.c.bf16 %v8289_v55, %v8288_v54  ;;  %v3083_v38 = vld [vmem:[%s12181_s26 + $0x65] sm:$0xff]  ;;  %v4072_v54 = vld [vmem:[%s14225_s1 + $0xd8] sm:$0xff]  ;;  %v11210_v55 = vpack.c.bf16 %v4376_v52, %v4375_v51 }
 0x1e2   : > { %11159 = vmatprep.subr.bf16.mxu0 %v11158_v41  ;;  %v3492_v51 = vld [vmem:[%s12181_s26 + $0x7e] sm:$0xff]  ;;  %v3493_v52 = vld [vmem:[%s12181_s26 + $0x86] sm:$0xff] }
 0x1e3   : > { %11211 = vmatprep.subr.bf16.mxu1 %v11210_v55 }
 0x1e4   : > { %9932 = vmatmul.mubr.f32.gmra.mrb[6].mxu0 %v12796_v60  ;;  %v4046_v60 = vld [vmem:[%s14225_s1 + $0x8] sm:$0xff]  ;;  %11213 = vmatpush3.bf16.msra.mxu1 %v11210_v55  ;;  %v3496_v55 = vld [vmem:[%s12181_s26 + $0x9e] sm:$0xff] }
 0x1e5   : > { %9934 = vmatprep.mubr.f32.mxu0 %v12799_v61  ;;  %11161 = vmatpush3.bf16.msra.mxu0 %v11158_v41  ;;  %v4048_v61 = vld [vmem:[%s14225_s1 + $0x18] sm:$0xff] }
 0x1e6   : > { %11163 = vmatprep.subr.bf16.mxu0 %v11162_v44  ;;  %4088 = vperm.xlu0 %12086, %v4046_v60   ;;  %v8299_v41 = vld [vmem:[%s14226_s2 + $0x458] sm:$0xff]  ;;  %v4073_v60 = vld [vmem:[%s14225_s1 + $0xe0] sm:$0xff] }
 0x1e7   : > { %4098 = vperm.xlu1 %12087, %v4048_v61   ;;  %v4377_v61 = vld [vmem:[%s14229_s5 + $0x10] sm:$0xff] }
 0x1e8   : > { %9935 = vmatmul.mubr.f32.gmra.mrb[8].mxu0 %v12810_v1  ;;  %v4052_v1 = vld [vmem:[%s14225_s1 + $0x38] sm:$0xff] }
 0x1e9   : > { %9937 = vmatprep.mubr.f32.mxu0 %v12813_v2  ;;  %11165 = vmatpush3.bf16.msra.mxu0 %v11162_v44  ;;  %v4053_v2 = vld [vmem:[%s14225_s1 + $0x40] sm:$0xff]  ;;  %v3084_v44 = vld [vmem:[%s12181_s26 + $0x6d] sm:$0xff] }
 0x1ea   : > { %11167 = vmatprep.subr.bf16.mxu0 %v11166_v47  ;;  %4103 = vperm.xlu0 %12086, %v4049_v62   ;;  %v4378_v62 = vld [vmem:[%s14229_s5 + $0x18] sm:$0xff] }
 0x1eb   : > { %4108 = vperm.xlu1 %12087, %v4050_v63   ;;  %v3088_v63 = vld [vmem:[%s12181_s26 + $0x8d] sm:$0xff] }
 0x1ec   : > { %9938 = vmatmul.mubr.f32.gmra.mrb[10].mxu0 %v12824_v6  ;;  %v4057_v6 = vld [vmem:[%s14225_s1 + $0x60] sm:$0xff] }
 0x1ed   : > { %9940 = vmatprep.mubr.f32.mxu0 %v12827_v7  ;;  %11169 = vmatpush3.bf16.msra.mxu0 %v11166_v47  ;;  %v2703_v7 = vld [vmem:[%s12181_s26 + $0x134] sm:$0xff]  ;;  %v11198_v47 = vpack.c.bf16 %v8299_v41, %v8298_v40  ;;  %v3481_v40 = vld [vmem:[%s12181_s26 + $0x26] sm:$0xff] }
 0x1ee   : > { %11171 = vmatprep.subr.bf16.mxu0 %v11170_v50  ;;  %4113 = vperm.xlu0 %12086, %v4051_v0   ;;  %v4074_v0 = vld [vmem:[%s14225_s1 + $0xe8] sm:$0xff] }
 0x1ef   : > { %4118 = vperm.xlu1 %12087, %v4052_v1   ;;  %v3089_v1 = vld [vmem:[%s12181_s26 + $0x95] sm:$0xff] }
 0x1f0   : > { %9941 = vmatmul.mubr.f32.gmra.mrb[12].mxu0 %v12838_v11  ;;  %v3075_v11 = vld [vmem:[%s12181_s26 + $0x25] sm:$0xff]  ;;  %v3482_v41 = vld [vmem:[%s12181_s26 + $0x2e] sm:$0xff] }
 0x1f1   : > { %9943 = vmatprep.mubr.f32.mxu0 %v12841_v12  ;;  %11173 = vmatpush3.bf16.msra.mxu0 %v11170_v50  ;;  %v8290_v12 = vld [vmem:[%s14226_s2 + $0x410] sm:$0xff] }
 0x1f2   : > { %11175 = vmatprep.subr.bf16.mxu0 %v11174_v53  ;;  %4123 = vperm.xlu0 %12086, %v4053_v2   ;;  %v4071_v50 = vld [vmem:[%s14225_s1 + $0xd0] sm:$0xff]  ;;  %v11206_v2 = vpack.c.bf16 %v8303_v59, %v8302_v58  ;;  %v3500_v59 = vld [vmem:[%s12181_s26 + $0xbe] sm:$0xff] }
 0x1f3   : > { %4128 = vperm.xlu1 %12087, %v4054_v3   ;;  %v4075_v3 = vld [vmem:[%s14225_s1 + $0xf0] sm:$0xff] }
 0x1f4   : > { %9944 = vmatmul.mubr.f32.gmra.mrb[14].mxu0 %v12846_v14  ;;  %v4060_v14 = vld [vmem:[%s14225_s1 + $0x78] sm:$0xff] }
 0x1f5   : > { %9946 = vmatprep.mubr.f32.mxu0 %v12849_v15  ;;  %11177 = vmatpush3.bf16.msra.mxu0 %v11174_v53  ;;  %v4061_v15 = vld [vmem:[%s14225_s1 + $0x80] sm:$0xff]  ;;  %v3499_v58 = vld [vmem:[%s12181_s26 + $0xb6] sm:$0xff] }
 0x1f6   : > { %11179 = vmatprep.subr.bf16.mxu0 %v12984_v56  ;;  %4133 = vperm.xlu0 %12086, %v4055_v4   ;;  %v3086_v53 = vld [vmem:[%s12181_s26 + $0x7d] sm:$0xff]  ;;  %v11214_v4 = vpack.c.bf16 %v4378_v62, %v4377_v61  ;;  %v3502_v61 = vld [vmem:[%s12181_s26 + $0xce] sm:$0xff] }
 0x1f7   : > { %4138 = vperm.xlu1 %12087, %v4056_v5   ;;  %v4379_v5 = vld [vmem:[%s14229_s5 + $0x20] sm:$0xff]  ;;  %v3503_v62 = vld [vmem:[%s12181_s26 + $0xd6] sm:$0xff] }
 0x1f8   : > { %9947 = vmatmul.mubr.f32.gmra.mrb[16].mxu0 %v12854_v16  ;;  %v3076_v16 = vld [vmem:[%s12181_s26 + $0x2d] sm:$0xff]  ;;  %11215 = vmatprep.subr.bf16.mxu1 %v11214_v4 }
 0x1f9   : > { %9949 = vmatprep.mubr.f32.mxu0 %v12857_v17  ;;  %v3077_v17 = vld [vmem:[%s12181_s26 + $0x35] sm:$0xff]  ;;  %11217 = vmatpush3.bf16.msra.mxu1 %v11214_v4  ;;  %v3509_v4 = vld [vmem:[%s12181_s26 + $0x106] sm:$0xff] }
 0x1fa   : > { %4143 = vperm.xlu0 %12086, %v4057_v6   ;;  %v4380_v6 = vld [vmem:[%s14229_s5 + $0x28] sm:$0xff] }
 0x1fb   : > { %4148 = vperm.xlu1 %12087, %v4058_v8   ;;  %v4076_v8 = vld [vmem:[%s14225_s1 + $0xf8] sm:$0xff] }
 0x1fc   : > { %9950 = vmatmul.mubr.f32.gmra.mrb[18].mxu0 %v12862_v18  ;;  %v11182_v18 = vpack.c.bf16 %v8291_v13, %v8290_v12  ;;  %v4381_v12 = vld [vmem:[%s14229_s5 + $0x30] sm:$0xff]  ;;  %v4382_v13 = vld [vmem:[%s14229_s5 + $0x38] sm:$0xff] }
 0x1fd   : > { %9952 = vmatprep.mubr.f32.mxu0 %v12865_v19  ;;  %v8292_v19 = vld [vmem:[%s14226_s2 + $0x420] sm:$0xff] }
 0x1fe   : > { %4153 = vperm.xlu0 %12086, %v4059_v9   ;;  %v3091_v9 = vld [vmem:[%s12181_s26 + $0xa5] sm:$0xff] }
 0x1ff   : > { %4158 = vperm.xlu1 %12087, %v4060_v14   ;;  %v3092_v14 = vld [vmem:[%s12181_s26 + $0xad] sm:$0xff] }
 0x200   : > { %9953 = vmatmul.mubr.f32.gmra.mrb[20].mxu0 %v12870_v20  ;;  %v8293_v20 = vld [vmem:[%s14226_s2 + $0x428] sm:$0xff] }
 0x201   : > { %9955 = vmatprep.mubr.f32.mxu0 %v12873_v21  ;;  %v4062_v21 = vld [vmem:[%s14225_s1 + $0x88] sm:$0xff] }
 0x202   : > { %4163 = vperm.xlu0 %12086, %v4061_v15   ;;  %v4078_v15 = vld [vmem:[%s14225_s1 + $0x108] sm:$0xff] }
 0x203   : > { %4168 = vperm.xlu1 %12087, %v4062_v21   ;;  %v3094_v21 = vld [vmem:[%s12181_s26 + $0xbd] sm:$0xff] }
 0x204   : > { %9956 = vmatmul.mubr.f32.gmra.mrb[22].mxu0 %v12878_v22  ;;  %v4063_v22 = vld [vmem:[%s14225_s1 + $0x90] sm:$0xff] }
 0x205   : > { %9958 = vmatprep.mubr.f32.mxu0 %v12881_v23  ;;  %v3078_v23 = vld [vmem:[%s12181_s26 + $0x3d] sm:$0xff] }
 0x206   : > { %4173 = vperm.xlu0 %12086, %v4063_v22   ;;  %v4080_v22 = vld [vmem:[%s14225_s1 + $0x118] sm:$0xff] }
 0x208   : > { %9959 = vmatmul.mubr.f32.gmra.mrb[24].mxu0 %v12886_v24  ;;  %v3079_v24 = vld [vmem:[%s12181_s26 + $0x45] sm:$0xff] }
 0x209   : > { %9961 = vmatprep.mubr.f32.mxu0 %v12889_v25  ;;  %v11186_v25 = vpack.c.bf16 %v8293_v20, %v8292_v19  ;;  %v4383_v19 = vld [vmem:[%s14229_s5 + $0x40] sm:$0xff]  ;;  %v4384_v20 = vld [vmem:[%s14229_s5 + $0x48] sm:$0xff] }
 0x20c   : > { %9962 = vmatmul.mubr.f32.gmra.mrb[26].mxu0 %v12894_v26  ;;  %v8294_v26 = vld [vmem:[%s14226_s2 + $0x430] sm:$0xff] }
 0x20d   : > { %9964 = vmatprep.mubr.f32.mxu0 %v12897_v27  ;;  %v8295_v27 = vld [vmem:[%s14226_s2 + $0x438] sm:$0xff] }
 0x210   : > { %9965 = vmatmul.mubr.f32.gmra.mrb[28].mxu0 %v12902_v28  ;;  %v4064_v28 = vld [vmem:[%s14225_s1 + $0x98] sm:$0xff] }
 0x211   : > { %9967 = vmatprep.mubr.f32.mxu0 %v12905_v29  ;;  %v4065_v29 = vld [vmem:[%s14225_s1 + $0xa0] sm:$0xff]  ;;  %4178 = vperm.xlu1 %12087, %v4064_v28  }
 0x212   : > { %4183 = vperm.xlu0 %12086, %v4065_v29   ;;  %v3099_v28 = vld [vmem:[%s12181_s26 + $0xe5] sm:$0xff]  ;;  %v3100_v29 = vld [vmem:[%s12181_s26 + $0xed] sm:$0xff] }
 0x214   : > { %9968 = vmatmul.mubr.f32.gmra.mrb[30].mxu0 %v12910_v30  ;;  %v3080_v30 = vld [vmem:[%s12181_s26 + $0x4d] sm:$0xff] }
 0x215   : > { %9970 = vmatprep.mubr.f32.mxu0 %v12913_v31  ;;  %v3081_v31 = vld [vmem:[%s12181_s26 + $0x55] sm:$0xff]  ;;  %4188 = vperm.xlu1 %12087, %v4066_v35   ;;  %v3106_v35 = vld [vmem:[%s12181_s26 + $0x11d] sm:$0xff] }
 0x216   : > { %4193 = vperm.xlu0 %12086, %v4067_v36   ;;  %v3107_v36 = vld [vmem:[%s12181_s26 + $0x125] sm:$0xff] }
 0x218   : > { %9971 = vmatmul.mubr.f32.gmra.mrb[32].mxu0 %v12918_v32  ;;  %v11190_v32 = vpack.c.bf16 %v8295_v27, %v8294_v26  ;;  %v3097_v26 = vld [vmem:[%s12181_s26 + $0xd5] sm:$0xff]  ;;  %v3098_v27 = vld [vmem:[%s12181_s26 + $0xdd] sm:$0xff] }
 0x219   : > { %9973 = vmatprep.mubr.f32.mxu0 %v2703_v7  ;;  %4198 = vperm.xlu1 %12087, %v4068_v42   ;;  %v3090_v7 = vld [vmem:[%s12181_s26 + $0x9d] sm:$0xff] }
 0x21a   : > { %4203 = vperm.xlu0 %12086, %v4069_v43   ;;  %v3483_v42 = vld [vmem:[%s12181_s26 + $0x36] sm:$0xff]  ;;  %v3484_v43 = vld [vmem:[%s12181_s26 + $0x3e] sm:$0xff] }
 0x21c   : > { %9974 = vmatmul.mubr.f32.gmra.mrb[34].mxu0 %v2704_v10  ;;  %v4077_v10 = vld [vmem:[%s14225_s1 + $0x100] sm:$0xff] }
 0x21d   : > { %10008 = vmatprep.mubr.f32.mxu0 %v3075_v11  ;;  %4208 = vperm.xlu1 %12087, %v4070_v45   ;;  %v11218_v11 = vpack.c.bf16 %v4380_v6, %v4379_v5  ;;  %v3486_v45 = vld [vmem:[%s12181_s26 + $0x4e] sm:$0xff]  ;;  %v3511_v6 = vld [vmem:[%s12181_s26 + $0x116] sm:$0xff] }
 0x21e   : > { %4213 = vperm.xlu0 %12086, %v4071_v50   ;;  %v3491_v50 = vld [vmem:[%s12181_s26 + $0x76] sm:$0xff]  ;;  %v3510_v5 = vld [vmem:[%s12181_s26 + $0x10e] sm:$0xff] }
 0x21f   : > { %11219 = vmatprep.subr.bf16.mxu1 %v11218_v11 }
 0x220   : > { %10009 = vmatmul.mubr.f32.vlgmr.msra.gmra.mrb[0].mxu0 %v3076_v16  ;;  %v3093_v16 = vld [vmem:[%s12181_s26 + $0xb5] sm:$0xff]  ;;  %11221 = vmatpush3.bf16.msra.mxu1 %v11218_v11  ;;  %v3516_v11 = vld [vmem:[%s12181_s26 + $0x13e] sm:$0xff] }
 0x221   : > { %11181 = vmatpush3.bf16.msra.mxu0 %v12984_v56  ;;  %10011 = vmatprep.mubr.f32.mxu0 %v3077_v17  ;;  %v3087_v56 = vld [vmem:[%s12181_s26 + $0x85] sm:$0xff]  ;;  %v4079_v17 = vld [vmem:[%s14225_s1 + $0x110] sm:$0xff] }
 0x222   : > { %11183 = vmatprep.subr.bf16.mxu0 %v11182_v18  ;;  %4218 = vperm.xlu1 %12087, %v4072_v54   ;;  %v3495_v54 = vld [vmem:[%s12181_s26 + $0x96] sm:$0xff] }
 0x223   : > { %4223 = vperm.xlu0 %12086, %v4073_v60   ;;  %v3501_v60 = vld [vmem:[%s12181_s26 + $0xc6] sm:$0xff] }
 0x224   : > { %10012 = vmatmul.mubr.f32.gmra.mrb[2].mxu0 %v3078_v23  ;;  %v3095_v23 = vld [vmem:[%s12181_s26 + $0xc5] sm:$0xff] }
 0x225   : > { %10014 = vmatprep.mubr.f32.mxu0 %v3079_v24  ;;  %11185 = vmatpush3.bf16.msra.mxu0 %v11182_v18  ;;  %v11222_v18 = vpack.c.bf16 %v4382_v13, %v4381_v12  ;;  %v11226_v24 = vpack.c.bf16 %v4384_v20, %v4383_v19  ;;  %v4385_v12 = vld [vmem:[%s14229_s5 + $0x50] sm:$0xff]  ;;  %v4386_v13 = vld [vmem:[%s14229_s5 + $0x58] sm:$0xff] }
 0x226   : > { %11187 = vmatprep.subr.bf16.mxu0 %v11186_v25  ;;  %4228 = vperm.xlu1 %12087, %v4074_v0   ;;  %v3505_v0 = vld [vmem:[%s12181_s26 + $0xe6] sm:$0xff]  ;;  %v4390_v19 = vld [vmem:[%s14229_s5 + $0x78] sm:$0xff] }
 0x227   : > { %4233 = vperm.xlu0 %12086, %v4075_v3   ;;  %11223 = vmatprep.subr.bf16.mxu1 %v11222_v18  ;;  %v3508_v3 = vld [vmem:[%s12181_s26 + $0xfe] sm:$0xff] }
 0x228   : > { %10015 = vmatmul.mubr.f32.gmra.mrb[4].mxu0 %v3080_v30  ;;  %11225 = vmatpush3.bf16.msra.mxu1 %v11222_v18  ;;  %v3101_v30 = vld [vmem:[%s12181_s26 + $0xf5] sm:$0xff] }
 0x229   : > { %10017 = vmatprep.mubr.f32.mxu0 %v3081_v31  ;;  %11189 = vmatpush3.bf16.msra.mxu0 %v11186_v25  ;;  %v3096_v25 = vld [vmem:[%s12181_s26 + $0xcd] sm:$0xff]  ;;  %v3102_v31 = vld [vmem:[%s12181_s26 + $0xfd] sm:$0xff] }
 0x22a   : > { %11191 = vmatprep.subr.bf16.mxu0 %v11190_v32  ;;  %4238 = vperm.xlu1 %12087, %v4076_v8   ;;  %v3513_v8 = vld [vmem:[%s12181_s26 + $0x126] sm:$0xff]  ;;  %v4389_v18 = vld [vmem:[%s14229_s5 + $0x70] sm:$0xff] }
 0x22b   : > { %4243 = vperm.xlu0 %12086, %v4077_v10   ;;  %11227 = vmatprep.subr.bf16.mxu1 %v11226_v24  ;;  %v3515_v10 = vld [vmem:[%s12181_s26 + $0x136] sm:$0xff]  ;;  %v11238_v20 = vpack.c.bf16 %v4390_v19, %v4389_v18 }
 0x22c   : > { %10018 = vmatmul.mubr.f32.gmra.mrb[6].mxu0 %v3082_v37  ;;  %11229 = vmatpush3.bf16.msra.mxu1 %v11226_v24  ;;  %v3108_v37 = vld [vmem:[%s12181_s26 + $0x12d] sm:$0xff] }
 0x22d   : > { %10020 = vmatprep.mubr.f32.mxu0 %v3083_v38  ;;  %11193 = vmatpush3.bf16.msra.mxu0 %v11190_v32  ;;  %v3103_v32 = vld [vmem:[%s12181_s26 + $0x105] sm:$0xff]  ;;  %v3109_v38 = vld [vmem:[%s12181_s26 + $0x135] sm:$0xff] }
 0x22e   : > { %11195 = vmatprep.subr.bf16.mxu0 %v11194_v39  ;;  %4248 = vperm.xlu1 %12087, %v4078_v15   ;;  %v4387_v15 = vld [vmem:[%s14229_s5 + $0x60] sm:$0xff] }
 0x22f   : > { %4253 = vperm.xlu0 %12086, %v4079_v17  }
 0x230   : > { %10021 = vmatmul.mubr.f32.gmra.mrb[8].mxu0 %v3084_v44  ;;  %v3485_v44 = vld [vmem:[%s12181_s26 + $0x46] sm:$0xff] }
 0x231   : > { %10023 = vmatprep.mubr.f32.mxu0 %v3085_v46  ;;  %11197 = vmatpush3.bf16.msra.mxu0 %v11194_v39  ;;  %v3110_v39 = vld [vmem:[%s12181_s26 + $0x13d] sm:$0xff] }
 0x232   : > { %11199 = vmatprep.subr.bf16.mxu0 %v11198_v47  ;;  %4258 = vperm.xlu1 %12087, %v4080_v22   ;;  %v3487_v46 = vld [vmem:[%s12181_s26 + $0x56] sm:$0xff]  ;;  %v8306_v22 = vld [vmem:[%s14229_s5 + $0x80] sm:$0xff] }
 0x234   : > { %10024 = vmatmul.mubr.f32.gmra.mrb[10].mxu0 %v3086_v53  ;;  %v3494_v53 = vld [vmem:[%s12181_s26 + $0x8e] sm:$0xff] }
 0x235   : > { %10026 = vmatprep.mubr.f32.mxu0 %v3087_v56  ;;  %11201 = vmatpush3.bf16.msra.mxu0 %v11198_v47  ;;  %v3488_v47 = vld [vmem:[%s12181_s26 + $0x5e] sm:$0xff]  ;;  %v3497_v56 = vld [vmem:[%s12181_s26 + $0xa6] sm:$0xff] }
 0x236   : > { %11203 = vmatprep.subr.bf16.mxu0 %v11202_v57 }
 0x238   : > { %10027 = vmatmul.mubr.f32.gmra.mrb[12].mxu0 %v3088_v63  ;;  %v3504_v63 = vld [vmem:[%s12181_s26 + $0xde] sm:$0xff] }
 0x239   : > { %10029 = vmatprep.mubr.f32.mxu0 %v3089_v1  ;;  %11205 = vmatpush3.bf16.msra.mxu0 %v11202_v57  ;;  %v3498_v57 = vld [vmem:[%s12181_s26 + $0xae] sm:$0xff] }
 0x23a   : > { %11207 = vmatprep.subr.bf16.mxu0 %v11206_v2  ;;  %v3506_v1 = vld [vmem:[%s12181_s26 + $0xee] sm:$0xff] }
 0x23c   : > { %10030 = vmatmul.mubr.f32.gmra.mrb[14].mxu0 %v3090_v7  ;;  %v3512_v7 = vld [vmem:[%s12181_s26 + $0x11e] sm:$0xff] }
 0x23d   : > { %10032 = vmatprep.mubr.f32.mxu0 %v3091_v9  ;;  %11209 = vmatpush3.bf16.msra.mxu0 %v11206_v2  ;;  %v3507_v2 = vld [vmem:[%s12181_s26 + $0xf6] sm:$0xff]  ;;  %v3514_v9 = vld [vmem:[%s12181_s26 + $0x12e] sm:$0xff] }
 0x240   : > { %10033 = vmatmul.mubr.f32.gmra.mrb[16].mxu0 %v3092_v14  ;;  %v11230_v14 = vpack.c.bf16 %v4386_v13, %v4385_v12 }
 0x241   : > { %10035 = vmatprep.mubr.f32.mxu0 %v3093_v16  ;;  %v4388_v16 = vld [vmem:[%s14229_s5 + $0x68] sm:$0xff] }
 0x242   : > { %11231 = vmatprep.subr.bf16.mxu1 %v11230_v14  ;;  %v11234_v17 = vpack.c.bf16 %v4388_v16, %v4387_v15 }
 0x243   : > { %11233 = vmatpush3.bf16.msra.mxu1 %v11230_v14 }
 0x244   : > { %10036 = vmatmul.mubr.f32.gmra.mrb[18].mxu0 %v3094_v21  ;;  %11235 = vmatprep.subr.bf16.mxu1 %v11234_v17  ;;  %v12097_v21 = vmov 0.0  }
 0x245   : > { %10038 = vmatprep.mubr.f32.mxu0 %v3095_v23  ;;  %4297 = vst [vmem:[#allocation2] sm:$0xff] %v12097_v21  ;;  %10180 = vmatprep.mubr.f32.mxu1 %v12097_v21  ;;  %4298 = vst [vmem:[#allocation2 + $0x8] sm:$0xff] %v12097_v21  ;;  %v8307_v23 = vld [vmem:[%s14229_s5 + $0x88] sm:$0xff] }
 0x246   : > { %4299 = vst [vmem:[#allocation2 + $0x10] sm:$0x7] %v12097_v21  ;;  %4300 = vst [vmem:[#allocation2 + $0x133] sm:$0xff] %v12097_v21  ;;  %v11242_v24 = vpack.c.bf16 %v8307_v23, %v8306_v22 }
 0x247   : > { %11237 = vmatpush3.bf16.msra.mxu1 %v11234_v17  ;;  %4301 = vst [vmem:[#allocation2 + $0x13b] sm:$0xff] %v12097_v21  ;;  %4302 = vst [vmem:[#allocation2 + $0x143] sm:$0x7] %v12097_v21 }
 0x248   : > { %10039 = vmatmul.mubr.f32.gmra.mrb[20].mxu0 %v3096_v25  ;;  %11239 = vmatprep.subr.bf16.mxu1 %v11238_v20  ;;  %v8308_v25 = vld [vmem:[%s14229_s5 + $0x90] sm:$0xff] }
 0x249   : > { %10041 = vmatprep.mubr.f32.mxu0 %v3097_v26  ;;  %v8309_v26 = vld [vmem:[%s14229_s5 + $0x98] sm:$0xff] }
 0x24b   : > { %11241 = vmatpush3.bf16.msra.mxu1 %v11238_v20 }
 0x24c   : > { %10042 = vmatmul.mubr.f32.gmra.mrb[22].mxu0 %v3098_v27  ;;  %11243 = vmatprep.subr.bf16.mxu1 %v11242_v24  ;;  %v11246_v27 = vpack.c.bf16 %v8309_v26, %v8308_v25 }
 0x24d   : > { %10044 = vmatprep.mubr.f32.mxu0 %v3099_v28  ;;  %v8310_v28 = vld [vmem:[%s14229_s5 + $0xa0] sm:$0xff] }
 0x24e   : > { %10181 = vmatmul.mubr.f32.vlgmr.msra.gmra.mrb[0].mxu1 %v12097_v21 }
 0x24f   : > { %11245 = vmatpush3.bf16.msra.mxu1 %v11242_v24 }
 0x250   : > { %10045 = vmatmul.mubr.f32.gmra.mrb[24].mxu0 %v3100_v29  ;;  %11247 = vmatprep.subr.bf16.mxu1 %v11246_v27  ;;  %v8311_v29 = vld [vmem:[%s14229_s5 + $0xa8] sm:$0xff] }
 0x251   : > { %10047 = vmatprep.mubr.f32.mxu0 %v3101_v30  ;;  %v11250_v30 = vpack.c.bf16 %v8311_v29, %v8310_v28 }
 0x253   : > { %11249 = vmatpush3.bf16.msra.mxu1 %v11246_v27 }
 0x254   : > { %10048 = vmatmul.mubr.f32.gmra.mrb[26].mxu0 %v3102_v31  ;;  %11251 = vmatprep.subr.bf16.mxu1 %v11250_v30  ;;  %v8312_v31 = vld [vmem:[%s14229_s5 + $0xb0] sm:$0xff] }
 0x255   : > { %10050 = vmatprep.mubr.f32.mxu0 %v3103_v32  ;;  %v8313_v32 = vld [vmem:[%s14229_s5 + $0xb8] sm:$0xff] }
 0x257   : > { %11253 = vmatpush3.bf16.msra.mxu1 %v11250_v30 }
 0x258   : > { %10051 = vmatmul.mubr.f32.gmra.mrb[28].mxu0 %v3104_v33  ;;  %v11254_v33 = vpack.c.bf16 %v8313_v32, %v8312_v31 }
 0x259   : > { %10053 = vmatprep.mubr.f32.mxu0 %v3105_v34  ;;  %v8314_v34 = vld [vmem:[%s14229_s5 + $0xc0] sm:$0xff] }
 0x25a   : > { %11255 = vmatprep.subr.bf16.mxu1 %v11254_v33 }
 0x25b   : > { %11257 = vmatpush3.bf16.msra.mxu1 %v11254_v33 }
 0x25c   : > { %10054 = vmatmul.mubr.f32.gmra.mrb[30].mxu0 %v3106_v35  ;;  %v8315_v35 = vld [vmem:[%s14229_s5 + $0xc8] sm:$0xff] }
 0x25d   : > { %10056 = vmatprep.mubr.f32.mxu0 %v3107_v36  ;;  %v11258_v36 = vpack.c.bf16 %v8315_v35, %v8314_v34 }
 0x25f   : > { %11259 = vmatprep.subr.bf16.mxu1 %v11258_v36 }
 0x260   : > { %10057 = vmatmul.mubr.f32.gmra.mrb[32].mxu0 %v3108_v37  ;;  %11261 = vmatpush3.bf16.msra.mxu1 %v11258_v36  ;;  %v8316_v37 = vld [vmem:[%s14229_s5 + $0xd0] sm:$0xff] }
 0x261   : > { %10059 = vmatprep.mubr.f32.mxu0 %v3109_v38  ;;  %v8317_v38 = vld [vmem:[%s14229_s5 + $0xd8] sm:$0xff] }
 0x264   : > { %10060 = vmatmul.mubr.f32.gmra.mrb[34].mxu0 %v3110_v39  ;;  %v11262_v39 = vpack.c.bf16 %v8317_v38, %v8316_v37 }
 0x265   : > { %10094 = vmatprep.mubr.f32.mxu0 %v3481_v40  ;;  %v8318_v40 = vld [vmem:[%s14229_s5 + $0xe0] sm:$0xff] }
 0x266   : > { %11263 = vmatprep.subr.bf16.mxu1 %v11262_v39 }
 0x267   : > { %11265 = vmatpush3.bf16.msra.mxu1 %v11262_v39 }
 0x268   : > { %10095 = vmatmul.mubr.f32.vlgmr.msra.gmra.mrb[0].mxu0 %v3482_v41  ;;  %v8319_v41 = vld [vmem:[%s14229_s5 + $0xe8] sm:$0xff] }
 0x269   : > { %10097 = vmatprep.mubr.f32.mxu0 %v3483_v42  ;;  %v11266_v42 = vpack.c.bf16 %v8319_v41, %v8318_v40 }
 0x26b   : > { %11267 = vmatprep.subr.bf16.mxu1 %v11266_v42 }
 0x26c   : > { %10098 = vmatmul.mubr.f32.gmra.mrb[2].mxu0 %v3484_v43  ;;  %v8320_v43 = vld [vmem:[%s14229_s5 + $0xf0] sm:$0xff]  ;;  %11269 = vmatpush3.bf16.msra.mxu1 %v11266_v42 }
 0x26d   : > { %10100 = vmatprep.mubr.f32.mxu0 %v3485_v44  ;;  %v8321_v44 = vld [vmem:[%s14229_s5 + $0xf8] sm:$0xff] }
 0x270   : > { %10101 = vmatmul.mubr.f32.gmra.mrb[4].mxu0 %v3486_v45  ;;  %v11270_v45 = vpack.c.bf16 %v8321_v44, %v8320_v43 }
 0x271   : > { %10103 = vmatprep.mubr.f32.mxu0 %v3487_v46  ;;  %v8322_v46 = vld [vmem:[%s14229_s5 + $0x100] sm:$0xff] }
 0x272   : > { %11271 = vmatprep.subr.bf16.mxu1 %v11270_v45 }
 0x273   : > { %11273 = vmatpush3.bf16.msra.mxu1 %v11270_v45 }
 0x274   : > { %10104 = vmatmul.mubr.f32.gmra.mrb[6].mxu0 %v3488_v47  ;;  %v8323_v47 = vld [vmem:[%s14229_s5 + $0x108] sm:$0xff] }
 0x275   : > { %10106 = vmatprep.mubr.f32.mxu0 %v3489_v48  ;;  %v13333_v48 = vpack.c.bf16 %v8323_v47, %v8322_v46 }
 0x277   : > { %11275 = vmatprep.subr.bf16.mxu1 %v13333_v48 }
 0x278   : > { %10107 = vmatmul.mubr.f32.gmra.mrb[8].mxu0 %v3490_v49  ;;  %v4094_v49 = vpop.permute.xlu1 %4093 }
 0x279   : > { %10109 = vmatprep.mubr.f32.mxu0 %v3491_v50  ;;  %v4084_v50 = vpop.permute.xlu0 %4083 }
 0x27c   : > { %10110 = vmatmul.mubr.f32.gmra.mrb[10].mxu0 %v3492_v51  ;;  %v4099_v51 = vpop.permute.xlu1 %4098 }
 0x27d   : > { %10112 = vmatprep.mubr.f32.mxu0 %v3493_v52  ;;  %v4089_v52 = vpop.permute.xlu0 %4088 }
 0x280   : > { %10113 = vmatmul.mubr.f32.gmra.mrb[12].mxu0 %v3494_v53  ;;  %v4109_v53 = vpop.permute.xlu1 %4108 }
 0x281   : > { %10115 = vmatprep.mubr.f32.mxu0 %v3495_v54  ;;  %v4104_v54 = vpop.permute.xlu0 %4103 }
 0x284   : > { %10116 = vmatmul.mubr.f32.gmra.mrb[14].mxu0 %v3496_v55  ;;  %v13336_v55 = vpop.permute.xlu1 %4118 }
 0x285   : > { %10118 = vmatprep.mubr.f32.mxu0 %v3497_v56  ;;  %v13338_v56 = vpop.permute.xlu0 %4113 }
 0x288   : > { %10119 = vmatmul.mubr.f32.gmra.mrb[16].mxu0 %v3498_v57  ;;  %v13340_v57 = vpop.permute.xlu1 %4128 }
 0x289   : > { %10121 = vmatprep.mubr.f32.mxu0 %v3499_v58  ;;  %v13342_v58 = vpop.permute.xlu0 %4123 }
 0x28c   : > { %10122 = vmatmul.mubr.f32.gmra.mrb[18].mxu0 %v3500_v59  ;;  %v13347_v59 = vld [vmem:[%s14227_s3] ss:$0 sm:$0xff] }
 0x28d   : > { %10124 = vmatprep.mubr.f32.mxu0 %v3501_v60 }
 0x290   : > { %10125 = vmatmul.mubr.f32.gmra.mrb[20].mxu0 %v3502_v61  ;;  %v13352_v61 = vld [vmem:[%s14228_s4] ss:$0 sm:$0xff] }
 0x291   : > { %10127 = vmatprep.mubr.f32.mxu0 %v3503_v62 }
 0x294   : > { %10128 = vmatmul.mubr.f32.gmra.mrb[22].mxu0 %v3504_v63 }
 0x295   : > { %10130 = vmatprep.mubr.f32.mxu0 %v3505_v0  ;;  %v13355_v0 = vpop.permute.xlu1 %4138 }
 0x298   : > { %10131 = vmatmul.mubr.f32.gmra.mrb[24].mxu0 %v3506_v1 }
 0x299   : > { %10133 = vmatprep.mubr.f32.mxu0 %v3507_v2  ;;  %v13358_v2 = vpop.permute.xlu0 %4133  ;;  %v13365_v13 = vpop.permute.xlu1 %4148 }
 0x29c   : > { %10134 = vmatmul.mubr.f32.gmra.mrb[26].mxu0 %v3508_v3 }
 0x29d   : > { %10136 = vmatprep.mubr.f32.mxu0 %v3509_v4  ;;  %v13368_v17 = vpop.permute.xlu0 %4143  ;;  %v13375_v31 = vpop.permute.xlu1 %4158 }
 0x2a0   : > { %10137 = vmatmul.mubr.f32.gmra.mrb[28].mxu0 %v3510_v5 }
 0x2a1   : > { %10139 = vmatprep.mubr.f32.mxu0 %v3511_v6  ;;  %v13378_v34 = vpop.permute.xlu0 %4153 }
 0x2a4   : > { %10140 = vmatmul.mubr.f32.gmra.mrb[30].mxu0 %v3512_v7 }
 0x2a5   : > { %10142 = vmatprep.mubr.f32.mxu0 %v3513_v8 }
 0x2a8   : > { %10143 = vmatmul.mubr.f32.gmra.mrb[32].mxu0 %v3514_v9 }
 0x2a9   : > { %10145 = vmatprep.mubr.f32.mxu0 %v3515_v10 }
 0x2ac   : > { %10146 = vmatmul.mubr.f32.gmra.mrb[34].mxu0 %v3516_v11 }
 0x33b   : > { %v10096_v60 = vpop.f32.mrb[0].mxu0 }
 0x33c   : > { %v3931_v62 = vmul.f32 %v10096_v60, %v13347_v59  ;;  %v3600_v63 = vpop.f32.mrb[1].mxu0 }
 0x33d   : > { %v3930_v1 = vmul.f32 %v13347_v59, %v3600_v63 }
 0x33e   : > { %v3974_v3 = vadd.f32 %v13352_v61, %v3931_v62 }
 0x33f   : > { %v3973_v4 = vadd.f32 %v13352_v61, %v3930_v1  ;;  %v10099_v5 = vpop.f32.mrb[2].mxu0 }
 0x340   : > { %v4010_v6 = vmax.f32 %v3974_v3, 0.0  ;;  %v3933_v7 = vmul.f32 %v10099_v5, %v13347_v59  ;;  %v3610_v8 = vpop.f32.mrb[3].mxu0 }
 0x341   : > { %v4009_v9 = vmax.f32 %v3973_v4, 0.0  ;;  %v3932_v10 = vmul.f32 %v13347_v59, %v3610_v8 }
 0x342   : > { %v4262_v11 = vmul.f32 %v4089_v52, %v4010_v6  ;;  %v3976_v12 = vadd.f32 %v13352_v61, %v3933_v7 }
 0x343   : > { %v4261_v14 = vmul.f32 %v4084_v50, %v4009_v9  ;;  %v3975_v15 = vadd.f32 %v13352_v61, %v3932_v10  ;;  %v10102_v16 = vpop.f32.mrb[4].mxu0  ;;  %v13386_v50 = vpop.permute.xlu1 %4168 }
 0x344   : > { %4304 = vst [vmem:[#allocation2 + $0x1b] sm:$0xff] %v4262_v11  ;;  %v4012_v18 = vmax.f32 %v3976_v12, 0.0  ;;  %v3935_v19 = vmul.f32 %v10102_v16, %v13347_v59  ;;  %v3620_v20 = vpop.f32.mrb[5].mxu0 }
 0x345   : > { %4303 = vst [vmem:[#allocation2 + $0x13] sm:$0xff] %v4261_v14  ;;  %v4011_v21 = vmax.f32 %v3975_v15, 0.0  ;;  %v3934_v22 = vmul.f32 %v13347_v59, %v3620_v20 }
 0x346   : > { %v4264_v23 = vmul.f32 %v4099_v51, %v4012_v18  ;;  %v3978_v24 = vadd.f32 %v13352_v61, %v3935_v19 }
 0x347   : > { %v4263_v25 = vmul.f32 %v4094_v49, %v4011_v21  ;;  %v3977_v26 = vadd.f32 %v13352_v61, %v3934_v22  ;;  %v10105_v27 = vpop.f32.mrb[6].mxu0  ;;  %v13399_v15 = vpop.permute.xlu1 %4178 }
 0x348   : > { %4306 = vst [vmem:[#allocation2 + $0x2b] sm:$0xff] %v4264_v23  ;;  %v4014_v28 = vmax.f32 %v3978_v24, 0.0  ;;  %v3937_v29 = vmul.f32 %v10105_v27, %v13347_v59  ;;  %v3630_v30 = vpop.f32.mrb[7].mxu0 }
 0x349   : > { %4305 = vst [vmem:[#allocation2 + $0x23] sm:$0xff] %v4263_v25  ;;  %v4013_v32 = vmax.f32 %v3977_v26, 0.0  ;;  %v3936_v33 = vmul.f32 %v13347_v59, %v3630_v30 }
 0x34a   : > { %v4266_v35 = vmul.f32 %v4109_v53, %v4014_v28  ;;  %v3980_v36 = vadd.f32 %v13352_v61, %v3937_v29 }
 0x34b   : > { %v4265_v37 = vmul.f32 %v4104_v54, %v4013_v32  ;;  %v3979_v38 = vadd.f32 %v13352_v61, %v3936_v33  ;;  %v10108_v39 = vpop.f32.mrb[8].mxu0  ;;  %v13390_v54 = vpop.permute.xlu0 %4163 }
 0x34c   : > { %4308 = vst [vmem:[#allocation2 + $0x3b] sm:$0xff] %v4266_v35  ;;  %v4016_v40 = vmax.f32 %v3980_v36, 0.0  ;;  %v3939_v41 = vmul.f32 %v10108_v39, %v13347_v59  ;;  %v3640_v42 = vpop.f32.mrb[9].mxu0  ;;  %v4341_v43 = vld [vmem:[#allocation2 + $0x10] sm:$0xff]  ;;  %v4342_v44 = vld [vmem:[#allocation2 + $0x18] sm:$0xff] }
 0x34d   : > { %4307 = vst [vmem:[#allocation2 + $0x33] sm:$0xff] %v4265_v37  ;;  %v4015_v45 = vmax.f32 %v3979_v38, 0.0  ;;  %v3938_v46 = vmul.f32 %v13347_v59, %v3640_v42  ;;  %10183 = vmatprep.mubr.f32.mxu1 %v4341_v43 }
 0x34e   : > { %v4268_v47 = vmul.f32 %v13336_v55, %v4016_v40  ;;  %v3982_v49 = vadd.f32 %v13352_v61, %v3939_v41  ;;  %10184 = vmatmul.mubr.f32.gmra.mrb[2].mxu1 %v4342_v44 }
 0x34f   : > { %v4267_v51 = vmul.f32 %v13338_v56, %v4015_v45  ;;  %v3981_v52 = vadd.f32 %v13352_v61, %v3938_v46  ;;  %v10111_v53 = vpop.f32.mrb[10].mxu0  ;;  %v13402_v18 = vpop.permute.xlu0 %4173 }
 0x350   : > { %4310 = vst [vmem:[#allocation2 + $0x4b] sm:$0xff] %v4268_v47  ;;  %v4018_v60 = vmax.f32 %v3982_v49, 0.0  ;;  %v3941_v62 = vmul.f32 %v10111_v53, %v13347_v59  ;;  %v3650_v63 = vpop.f32.mrb[11].mxu0  ;;  %v4343_v1 = vld [vmem:[#allocation2 + $0x20] sm:$0xff]  ;;  %v4344_v3 = vld [vmem:[#allocation2 + $0x28] sm:$0xff] }
 0x351   : > { %4309 = vst [vmem:[#allocation2 + $0x43] sm:$0xff] %v4267_v51  ;;  %v4017_v55 = vmax.f32 %v3981_v52, 0.0  ;;  %v3940_v4 = vmul.f32 %v13347_v59, %v3650_v63  ;;  %10186 = vmatprep.mubr.f32.mxu1 %v4343_v1 }
 0x352   : > { %v4270_v5 = vmul.f32 %v13340_v57, %v4018_v60  ;;  %v3984_v56 = vadd.f32 %v13352_v61, %v3941_v62  ;;  %10187 = vmatmul.mubr.f32.gmra.mrb[4].mxu1 %v4344_v3 }
 0x353   : > { %v4269_v6 = vmul.f32 %v13342_v58, %v4017_v55  ;;  %v3983_v7 = vadd.f32 %v13352_v61, %v3940_v4  ;;  %v10114_v8 = vpop.f32.mrb[12].mxu0  ;;  %v13416_v36 = vpop.permute.xlu0 %4183 }
 0x354   : > { %4312 = vst [vmem:[#allocation2 + $0x5b] sm:$0xff] %v4270_v5  ;;  %v4020_v9 = vmax.f32 %v3984_v56, 0.0  ;;  %v3943_v10 = vmul.f32 %v10114_v8, %v13347_v59  ;;  %v3660_v11 = vpop.f32.mrb[13].mxu0  ;;  %v4345_v12 = vld [vmem:[#allocation2 + $0x30] sm:$0xff]  ;;  %v4346_v14 = vld [vmem:[#allocation2 + $0x38] sm:$0xff] }
 0x355   : > { %4311 = vst [vmem:[#allocation2 + $0x53] sm:$0xff] %v4269_v6  ;;  %v4019_v16 = vmax.f32 %v3983_v7, 0.0  ;;  %v3942_v57 = vmul.f32 %v13347_v59, %v3660_v11  ;;  %10189 = vmatprep.mubr.f32.mxu1 %v4345_v12 }
 0x356   : > { %v4272_v58 = vmul.f32 %v13355_v0, %v4020_v9  ;;  %v3986_v19 = vadd.f32 %v13352_v61, %v3943_v10  ;;  %10190 = vmatmul.mubr.f32.gmra.mrb[6].mxu1 %v4346_v14 }
 0x357   : > { %v4271_v20 = vmul.f32 %v13358_v2, %v4019_v16  ;;  %v3985_v21 = vadd.f32 %v13352_v61, %v3942_v57  ;;  %v10117_v22 = vpop.f32.mrb[14].mxu0  ;;  %v13412_v2 = vpop.permute.xlu1 %4188 }
 0x358   : > { %4314 = vst [vmem:[#allocation2 + $0x6b] sm:$0xff] %v4272_v58  ;;  %v4022_v23 = vmax.f32 %v3986_v19, 0.0  ;;  %v3945_v24 = vmul.f32 %v10117_v22, %v13347_v59  ;;  %v3670_v25 = vpop.f32.mrb[15].mxu0  ;;  %v4347_v26 = vld [vmem:[#allocation2 + $0x40] sm:$0xff]  ;;  %v4348_v27 = vld [vmem:[#allocation2 + $0x48] sm:$0xff]  ;;  %v4194_v63 = vpop.permute.xlu0 %4193 }
 0x359   : > { %4313 = vst [vmem:[#allocation2 + $0x63] sm:$0xff] %v4271_v20  ;;  %v4021_v28 = vmax.f32 %v3985_v21, 0.0  ;;  %v3944_v29 = vmul.f32 %v13347_v59, %v3670_v25  ;;  %10192 = vmatprep.mubr.f32.mxu1 %v4347_v26 }
 0x35a   : > { %v4274_v0 = vmul.f32 %v13365_v13, %v4022_v23  ;;  %v3988_v30 = vadd.f32 %v13352_v61, %v3945_v24  ;;  %10193 = vmatmul.mubr.f32.gmra.mrb[8].mxu1 %v4348_v27 }
 0x35b   : > { %v4273_v32 = vmul.f32 %v13368_v17, %v4021_v28  ;;  %v3987_v33 = vadd.f32 %v13352_v61, %v3944_v29  ;;  %v10120_v35 = vpop.f32.mrb[16].mxu0  ;;  %v4199_v60 = vpop.permute.xlu1 %4198 }
 0x35c   : > { %4316 = vst [vmem:[#allocation2 + $0x7b] sm:$0xff] %v4274_v0  ;;  %v4024_v37 = vmax.f32 %v3988_v30, 0.0  ;;  %v3947_v38 = vmul.f32 %v10120_v35, %v13347_v59  ;;  %v3680_v39 = vpop.f32.mrb[17].mxu0  ;;  %v4349_v40 = vld [vmem:[#allocation2 + $0x50] sm:$0xff]  ;;  %v4350_v41 = vld [vmem:[#allocation2 + $0x58] sm:$0xff]  ;;  %v4204_v57 = vpop.permute.xlu0 %4203 }
 0x35d   : > { %4315 = vst [vmem:[#allocation2 + $0x73] sm:$0xff] %v4273_v32  ;;  %v4023_v13 = vmax.f32 %v3987_v33, 0.0  ;;  %v3946_v42 = vmul.f32 %v13347_v59, %v3680_v39  ;;  %10195 = vmatprep.mubr.f32.mxu1 %v4349_v40 }
 0x35e   : > { %v4276_v43 = vmul.f32 %v13375_v31, %v4024_v37  ;;  %v3990_v17 = vadd.f32 %v13352_v61, %v3947_v38  ;;  %10196 = vmatmul.mubr.f32.gmra.mrb[10].mxu1 %v4350_v41 }
 0x35f   : > { %v4275_v44 = vmul.f32 %v13378_v34, %v4023_v13  ;;  %v3989_v45 = vadd.f32 %v13352_v61, %v3946_v42  ;;  %v10123_v46 = vpop.f32.mrb[18].mxu0 }
 0x360   : > { %4318 = vst [vmem:[#allocation2 + $0x8b] sm:$0xff] %v4276_v43  ;;  %v4026_v47 = vmax.f32 %v3990_v17, 0.0  ;;  %v3949_v49 = vmul.f32 %v10123_v46, %v13347_v59  ;;  %v3690_v51 = vpop.f32.mrb[19].mxu0  ;;  %v4351_v52 = vld [vmem:[#allocation2 + $0x60] sm:$0xff]  ;;  %v4352_v53 = vld [vmem:[#allocation2 + $0x68] sm:$0xff]  ;;  %v4214_v37 = vpop.permute.xlu0 %4213 }
 0x361   : > { %4317 = vst [vmem:[#allocation2 + $0x83] sm:$0xff] %v4275_v44  ;;  %v4025_v62 = vmax.f32 %v3989_v45, 0.0  ;;  %v3948_v31 = vmul.f32 %v13347_v59, %v3690_v51  ;;  %10198 = vmatprep.mubr.f32.mxu1 %v4351_v52 }
 0x362   : > { %v4278_v1 = vmul.f32 %v13386_v50, %v4026_v47  ;;  %v3992_v34 = vadd.f32 %v13352_v61, %v3949_v49  ;;  %10199 = vmatmul.mubr.f32.gmra.mrb[12].mxu1 %v4352_v53 }
 0x363   : > { %v4277_v3 = vmul.f32 %v13390_v54, %v4025_v62  ;;  %v3991_v55 = vadd.f32 %v13352_v61, %v3948_v31  ;;  %v10126_v4 = vpop.f32.mrb[20].mxu0  ;;  %v4209_v54 = vpop.permute.xlu1 %4208 }
 0x364   : > { %4320 = vst [vmem:[#allocation2 + $0x9b] sm:$0xff] %v4278_v1  ;;  %v4028_v5 = vmax.f32 %v3992_v34, 0.0  ;;  %v3951_v56 = vmul.f32 %v10126_v4, %v13347_v59  ;;  %v3700_v6 = vpop.f32.mrb[21].mxu0  ;;  %v4353_v7 = vld [vmem:[#allocation2 + $0x70] sm:$0xff]  ;;  %v4354_v8 = vld [vmem:[#allocation2 + $0x78] sm:$0xff]  ;;  %v4224_v62 = vpop.permute.xlu0 %4223 }
 0x365   : > { %4319 = vst [vmem:[#allocation2 + $0x93] sm:$0xff] %v4277_v3  ;;  %v4027_v9 = vmax.f32 %v3991_v55, 0.0  ;;  %v3950_v10 = vmul.f32 %v13347_v59, %v3700_v6  ;;  %10201 = vmatprep.mubr.f32.mxu1 %v4353_v7 }
 0x366   : > { %v4280_v50 = vmul.f32 %v13399_v15, %v4028_v5  ;;  %v3994_v11 = vadd.f32 %v13352_v61, %v3951_v56  ;;  %10202 = vmatmul.mubr.f32.gmra.mrb[14].mxu1 %v4354_v8 }
 0x367   : > { %v4279_v12 = vmul.f32 %v13402_v18, %v4027_v9  ;;  %v3993_v14 = vadd.f32 %v13352_v61, %v3950_v10  ;;  %v10129_v16 = vpop.f32.mrb[22].mxu0  ;;  %v4219_v33 = vpop.permute.xlu1 %4218 }
 0x368   : > { %4322 = vst [vmem:[#allocation2 + $0xab] sm:$0xff] %v4280_v50  ;;  %v4030_v58 = vmax.f32 %v3994_v11, 0.0  ;;  %v3953_v19 = vmul.f32 %v10129_v16, %v13347_v59  ;;  %v3710_v20 = vpop.f32.mrb[23].mxu0  ;;  %v4355_v21 = vld [vmem:[#allocation2 + $0x80] sm:$0xff]  ;;  %v4356_v22 = vld [vmem:[#allocation2 + $0x88] sm:$0xff] }
 0x369   : > { %4321 = vst [vmem:[#allocation2 + $0xa3] sm:$0xff] %v4279_v12  ;;  %v4029_v23 = vmax.f32 %v3993_v14, 0.0  ;;  %v3952_v15 = vmul.f32 %v13347_v59, %v3710_v20  ;;  %10204 = vmatprep.mubr.f32.mxu1 %v4355_v21 }
 0x36a   : > { %v4282_v24 = vmul.f32 %v13412_v2, %v4030_v58  ;;  %v3996_v18 = vadd.f32 %v13352_v61, %v3953_v19  ;;  %10205 = vmatmul.mubr.f32.gmra.mrb[16].mxu1 %v4356_v22 }
 0x36b   : > { %v4281_v25 = vmul.f32 %v13416_v36, %v4029_v23  ;;  %v3995_v26 = vadd.f32 %v13352_v61, %v3952_v15  ;;  %v10132_v27 = vpop.f32.mrb[24].mxu0  ;;  %v4229_v51 = vpop.permute.xlu1 %4228 }
 0x36c   : > { %4324 = vst [vmem:[#allocation2 + $0xbb] sm:$0xff] %v4282_v24  ;;  %v4032_v28 = vmax.f32 %v3996_v18, 0.0  ;;  %v3955_v29 = vmul.f32 %v10132_v27, %v13347_v59  ;;  %v3720_v0 = vpop.f32.mrb[25].mxu0  ;;  %v4357_v30 = vld [vmem:[#allocation2 + $0x90] sm:$0xff]  ;;  %v4358_v32 = vld [vmem:[#allocation2 + $0x98] sm:$0xff] }
 0x36d   : > { %4323 = vst [vmem:[#allocation2 + $0xb3] sm:$0xff] %v4281_v25  ;;  %v4031_v35 = vmax.f32 %v3995_v26, 0.0  ;;  %v3954_v2 = vmul.f32 %v13347_v59, %v3720_v0  ;;  %10207 = vmatprep.mubr.f32.mxu1 %v4357_v30 }
 0x36e   : > { %v4284_v38 = vmul.f32 %v4199_v60, %v4032_v28  ;;  %v3998_v36 = vadd.f32 %v13352_v61, %v3955_v29  ;;  %10208 = vmatmul.mubr.f32.gmra.mrb[18].mxu1 %v4358_v32 }
 0x36f   : > { %v4283_v39 = vmul.f32 %v4194_v63, %v4031_v35  ;;  %v3997_v40 = vadd.f32 %v13352_v61, %v3954_v2  ;;  %v10135_v41 = vpop.f32.mrb[26].mxu0  ;;  %v4239_v12 = vpop.permute.xlu1 %4238 }
 0x370   : > { %4326 = vst [vmem:[#allocation2 + $0xcb] sm:$0xff] %v4284_v38  ;;  %v4034_v13 = vmax.f32 %v3998_v36, 0.0  ;;  %v3957_v42 = vmul.f32 %v10135_v41, %v13347_v59  ;;  %v3730_v43 = vpop.f32.mrb[27].mxu0  ;;  %v4359_v17 = vld [vmem:[#allocation2 + $0xa0] sm:$0xff]  ;;  %v4360_v44 = vld [vmem:[#allocation2 + $0xa8] sm:$0xff] }
 0x371   : > { %4325 = vst [vmem:[#allocation2 + $0xc3] sm:$0xff] %v4283_v39  ;;  %v4033_v45 = vmax.f32 %v3997_v40, 0.0  ;;  %v3956_v46 = vmul.f32 %v13347_v59, %v3730_v43  ;;  %10210 = vmatprep.mubr.f32.mxu1 %v4359_v17 }
 0x372   : > { %v4286_v47 = vmul.f32 %v4209_v54, %v4034_v13  ;;  %v4000_v49 = vadd.f32 %v13352_v61, %v3957_v42  ;;  %10211 = vmatmul.mubr.f32.gmra.mrb[20].mxu1 %v4360_v44 }
 0x373   : > { %v4285_v52 = vmul.f32 %v4204_v57, %v4033_v45  ;;  %v3999_v53 = vadd.f32 %v13352_v61, %v3956_v46  ;;  %v10138_v60 = vpop.f32.mrb[28].mxu0  ;;  %v4234_v57 = vpop.permute.xlu0 %4233 }
 0x374   : > { %4328 = vst [vmem:[#allocation2 + $0xdb] sm:$0xff] %v4286_v47  ;;  %v4036_v31 = vmax.f32 %v4000_v49, 0.0  ;;  %v3959_v63 = vmul.f32 %v10138_v60, %v13347_v59  ;;  %v3740_v1 = vpop.f32.mrb[29].mxu0  ;;  %v4361_v34 = vld [vmem:[#allocation2 + $0xb0] sm:$0xff]  ;;  %v4362_v3 = vld [vmem:[#allocation2 + $0xb8] sm:$0xff]  ;;  %v4249_v0 = vpop.permute.xlu1 %4248 }
 0x375   : > { %4327 = vst [vmem:[#allocation2 + $0xd3] sm:$0xff] %v4285_v52  ;;  %v4035_v55 = vmax.f32 %v3999_v53, 0.0  ;;  %v3958_v4 = vmul.f32 %v13347_v59, %v3740_v1  ;;  %10213 = vmatprep.mubr.f32.mxu1 %v4361_v34  ;;  %v8325_v1 = vld [vmem:[%s14229_s5 + $0x118] sm:$0xff]  ;;  %v4673_v34 = vld [vmem:[#allocation2 + $0x9] sm:$0xff] }
 0x376   : > { %v4288_v5 = vmul.f32 %v4219_v33, %v4036_v31  ;;  %v4002_v56 = vadd.f32 %v13352_v61, %v3959_v63  ;;  %10214 = vmatmul.mubr.f32.gmra.mrb[22].mxu1 %v4362_v3  ;;  %v4672_v31 = vld [vmem:[#allocation2 + $0x1] sm:$0xff]  ;;  %v8324_v63 = vld [vmem:[%s14229_s5 + $0x110] sm:$0xff] }
 0x377   : > { %v4287_v6 = vmul.f32 %v4214_v37, %v4035_v55  ;;  %v4001_v7 = vadd.f32 %v13352_v61, %v3958_v4  ;;  %v10141_v8 = vpop.f32.mrb[30].mxu0  ;;  %v4244_v35 = vpop.permute.xlu0 %4243  ;;  %v11278_v3 = vpack.c.bf16 %v8325_v1, %v8324_v63  ;;  %v8326_v55 = vld [vmem:[%s14229_s5 + $0x120] sm:$0xff]  ;;  %v8327_v4 = vld [vmem:[%s14229_s5 + $0x128] sm:$0xff] }
 0x378   : > { %4330 = vst [vmem:[#allocation2 + $0xeb] sm:$0xff] %v4288_v5  ;;  %v4038_v9 = vmax.f32 %v4002_v56, 0.0  ;;  %v3961_v10 = vmul.f32 %v10141_v8, %v13347_v59  ;;  %v3750_v50 = vpop.f32.mrb[31].mxu0  ;;  %v4363_v11 = vld [vmem:[#allocation2 + $0xc0] sm:$0xff]  ;;  %v4364_v54 = vld [vmem:[#allocation2 + $0xc8] sm:$0xff]  ;;  %v4259_v47 = vpop.permute.xlu1 %4258  ;;  %v4674_v5 = vld [vmem:[#allocation2 + $0x11] sm:$0xff]  ;;  %v11282_v56 = vpack.c.bf16 %v8327_v4, %v8326_v55 }
 0x379   : > { %4329 = vst [vmem:[#allocation2 + $0xe3] sm:$0xff] %v4287_v6  ;;  %v4037_v14 = vmax.f32 %v4001_v7, 0.0  ;;  %v3960_v16 = vmul.f32 %v13347_v59, %v3750_v50  ;;  %10216 = vmatprep.mubr.f32.mxu1 %v4363_v11  ;;  %v4675_v6 = vld [vmem:[#allocation2 + $0x19] sm:$0xff]  ;;  %v8328_v7 = vld [vmem:[%s14229_s5 + $0x130] sm:$0xff]  ;;  %v8331_v11 = vld [vmem:[%s14229_s5 + $0x148] sm:$0xff] }
 0x37a   : > { %v4290_v58 = vmul.f32 %v4229_v51, %v4038_v9  ;;  %v4004_v19 = vadd.f32 %v13352_v61, %v3961_v10  ;;  %10217 = vmatmul.mubr.f32.gmra.mrb[24].mxu1 %v4364_v54  ;;  %v8329_v8 = vld [vmem:[%s14229_s5 + $0x138] sm:$0xff]  ;;  %v4676_v9 = vld [vmem:[#allocation2 + $0x21] sm:$0xff]  ;;  %v4677_v50 = vld [vmem:[#allocation2 + $0x29] sm:$0xff] }
 0x37b   : > { %v13457_v20 = vmul.f32 %v4224_v62, %v4037_v14  ;;  %v4003_v21 = vadd.f32 %v13352_v61, %v3960_v16  ;;  %v10144_v22 = vpop.f32.mrb[32].mxu0  ;;  %v11286_v10 = vpack.c.bf16 %v8329_v8, %v8328_v7  ;;  %v4678_v54 = vld [vmem:[#allocation2 + $0x31] sm:$0xff]  ;;  %v4679_v14 = vld [vmem:[#allocation2 + $0x39] sm:$0xff]  ;;  %v5078_v1 = vld [vmem:[#allocation2 + $0x2] sm:$0xff] }
 0x37c   : > { %4332 = vst [vmem:[#allocation2 + $0xfb] sm:$0xff] %v4290_v58  ;;  %v4040_v23 = vmax.f32 %v4004_v19, 0.0  ;;  %v3963_v15 = vmul.f32 %v10144_v22, %v13347_v59  ;;  %v3760_v24 = vpop.f32.mrb[33].mxu0  ;;  %v4365_v18 = vld [vmem:[#allocation2 + $0xd0] sm:$0xff]  ;;  %v4366_v25 = vld [vmem:[#allocation2 + $0xd8] sm:$0xff]  ;;  %v4680_v58 = vld [vmem:[#allocation2 + $0x41] sm:$0xff] }
 0x37d   : > { %4331 = vst [vmem:[#allocation2 + $0xf3] sm:$0xff] %v13457_v20  ;;  %v4039_v26 = vmax.f32 %v4003_v21, 0.0  ;;  %v3962_v27 = vmul.f32 %v13347_v59, %v3760_v24  ;;  %10219 = vmatprep.mubr.f32.mxu1 %v4365_v18  ;;  %v8332_v16 = vld [vmem:[%s14229_s5 + $0x150] sm:$0xff]  ;;  %v8334_v22 = vld [vmem:[%s14229_s5 + $0x160] sm:$0xff]  ;;  %v8341_v55 = vld [vmem:[%s14229_s5 + $0x198] sm:$0xff] }
 0x37e   : > { %v13463_v28 = vmul.f32 %v4239_v12, %v4040_v23  ;;  %v4006_v29 = vadd.f32 %v13352_v61, %v3963_v15  ;;  %10220 = vmatmul.mubr.f32.gmra.mrb[26].mxu1 %v4366_v25  ;;  %v4681_v21 = vld [vmem:[#allocation2 + $0x49] sm:$0xff]  ;;  %v4682_v15 = vld [vmem:[#allocation2 + $0x51] sm:$0xff]  ;;  %v4683_v18 = vld [vmem:[#allocation2 + $0x59] sm:$0xff] }
 0x37f   : > { %v13466_v30 = vmul.f32 %v4234_v57, %v4039_v26  ;;  %v4005_v32 = vadd.f32 %v13352_v61, %v3962_v27  ;;  %v10147_v33 = vpop.f32.mrb[34].mxu0  ;;  %v8333_v57 = vld [vmem:[%s14229_s5 + $0x158] sm:$0xff]  ;;  %v8335_v23 = vld [vmem:[%s14229_s5 + $0x168] sm:$0xff]  ;;  %v8336_v25 = vld [vmem:[%s14229_s5 + $0x170] sm:$0xff] }
 0x380   : > { %4334 = vst [vmem:[#allocation2 + $0x10b] sm:$0xff] %v13463_v28  ;;  %v4042_v2 = vmax.f32 %v4006_v29, 0.0  ;;  %v3965_v37 = vmul.f32 %v10147_v33, %v13347_v59  ;;  %v3770_v38 = vpop.f32.mrb[35].mxu0  ;;  %v4367_v36 = vld [vmem:[#allocation2 + $0xe0] sm:$0xff]  ;;  %v4368_v39 = vld [vmem:[#allocation2 + $0xe8] sm:$0xff]  ;;  %v11294_v19 = vpack.c.bf16 %v8333_v57, %v8332_v16  ;;  %v11298_v24 = vpack.c.bf16 %v8335_v23, %v8334_v22  ;;  %v8337_v26 = vld [vmem:[%s14229_s5 + $0x178] sm:$0xff] }
 0x381   : > { %4333 = vst [vmem:[#allocation2 + $0x103] sm:$0xff] %v13466_v30  ;;  %v4041_v40 = vmax.f32 %v4005_v32, 0.0  ;;  %v3964_v41 = vmul.f32 %v13347_v59, %v3770_v38  ;;  %10222 = vmatprep.mubr.f32.mxu1 %v4367_v36  ;;  %v4254_v59 = vpop.permute.xlu0 %4253  ;;  %v4684_v27 = vld [vmem:[#allocation2 + $0x61] sm:$0xff]  ;;  %v11302_v29 = vpack.c.bf16 %v8337_v26, %v8336_v25  ;;  %v4689_v36 = vld [vmem:[#allocation2 + $0x89] sm:$0xff]  ;;  %v13548_v7 = vld [vmem:[#allocation2 + $0x12] sm:$0xff] }
 0x382   : > { %v13473_v13 = vmul.f32 %v4249_v0, %v4042_v2  ;;  %v4008_v42 = vadd.f32 %v13352_v61, %v3965_v37  ;;  %10223 = vmatmul.mubr.f32.gmra.mrb[28].mxu1 %v4368_v39  ;;  %v4685_v0 = vld [vmem:[#allocation2 + $0x69] sm:$0xff]  ;;  %v8338_v32 = vld [vmem:[%s14229_s5 + $0x180] sm:$0xff]  ;;  %v4690_v39 = vld [vmem:[#allocation2 + $0x91] sm:$0xff] }
 0x383   : > { %v13476_v43 = vmul.f32 %v4244_v35, %v4041_v40  ;;  %v4007_v17 = vadd.f32 %v13352_v61, %v3964_v41  ;;  %v8339_v33 = vld [vmem:[%s14229_s5 + $0x188] sm:$0xff]  ;;  %v4686_v35 = vld [vmem:[#allocation2 + $0x71] sm:$0xff]  ;;  %v4687_v37 = vld [vmem:[#allocation2 + $0x79] sm:$0xff] }
 0x384   : > { %4336 = vst [vmem:[#allocation2 + $0x11b] sm:$0xff] %v13473_v13  ;;  %v4044_v44 = vmax.f32 %v4008_v42, 0.0  ;;  %v4369_v45 = vld [vmem:[#allocation2 + $0xf0] sm:$0xff]  ;;  %v4370_v46 = vld [vmem:[#allocation2 + $0xf8] sm:$0xff]  ;;  %v11306_v2 = vpack.c.bf16 %v8339_v33, %v8338_v32  ;;  %v4688_v38 = vld [vmem:[#allocation2 + $0x81] sm:$0xff] }
 0x385   : > { %4335 = vst [vmem:[#allocation2 + $0x113] sm:$0xff] %v13476_v43  ;;  %v4043_v49 = vmax.f32 %v4007_v17, 0.0  ;;  %10225 = vmatprep.mubr.f32.mxu1 %v4369_v45  ;;  %v4691_v40 = vld [vmem:[#allocation2 + $0x99] sm:$0xff]  ;;  %v4692_v41 = vld [vmem:[#allocation2 + $0xa1] sm:$0xff]  ;;  %v4693_v42 = vld [vmem:[#allocation2 + $0xa9] sm:$0xff] }
 0x386   : > { %v13481_v51 = vmul.f32 %v4259_v47, %v4044_v44  ;;  %10226 = vmatmul.mubr.f32.gmra.mrb[30].mxu1 %v4370_v46  ;;  %v4694_v17 = vld [vmem:[#allocation2 + $0xb1] sm:$0xff]  ;;  %v4695_v44 = vld [vmem:[#allocation2 + $0xb9] sm:$0xff]  ;;  %v4696_v45 = vld [vmem:[#allocation2 + $0xc1] sm:$0xff] }
 0x387   : > { %v13483_v52 = vmul.f32 %v4254_v59, %v4043_v49  ;;  %v4697_v46 = vld [vmem:[#allocation2 + $0xc9] sm:$0xff]  ;;  %v4698_v47 = vld [vmem:[#allocation2 + $0xd1] sm:$0xff]  ;;  %v4699_v49 = vld [vmem:[#allocation2 + $0xd9] sm:$0xff] }
 0x388   : > { %4338 = vst [vmem:[#allocation2 + $0x12b] sm:$0xff] %v13481_v51  ;;  %v4371_v53 = vld [vmem:[#allocation2 + $0x100] sm:$0xff]  ;;  %v4372_v61 = vld [vmem:[#allocation2 + $0x108] sm:$0xff]  ;;  %v13572_v16 = vld [vmem:[#allocation2 + $0x32] sm:$0xff] }
 0x389   : > { %4337 = vst [vmem:[#allocation2 + $0x123] sm:$0xff] %v13483_v52  ;;  %10228 = vmatprep.mubr.f32.mxu1 %v4371_v53  ;;  %v4700_v59 = vld [vmem:[#allocation2 + $0xe1] sm:$0xff]  ;;  %v4701_v53 = vld [vmem:[#allocation2 + $0xe9] sm:$0xff]  ;;  %v13596_v25 = vld [vmem:[#allocation2 + $0x52] sm:$0xff] }
 0x38a   : > { %10229 = vmatmul.mubr.f32.gmra.mrb[32].mxu1 %v4372_v61  ;;  %v4702_v61 = vld [vmem:[#allocation2 + $0xf1] sm:$0xff]  ;;  %v13584_v22 = vld [vmem:[#allocation2 + $0x42] sm:$0xff] }
 0x38b   : > { %v5079_v4 = vld [vmem:[#allocation2 + $0xa] sm:$0xff]  ;;  %v13608_v32 = vld [vmem:[#allocation2 + $0x62] sm:$0xff] }
 0x38c   : > { %v4373_v60 = vld [vmem:[#allocation2 + $0x110] sm:$0xff]  ;;  %v4374_v62 = vld [vmem:[#allocation2 + $0x118] sm:$0xff] }
 0x38d   : > { %10231 = vmatprep.mubr.f32.mxu1 %v4373_v60  ;;  %v4703_v60 = vld [vmem:[#allocation2 + $0xf9] sm:$0xff]  ;;  %v4706_v63 = vld [vmem:[#allocation2 + $0x111] sm:$0xff] }
 0x38e   : > { %10232 = vmatmul.mubr.f32.gmra.mrb[34].mxu1 %v4374_v62  ;;  %v4704_v62 = vld [vmem:[#allocation2 + $0x101] sm:$0xff] }
 0x38f   : > { %10266 = vmatprep.mubr.f32.mxu1 %v4672_v31  ;;  %v4705_v31 = vld [vmem:[#allocation2 + $0x109] sm:$0xff] }
 0x392   : > { %10267 = vmatmul.mubr.f32.vlgmr.msra.gmra.mrb[0].mxu1 %v4673_v34  ;;  %v4707_v34 = vld [vmem:[#allocation2 + $0x119] sm:$0xff] }
 0x393   : > { %10269 = vmatprep.mubr.f32.mxu1 %v4674_v5  ;;  %11277 = vmatpush3.bf16.msra.mxu1 %v13333_v48  ;;  %v8330_v48 = vld [vmem:[%s14229_s5 + $0x140] sm:$0xff] }
 0x394   : > { %11279 = vmatprep.subr.bf16.mxu1 %v11278_v3  ;;  %v11290_v12 = vpack.c.bf16 %v8331_v11, %v8330_v48  ;;  %v13560_v48 = vld [vmem:[#allocation2 + $0x22] sm:$0xff] }
 0x396   : > { %10270 = vmatmul.mubr.f32.gmra.mrb[2].mxu1 %v4675_v6  ;;  %v8343_v6 = vld [vmem:[%s14229_s5 + $0x1a8] sm:$0xff] }
 0x397   : > { %10272 = vmatprep.mubr.f32.mxu1 %v4676_v9  ;;  %11281 = vmatpush3.bf16.msra.mxu1 %v11278_v3  ;;  %v8340_v3 = vld [vmem:[%s14229_s5 + $0x190] sm:$0xff]  ;;  %v13551_v9 = vld [vmem:[#allocation2 + $0x1a] sm:$0xff] }
 0x398   : > { %11283 = vmatprep.subr.bf16.mxu1 %v11282_v56  ;;  %v11310_v5 = vpack.c.bf16 %v8341_v55, %v8340_v3  ;;  %v13680_v3 = vld [vmem:[#allocation2 + $0x112] sm:$0xff]  ;;  %v13683_v55 = vld [vmem:[#allocation2 + $0x11a] sm:$0xff] }
 0x39a   : > { %10273 = vmatmul.mubr.f32.gmra.mrb[4].mxu1 %v4677_v50  ;;  %v8345_v50 = vld [vmem:[%s14229_s5 + $0x1b8] sm:$0xff] }
 0x39b   : > { %10275 = vmatprep.mubr.f32.mxu1 %v4678_v54  ;;  %11285 = vmatpush3.bf16.msra.mxu1 %v11282_v56  ;;  %v8342_v56 = vld [vmem:[%s14229_s5 + $0x1a0] sm:$0xff]  ;;  %v13563_v54 = vld [vmem:[#allocation2 + $0x2a] sm:$0xff] }
 0x39c   : > { %11287 = vmatprep.subr.bf16.mxu1 %v11286_v10  ;;  %v11314_v8 = vpack.c.bf16 %v8343_v6, %v8342_v56  ;;  %v8358_v6 = vld [vmem:[%s14229_s5 + $0x220] sm:$0xff] }
 0x39e   : > { %10276 = vmatmul.mubr.f32.gmra.mrb[6].mxu1 %v4679_v14  ;;  %v8347_v14 = vld [vmem:[%s14229_s5 + $0x1c8] sm:$0xff] }
 0x39f   : > { %10278 = vmatprep.mubr.f32.mxu1 %v4680_v58  ;;  %11289 = vmatpush3.bf16.msra.mxu1 %v11286_v10  ;;  %v8344_v10 = vld [vmem:[%s14229_s5 + $0x1b0] sm:$0xff]  ;;  %v13575_v58 = vld [vmem:[#allocation2 + $0x3a] sm:$0xff] }
 0x3a0   : > { %11291 = vmatprep.subr.bf16.mxu1 %v11290_v12  ;;  %v11318_v11 = vpack.c.bf16 %v8345_v50, %v8344_v10  ;;  %v8361_v50 = vld [vmem:[%s14229_s5 + $0x238] sm:$0xff] }
 0x3a2   : > { %10279 = vmatmul.mubr.f32.gmra.mrb[8].mxu1 %v4681_v21  ;;  %v8349_v21 = vld [vmem:[%s14229_s5 + $0x1d8] sm:$0xff] }
 0x3a3   : > { %10281 = vmatprep.mubr.f32.mxu1 %v4682_v15  ;;  %11293 = vmatpush3.bf16.msra.mxu1 %v11290_v12  ;;  %v8346_v12 = vld [vmem:[%s14229_s5 + $0x1c0] sm:$0xff]  ;;  %v13587_v15 = vld [vmem:[#allocation2 + $0x4a] sm:$0xff] }
 0x3a4   : > { %11295 = vmatprep.subr.bf16.mxu1 %v11294_v19  ;;  %v11322_v57 = vpack.c.bf16 %v8347_v14, %v8346_v12  ;;  %v8364_v12 = vld [vmem:[%s14229_s5 + $0x250] sm:$0xff]  ;;  %v8365_v14 = vld [vmem:[%s14229_s5 + $0x258] sm:$0xff] }
 0x3a6   : > { %10282 = vmatmul.mubr.f32.gmra.mrb[10].mxu1 %v4683_v18  ;;  %v8351_v18 = vld [vmem:[%s14229_s5 + $0x1e8] sm:$0xff] }
 0x3a7   : > { %10284 = vmatprep.mubr.f32.mxu1 %v4684_v27  ;;  %11297 = vmatpush3.bf16.msra.mxu1 %v11294_v19  ;;  %v8348_v19 = vld [vmem:[%s14229_s5 + $0x1d0] sm:$0xff]  ;;  %v13599_v27 = vld [vmem:[#allocation2 + $0x5a] sm:$0xff] }
 0x3a8   : > { %11299 = vmatprep.subr.bf16.mxu1 %v11298_v24  ;;  %v11326_v23 = vpack.c.bf16 %v8349_v21, %v8348_v19  ;;  %v8368_v21 = vld [vmem:[%s14229_s5 + $0x270] sm:$0xff] }
 0x3aa   : > { %10285 = vmatmul.mubr.f32.gmra.mrb[12].mxu1 %v4685_v0  ;;  %v8353_v0 = vld [vmem:[%s14229_s5 + $0x1f8] sm:$0xff] }
 0x3ab   : > { %10287 = vmatprep.mubr.f32.mxu1 %v4686_v35  ;;  %11301 = vmatpush3.bf16.msra.mxu1 %v11298_v24  ;;  %v8350_v24 = vld [vmem:[%s14229_s5 + $0x1e0] sm:$0xff]  ;;  %v13611_v35 = vld [vmem:[#allocation2 + $0x6a] sm:$0xff] }
 0x3ac   : > { %11303 = vmatprep.subr.bf16.mxu1 %v11302_v29  ;;  %v11330_v26 = vpack.c.bf16 %v8351_v18, %v8350_v24  ;;  %v8371_v24 = vld [vmem:[%s14229_s5 + $0x288] sm:$0xff] }
 0x3ae   : > { %10288 = vmatmul.mubr.f32.gmra.mrb[14].mxu1 %v4687_v37  ;;  %v8355_v37 = vld [vmem:[%s14229_s5 + $0x208] sm:$0xff] }
 0x3af   : > { %10290 = vmatprep.mubr.f32.mxu1 %v4688_v38  ;;  %11305 = vmatpush3.bf16.msra.mxu1 %v11302_v29  ;;  %v8352_v29 = vld [vmem:[%s14229_s5 + $0x1f0] sm:$0xff] }
 0x3b0   : > { %11307 = vmatprep.subr.bf16.mxu1 %v11306_v2  ;;  %v11334_v33 = vpack.c.bf16 %v8353_v0, %v8352_v29  ;;  %v13620_v38 = vld [vmem:[#allocation2 + $0x72] sm:$0xff] }
 0x3b1   : > { %v8373_v29 = vld [vmem:[%s14229_s5 + $0x298] sm:$0xff] }
 0x3b2   : > { %10291 = vmatmul.mubr.f32.gmra.mrb[16].mxu1 %v4689_v36  ;;  %v5890_v0 = vld [vmem:[#allocation2 + $0x13] sm:$0xff] }
 0x3b3   : > { %10293 = vmatprep.mubr.f32.mxu1 %v4690_v39  ;;  %v13623_v39 = vld [vmem:[#allocation2 + $0x7a] sm:$0xff] }
 0x3b6   : > { %10294 = vmatmul.mubr.f32.gmra.mrb[18].mxu1 %v4691_v40  ;;  %v13626_v40 = vld [vmem:[#allocation2 + $0x82] sm:$0xff] }
 0x3b7   : > { %10296 = vmatprep.mubr.f32.mxu1 %v4692_v41  ;;  %v13629_v41 = vld [vmem:[#allocation2 + $0x8a] sm:$0xff] }
 0x3ba   : > { %10297 = vmatmul.mubr.f32.gmra.mrb[20].mxu1 %v4693_v42  ;;  %v13632_v42 = vld [vmem:[#allocation2 + $0x92] sm:$0xff] }
 0x3bb   : > { %10299 = vmatprep.mubr.f32.mxu1 %v4694_v17  ;;  %v13635_v17 = vld [vmem:[#allocation2 + $0x9a] sm:$0xff] }
 0x3be   : > { %10300 = vmatmul.mubr.f32.gmra.mrb[22].mxu1 %v4695_v44  ;;  %v13638_v44 = vld [vmem:[#allocation2 + $0xa2] sm:$0xff] }
 0x3bf   : > { %10302 = vmatprep.mubr.f32.mxu1 %v4696_v45  ;;  %v13641_v45 = vld [vmem:[#allocation2 + $0xaa] sm:$0xff] }
 0x3c2   : > { %10303 = vmatmul.mubr.f32.gmra.mrb[24].mxu1 %v4697_v46  ;;  %v13644_v46 = vld [vmem:[#allocation2 + $0xb2] sm:$0xff] }
 0x3c3   : > { %10305 = vmatprep.mubr.f32.mxu1 %v4698_v47  ;;  %v13647_v47 = vld [vmem:[#allocation2 + $0xba] sm:$0xff] }
 0x3c6   : > { %10306 = vmatmul.mubr.f32.gmra.mrb[26].mxu1 %v4699_v49  ;;  %v13650_v49 = vld [vmem:[#allocation2 + $0xc2] sm:$0xff] }
 0x3c7   : > { %10308 = vmatprep.mubr.f32.mxu1 %v4700_v59  ;;  %v13653_v59 = vld [vmem:[#allocation2 + $0xca] sm:$0xff] }
 0x3ca   : > { %10309 = vmatmul.mubr.f32.gmra.mrb[28].mxu1 %v4701_v53  ;;  %v13656_v53 = vld [vmem:[#allocation2 + $0xd2] sm:$0xff] }
 0x3cb   : > { %10311 = vmatprep.mubr.f32.mxu1 %v4702_v61  ;;  %v13659_v61 = vld [vmem:[#allocation2 + $0xda] sm:$0xff] }
 0x3ce   : > { %10312 = vmatmul.mubr.f32.gmra.mrb[30].mxu1 %v4703_v60  ;;  %v13662_v60 = vld [vmem:[#allocation2 + $0xe2] sm:$0xff] }
 0x3cf   : > { %10314 = vmatprep.mubr.f32.mxu1 %v4704_v62  ;;  %v13665_v62 = vld [vmem:[#allocation2 + $0xea] sm:$0xff] }
 0x3d2   : > { %10315 = vmatmul.mubr.f32.gmra.mrb[32].mxu1 %v4705_v31  ;;  %v13668_v31 = vld [vmem:[#allocation2 + $0xf2] sm:$0xff] }
 0x3d3   : > { %10317 = vmatprep.mubr.f32.mxu1 %v4706_v63  ;;  %v13671_v63 = vld [vmem:[#allocation2 + $0xfa] sm:$0xff] }
 0x3d6   : > { %10318 = vmatmul.mubr.f32.gmra.mrb[34].mxu1 %v4707_v34  ;;  %v13677_v34 = vld [vmem:[#allocation2 + $0x10a] sm:$0xff] }
 0x3d7   : > { %10352 = vmatprep.mubr.f32.mxu1 %v5078_v1  ;;  %v13674_v1 = vld [vmem:[#allocation2 + $0x102] sm:$0xff] }
 0x3da   : > { %10353 = vmatmul.mubr.f32.vlgmr.msra.gmra.mrb[0].mxu1 %v5079_v4  ;;  %v8356_v4 = vld [vmem:[%s14229_s5 + $0x210] sm:$0xff] }
 0x3db   : > { %10355 = vmatprep.mubr.f32.mxu1 %v13548_v7  ;;  %11309 = vmatpush3.bf16.msra.mxu1 %v11306_v2  ;;  %v8354_v2 = vld [vmem:[%s14229_s5 + $0x200] sm:$0xff] }
 0x3dc   : > { %11311 = vmatprep.subr.bf16.mxu1 %v11310_v5  ;;  %v11338_v36 = vpack.c.bf16 %v8355_v37, %v8354_v2  ;;  %v8375_v2 = vld [vmem:[%s14229_s5 + $0x2a8] sm:$0xff] }
 0x3dd   : > { %v5892_v37 = vld [vmem:[#allocation2 + $0x23] sm:$0xff] }
 0x3de   : > { %10356 = vmatmul.mubr.f32.gmra.mrb[2].mxu1 %v13551_v9 }
 0x3df   : > { %10358 = vmatprep.mubr.f32.mxu1 %v13560_v48  ;;  %11313 = vmatpush3.bf16.msra.mxu1 %v11310_v5  ;;  %v8357_v5 = vld [vmem:[%s14229_s5 + $0x218] sm:$0xff] }
 0x3e0   : > { %11315 = vmatprep.subr.bf16.mxu1 %v11314_v8  ;;  %v11342_v56 = vpack.c.bf16 %v8357_v5, %v8356_v4  ;;  %v8385_v4 = vld [vmem:[%s14229_s5 + $0x2f8] sm:$0xff] }
 0x3e1   : > { %v5902_v5 = vld [vmem:[#allocation2 + $0x73] sm:$0xff] }
 0x3e2   : > { %10359 = vmatmul.mubr.f32.gmra.mrb[4].mxu1 %v13563_v54 }
 0x3e3   : > { %10361 = vmatprep.mubr.f32.mxu1 %v13572_v16  ;;  %11317 = vmatpush3.bf16.msra.mxu1 %v11314_v8  ;;  %v8359_v8 = vld [vmem:[%s14229_s5 + $0x228] sm:$0xff] }
 0x3e4   : > { %11319 = vmatprep.subr.bf16.mxu1 %v11318_v11  ;;  %v11346_v10 = vpack.c.bf16 %v8359_v8, %v8358_v6  ;;  %v5903_v6 = vld [vmem:[#allocation2 + $0x7b] sm:$0xff] }
 0x3e5   : > { %v8386_v8 = vld [vmem:[%s14229_s5 + $0x300] sm:$0xff] }
 0x3e6   : > { %10362 = vmatmul.mubr.f32.gmra.mrb[6].mxu1 %v13575_v58 }
 0x3e7   : > { %10364 = vmatprep.mubr.f32.mxu1 %v13584_v22  ;;  %11321 = vmatpush3.bf16.msra.mxu1 %v11318_v11  ;;  %v8363_v11 = vld [vmem:[%s14229_s5 + $0x248] sm:$0xff] }
 0x3e8   : > { %11323 = vmatprep.subr.bf16.mxu1 %v11322_v57 }
 0x3ea   : > { %10365 = vmatmul.mubr.f32.gmra.mrb[8].mxu1 %v13587_v15 }
 0x3eb   : > { %10367 = vmatprep.mubr.f32.mxu1 %v13596_v25  ;;  %11325 = vmatpush3.bf16.msra.mxu1 %v11322_v57  ;;  %v8366_v57 = vld [vmem:[%s14229_s5 + $0x260] sm:$0xff] }
 0x3ec   : > { %11327 = vmatprep.subr.bf16.mxu1 %v11326_v23 }
 0x3ee   : > { %10368 = vmatmul.mubr.f32.gmra.mrb[10].mxu1 %v13599_v27 }
 0x3ef   : > { %10370 = vmatprep.mubr.f32.mxu1 %v13608_v32  ;;  %11329 = vmatpush3.bf16.msra.mxu1 %v11326_v23 }
 0x3f0   : > { %11331 = vmatprep.subr.bf16.mxu1 %v11330_v26 }
 0x3f2   : > { %10371 = vmatmul.mubr.f32.gmra.mrb[12].mxu1 %v13611_v35 }
 0x3f3   : > { %10373 = vmatprep.mubr.f32.mxu1 %v13620_v38  ;;  %11333 = vmatpush3.bf16.msra.mxu1 %v11330_v26  ;;  %v5519_v26 = vld [vmem:[#allocation2 + $0x12a] sm:$0xff] }
 0x3f4   : > { %11335 = vmatprep.subr.bf16.mxu1 %v11334_v33 }
 0x3f6   : > { %10374 = vmatmul.mubr.f32.gmra.mrb[14].mxu1 %v13623_v39 }
 0x3f7   : > { %10376 = vmatprep.mubr.f32.mxu1 %v13626_v40  ;;  %11337 = vmatpush3.bf16.msra.mxu1 %v11334_v33  ;;  %v5891_v33 = vld [vmem:[#allocation2 + $0x1b] sm:$0xff] }
 0x3f8   : > { %11339 = vmatprep.subr.bf16.mxu1 %v11338_v36 }
 0x3fa   : > { %10377 = vmatmul.mubr.f32.gmra.mrb[16].mxu1 %v13629_v41 }
 0x3fb   : > { %10379 = vmatprep.mubr.f32.mxu1 %v13632_v42 }
 0x3fe   : > { %10380 = vmatmul.mubr.f32.gmra.mrb[18].mxu1 %v13635_v17 }
 0x3ff   : > { %10382 = vmatprep.mubr.f32.mxu1 %v13638_v44 }
 0x402   : > { %10383 = vmatmul.mubr.f32.gmra.mrb[20].mxu1 %v13641_v45 }
 0x403   : > { %10385 = vmatprep.mubr.f32.mxu1 %v13644_v46 }
 0x406   : > { %10386 = vmatmul.mubr.f32.gmra.mrb[22].mxu1 %v13647_v47 }
 0x407   : > { %10388 = vmatprep.mubr.f32.mxu1 %v13650_v49 }
 0x40a   : > { %10389 = vmatmul.mubr.f32.gmra.mrb[24].mxu1 %v13653_v59 }
 0x40b   : > { %10391 = vmatprep.mubr.f32.mxu1 %v13656_v53 }
 0x40e   : > { %10392 = vmatmul.mubr.f32.gmra.mrb[26].mxu1 %v13659_v61 }
 0x40f   : > { %10394 = vmatprep.mubr.f32.mxu1 %v13662_v60 }
 0x412   : > { %10395 = vmatmul.mubr.f32.gmra.mrb[28].mxu1 %v13665_v62 }
 0x413   : > { %10397 = vmatprep.mubr.f32.mxu1 %v13668_v31 }
 0x416   : > { %10398 = vmatmul.mubr.f32.gmra.mrb[30].mxu1 %v13671_v63 }
 0x417   : > { %10400 = vmatprep.mubr.f32.mxu1 %v13674_v1 }
 0x41a   : > { %10401 = vmatmul.mubr.f32.gmra.mrb[32].mxu1 %v13677_v34 }
 0x41b   : > { %10403 = vmatprep.mubr.f32.mxu1 %v13680_v3 }
 0x41e   : > { %10404 = vmatmul.mubr.f32.gmra.mrb[34].mxu1 %v13683_v55 }
 0x41f   : > { %10438 = vmatprep.mubr.f32.mxu1 %v13548_v7  ;;  %v8360_v7 = vld [vmem:[%s14229_s5 + $0x230] sm:$0xff] }
 0x422   : > { %10439 = vmatmul.mubr.f32.vlgmr.msra.gmra.mrb[0].mxu1 %v13551_v9  ;;  %v11350_v9 = vpack.c.bf16 %v8361_v50, %v8360_v7  ;;  %v5904_v7 = vld [vmem:[#allocation2 + $0x83] sm:$0xff] }
 0x423   : > { %10441 = vmatprep.mubr.f32.mxu1 %v13560_v48  ;;  %11341 = vmatpush3.bf16.msra.mxu1 %v11338_v36  ;;  %v8362_v48 = vld [vmem:[%s14229_s5 + $0x240] sm:$0xff]  ;;  %v5893_v36 = vld [vmem:[#allocation2 + $0x2b] sm:$0xff] }
 0x424   : > { %11343 = vmatprep.subr.bf16.mxu1 %v11342_v56 }
 0x426   : > { %10442 = vmatmul.mubr.f32.gmra.mrb[2].mxu1 %v13563_v54  ;;  %v11354_v54 = vpack.c.bf16 %v8363_v11, %v8362_v48  ;;  %v5906_v48 = vld [vmem:[#allocation2 + $0x93] sm:$0xff]  ;;  %v5907_v11 = vld [vmem:[#allocation2 + $0x9b] sm:$0xff] }
 0x427   : > { %10444 = vmatprep.mubr.f32.mxu1 %v13572_v16  ;;  %11345 = vmatpush3.bf16.msra.mxu1 %v11342_v56  ;;  %v11358_v16 = vpack.c.bf16 %v8365_v14, %v8364_v12  ;;  %v5909_v12 = vld [vmem:[#allocation2 + $0xab] sm:$0xff]  ;;  %v5910_v14 = vld [vmem:[#allocation2 + $0xb3] sm:$0xff] }
 0x428   : > { %11347 = vmatprep.subr.bf16.mxu1 %v11346_v10 }
 0x42a   : > { %10445 = vmatmul.mubr.f32.gmra.mrb[4].mxu1 %v13575_v58  ;;  %v8367_v58 = vld [vmem:[%s14229_s5 + $0x268] sm:$0xff] }
 0x42b   : > { %10447 = vmatprep.mubr.f32.mxu1 %v13584_v22  ;;  %11349 = vmatpush3.bf16.msra.mxu1 %v11346_v10  ;;  %v11362_v19 = vpack.c.bf16 %v8367_v58, %v8366_v57  ;;  %v8369_v22 = vld [vmem:[%s14229_s5 + $0x278] sm:$0xff]  ;;  %v8387_v10 = vld [vmem:[%s14229_s5 + $0x308] sm:$0xff] }
 0x42c   : > { %11351 = vmatprep.subr.bf16.mxu1 %v11350_v9  ;;  %v11366_v23 = vpack.c.bf16 %v8369_v22, %v8368_v21  ;;  %v11402_v50 = vpack.c.bf16 %v8387_v10, %v8386_v8  ;;  %v5912_v57 = vld [vmem:[#allocation2 + $0xc3] sm:$0xff]  ;;  %v5913_v58 = vld [vmem:[#allocation2 + $0xcb] sm:$0xff]  ;;  %v5915_v21 = vld [vmem:[#allocation2 + $0xdb] sm:$0xff] }
 0x42d   : > { %v5916_v22 = vld [vmem:[#allocation2 + $0xe3] sm:$0xff]  ;;  %v13934_v10 = vld [vmem:[#allocation2 + $0xcc] sm:$0xff] }
 0x42e   : > { %10448 = vmatmul.mubr.f32.gmra.mrb[6].mxu1 %v13587_v15  ;;  %v8370_v15 = vld [vmem:[%s14229_s5 + $0x280] sm:$0xff] }
 0x42f   : > { %10450 = vmatprep.mubr.f32.mxu1 %v13596_v25  ;;  %11353 = vmatpush3.bf16.msra.mxu1 %v11350_v9  ;;  %v11370_v18 = vpack.c.bf16 %v8371_v24, %v8370_v15  ;;  %v5518_v25 = vld [vmem:[#allocation2 + $0x122] sm:$0xff]  ;;  %v5905_v9 = vld [vmem:[#allocation2 + $0x8b] sm:$0xff] }
 0x430   : > { %11355 = vmatprep.subr.bf16.mxu1 %v11354_v54  ;;  %v5919_v15 = vld [vmem:[#allocation2 + $0xfb] sm:$0xff]  ;;  %v8388_v24 = vld [vmem:[%s14229_s5 + $0x310] sm:$0xff]  ;;  %v13931_v8 = vld [vmem:[#allocation2 + $0xc4] sm:$0xff] }
 0x432   : > { %10451 = vmatmul.mubr.f32.gmra.mrb[8].mxu1 %v13599_v27  ;;  %v8372_v27 = vld [vmem:[%s14229_s5 + $0x290] sm:$0xff] }
 0x433   : > { %10453 = vmatprep.mubr.f32.mxu1 %v13608_v32  ;;  %11357 = vmatpush3.bf16.msra.mxu1 %v11354_v54  ;;  %v11374_v32 = vpack.c.bf16 %v8373_v29, %v8372_v27  ;;  %v5908_v54 = vld [vmem:[#allocation2 + $0xa3] sm:$0xff]  ;;  %v8393_v27 = vld [vmem:[%s14229_s5 + $0x338] sm:$0xff] }
 0x434   : > { %11359 = vmatprep.subr.bf16.mxu1 %v11358_v16  ;;  %v13847_v29 = vld [vmem:[#allocation2 + $0x34] sm:$0xff] }
 0x436   : > { %10454 = vmatmul.mubr.f32.gmra.mrb[10].mxu1 %v13611_v35  ;;  %v8374_v35 = vld [vmem:[%s14229_s5 + $0x2a0] sm:$0xff] }
 0x437   : > { %10456 = vmatprep.mubr.f32.mxu1 %v13620_v38  ;;  %11361 = vmatpush3.bf16.msra.mxu1 %v11358_v16  ;;  %v11378_v38 = vpack.c.bf16 %v8375_v2, %v8374_v35  ;;  %v5911_v16 = vld [vmem:[#allocation2 + $0xbb] sm:$0xff]  ;;  %v8395_v35 = vld [vmem:[%s14229_s5 + $0x348] sm:$0xff] }
 0x438   : > { %11363 = vmatprep.subr.bf16.mxu1 %v11362_v19  ;;  %v13859_v2 = vld [vmem:[#allocation2 + $0x44] sm:$0xff] }
 0x43a   : > { %10457 = vmatmul.mubr.f32.gmra.mrb[12].mxu1 %v13623_v39  ;;  %v8376_v39 = vld [vmem:[%s14229_s5 + $0x2b0] sm:$0xff] }
 0x43b   : > { %10459 = vmatprep.mubr.f32.mxu1 %v13626_v40  ;;  %11365 = vmatpush3.bf16.msra.mxu1 %v11362_v19  ;;  %v8377_v40 = vld [vmem:[%s14229_s5 + $0x2b8] sm:$0xff] }
 0x43c   : > { %11367 = vmatprep.subr.bf16.mxu1 %v11366_v23  ;;  %v5914_v19 = vld [vmem:[#allocation2 + $0xd3] sm:$0xff] }
 0x43e   : > { %10460 = vmatmul.mubr.f32.gmra.mrb[14].mxu1 %v13629_v41  ;;  %v5894_v41 = vld [vmem:[#allocation2 + $0x33] sm:$0xff] }
 0x43f   : > { %10462 = vmatprep.mubr.f32.mxu1 %v13632_v42  ;;  %11369 = vmatpush3.bf16.msra.mxu1 %v11366_v23  ;;  %v11382_v42 = vpack.c.bf16 %v8377_v40, %v8376_v39  ;;  %v5917_v23 = vld [vmem:[#allocation2 + $0xeb] sm:$0xff]  ;;  %v8397_v39 = vld [vmem:[%s14229_s5 + $0x358] sm:$0xff] }
 0x440   : > { %11371 = vmatprep.subr.bf16.mxu1 %v11370_v18  ;;  %v13871_v40 = vld [vmem:[#allocation2 + $0x54] sm:$0xff] }
 0x442   : > { %10463 = vmatmul.mubr.f32.gmra.mrb[16].mxu1 %v13635_v17  ;;  %v5895_v17 = vld [vmem:[#allocation2 + $0x3b] sm:$0xff] }
 0x443   : > { %10465 = vmatprep.mubr.f32.mxu1 %v13638_v44  ;;  %v8378_v44 = vld [vmem:[%s14229_s5 + $0x2c0] sm:$0xff] }
 0x446   : > { %10466 = vmatmul.mubr.f32.gmra.mrb[18].mxu1 %v13641_v45  ;;  %v8379_v45 = vld [vmem:[%s14229_s5 + $0x2c8] sm:$0xff] }
 0x447   : > { %10468 = vmatprep.mubr.f32.mxu1 %v13644_v46  ;;  %v5896_v46 = vld [vmem:[#allocation2 + $0x43] sm:$0xff] }
 0x44a   : > { %10469 = vmatmul.mubr.f32.gmra.mrb[20].mxu1 %v13647_v47  ;;  %v11386_v47 = vpack.c.bf16 %v8379_v45, %v8378_v44  ;;  %v8399_v44 = vld [vmem:[%s14229_s5 + $0x368] sm:$0xff] }
 0x44b   : > { %10471 = vmatprep.mubr.f32.mxu1 %v13650_v49  ;;  %v5897_v49 = vld [vmem:[#allocation2 + $0x4b] sm:$0xff] }
 0x44c   : > { %v13883_v45 = vld [vmem:[#allocation2 + $0x64] sm:$0xff] }
 0x44e   : > { %10472 = vmatmul.mubr.f32.gmra.mrb[22].mxu1 %v13653_v59  ;;  %v8380_v59 = vld [vmem:[%s14229_s5 + $0x2d0] sm:$0xff] }
 0x44f   : > { %10474 = vmatprep.mubr.f32.mxu1 %v13656_v53  ;;  %v8381_v53 = vld [vmem:[%s14229_s5 + $0x2d8] sm:$0xff] }
 0x452   : > { %10475 = vmatmul.mubr.f32.gmra.mrb[24].mxu1 %v13659_v61  ;;  %v5898_v61 = vld [vmem:[#allocation2 + $0x53] sm:$0xff] }
 0x453   : > { %10477 = vmatprep.mubr.f32.mxu1 %v13662_v60  ;;  %v11390_v60 = vpack.c.bf16 %v8381_v53, %v8380_v59  ;;  %v8401_v59 = vld [vmem:[%s14229_s5 + $0x378] sm:$0xff] }
 0x454   : > { %v13895_v53 = vld [vmem:[#allocation2 + $0x74] sm:$0xff] }
 0x456   : > { %10478 = vmatmul.mubr.f32.gmra.mrb[26].mxu1 %v13665_v62  ;;  %v5899_v62 = vld [vmem:[#allocation2 + $0x5b] sm:$0xff] }
 0x457   : > { %10480 = vmatprep.mubr.f32.mxu1 %v13668_v31  ;;  %v8382_v31 = vld [vmem:[%s14229_s5 + $0x2e0] sm:$0xff] }
 0x45a   : > { %10481 = vmatmul.mubr.f32.gmra.mrb[28].mxu1 %v13671_v63  ;;  %v8383_v63 = vld [vmem:[%s14229_s5 + $0x2e8] sm:$0xff] }
 0x45b   : > { %10483 = vmatprep.mubr.f32.mxu1 %v13674_v1  ;;  %v5900_v1 = vld [vmem:[#allocation2 + $0x63] sm:$0xff] }
 0x45e   : > { %10484 = vmatmul.mubr.f32.gmra.mrb[30].mxu1 %v13677_v34  ;;  %v11394_v34 = vpack.c.bf16 %v8383_v63, %v8382_v31  ;;  %v8403_v31 = vld [vmem:[%s14229_s5 + $0x388] sm:$0xff] }
 0x45f   : > { %10486 = vmatprep.mubr.f32.mxu1 %v13680_v3  ;;  %v5901_v3 = vld [vmem:[#allocation2 + $0x6b] sm:$0xff] }
 0x460   : > { %v13907_v63 = vld [vmem:[#allocation2 + $0x84] sm:$0xff] }
 0x462   : > { %10487 = vmatmul.mubr.f32.gmra.mrb[32].mxu1 %v13683_v55  ;;  %v8384_v55 = vld [vmem:[%s14229_s5 + $0x2f0] sm:$0xff] }
 0x463   : > { %10489 = vmatprep.mubr.f32.mxu1 %v5518_v25  ;;  %v11398_v56 = vpack.c.bf16 %v8385_v4, %v8384_v55  ;;  %v13838_v25 = vld [vmem:[#allocation2 + $0x2c] sm:$0xff]  ;;  %v13916_v55 = vld [vmem:[#allocation2 + $0x9c] sm:$0xff]  ;;  %v13919_v4 = vld [vmem:[#allocation2 + $0xa4] sm:$0xff] }
 0x466   : > { %10490 = vmatmul.mubr.f32.gmra.mrb[34].mxu1 %v5519_v26  ;;  %v8392_v26 = vld [vmem:[%s14229_s5 + $0x330] sm:$0xff] }
 0x467   : > { %10524 = vmatprep.mubr.f32.mxu1 %v5890_v0  ;;  %v11414_v0 = vpack.c.bf16 %v8393_v27, %v8392_v26  ;;  %v8414_v27 = vld [vmem:[%s14229_s5 + $0x3e0] sm:$0xff] }
 0x46a   : > { %10525 = vmatmul.mubr.f32.vlgmr.msra.gmra.mrb[0].mxu1 %v5891_v33  ;;  %v8394_v33 = vld [vmem:[%s14229_s5 + $0x340] sm:$0xff] }
 0x46b   : > { %10527 = vmatprep.mubr.f32.mxu1 %v5892_v37  ;;  %11373 = vmatpush3.bf16.msra.mxu1 %v11370_v18  ;;  %v6296_v18 = vld [vmem:[#allocation2 + $0x14] sm:$0xff]  ;;  %v11418_v37 = vpack.c.bf16 %v8395_v35, %v8394_v33 }
 0x46c   : > { %11375 = vmatprep.subr.bf16.mxu1 %v11374_v32  ;;  %v8417_v33 = vld [vmem:[%s14229_s5 + $0x3f8] sm:$0xff] }
 0x46e   : > { %10528 = vmatmul.mubr.f32.gmra.mrb[2].mxu1 %v5893_v36  ;;  %v8396_v36 = vld [vmem:[%s14229_s5 + $0x350] sm:$0xff] }
 0x46f   : > { %10530 = vmatprep.mubr.f32.mxu1 %v5894_v41  ;;  %11377 = vmatpush3.bf16.msra.mxu1 %v11374_v32  ;;  %v13850_v32 = vld [vmem:[#allocation2 + $0x3c] sm:$0xff]  ;;  %v11422_v41 = vpack.c.bf16 %v8397_v39, %v8396_v36  ;;  %v6736_v36 = vld [vmem:[#allocation2 + $0x134] sm:$0xff] }
 0x470   : > { %11379 = vmatprep.subr.bf16.mxu1 %v11378_v38  ;;  %v6737_v39 = vld [vmem:[#allocation2 + $0x13c] sm:$0xff] }
 0x472   : > { %10531 = vmatmul.mubr.f32.gmra.mrb[4].mxu1 %v5895_v17  ;;  %v8398_v17 = vld [vmem:[%s14229_s5 + $0x360] sm:$0xff] }
 0x473   : > { %10533 = vmatprep.mubr.f32.mxu1 %v5896_v46  ;;  %11381 = vmatpush3.bf16.msra.mxu1 %v11378_v38  ;;  %v13862_v38 = vld [vmem:[#allocation2 + $0x4c] sm:$0xff]  ;;  %v11426_v46 = vpack.c.bf16 %v8399_v44, %v8398_v17 }
 0x474   : > { %11383 = vmatprep.subr.bf16.mxu1 %v11382_v42  ;;  %v7109_v44 = vld [vmem:[#allocation2 + $0x2d] sm:$0xff] }
 0x476   : > { %10534 = vmatmul.mubr.f32.gmra.mrb[6].mxu1 %v5897_v49  ;;  %v8400_v49 = vld [vmem:[%s14229_s5 + $0x370] sm:$0xff] }
 0x477   : > { %10536 = vmatprep.mubr.f32.mxu1 %v5898_v61  ;;  %11385 = vmatpush3.bf16.msra.mxu1 %v11382_v42  ;;  %v13874_v42 = vld [vmem:[#allocation2 + $0x5c] sm:$0xff]  ;;  %v11430_v61 = vpack.c.bf16 %v8401_v59, %v8400_v49 }
 0x478   : > { %11387 = vmatprep.subr.bf16.mxu1 %v11386_v47  ;;  %v7111_v59 = vld [vmem:[#allocation2 + $0x3d] sm:$0xff] }
 0x47a   : > { %10537 = vmatmul.mubr.f32.gmra.mrb[8].mxu1 %v5899_v62  ;;  %v8402_v62 = vld [vmem:[%s14229_s5 + $0x380] sm:$0xff] }
 0x47b   : > { %10539 = vmatprep.mubr.f32.mxu1 %v5900_v1  ;;  %11389 = vmatpush3.bf16.msra.mxu1 %v11386_v47  ;;  %v13886_v47 = vld [vmem:[#allocation2 + $0x6c] sm:$0xff]  ;;  %v11434_v1 = vpack.c.bf16 %v8403_v31, %v8402_v62 }
 0x47c   : > { %11391 = vmatprep.subr.bf16.mxu1 %v11390_v60  ;;  %v7113_v31 = vld [vmem:[#allocation2 + $0x4d] sm:$0xff] }
 0x47e   : > { %10540 = vmatmul.mubr.f32.gmra.mrb[10].mxu1 %v5901_v3  ;;  %v13913_v3 = vld [vmem:[#allocation2 + $0x94] sm:$0xff] }
 0x47f   : > { %10542 = vmatprep.mubr.f32.mxu1 %v5902_v5  ;;  %11393 = vmatpush3.bf16.msra.mxu1 %v11390_v60  ;;  %v13898_v60 = vld [vmem:[#allocation2 + $0x7c] sm:$0xff]  ;;  %v13922_v5 = vld [vmem:[#allocation2 + $0xac] sm:$0xff] }
 0x480   : > { %11395 = vmatprep.subr.bf16.mxu1 %v11394_v34 }
 0x482   : > { %10543 = vmatmul.mubr.f32.gmra.mrb[12].mxu1 %v5903_v6  ;;  %v13928_v6 = vld [vmem:[#allocation2 + $0xbc] sm:$0xff] }
 0x483   : > { %10545 = vmatprep.mubr.f32.mxu1 %v5904_v7  ;;  %11397 = vmatpush3.bf16.msra.mxu1 %v11394_v34  ;;  %v13910_v34 = vld [vmem:[#allocation2 + $0x8c] sm:$0xff]  ;;  %v13937_v7 = vld [vmem:[#allocation2 + $0xd4] sm:$0xff] }
 0x484   : > { %11399 = vmatprep.subr.bf16.mxu1 %v11398_v56 }
 0x486   : > { %10546 = vmatmul.mubr.f32.gmra.mrb[14].mxu1 %v5905_v9  ;;  %v13943_v9 = vld [vmem:[#allocation2 + $0xe4] sm:$0xff] }
 0x487   : > { %10548 = vmatprep.mubr.f32.mxu1 %v5906_v48  ;;  %11401 = vmatpush3.bf16.msra.mxu1 %v11398_v56  ;;  %v13925_v56 = vld [vmem:[#allocation2 + $0xb4] sm:$0xff]  ;;  %v13946_v48 = vld [vmem:[#allocation2 + $0xec] sm:$0xff] }
 0x488   : > { %11403 = vmatprep.subr.bf16.mxu1 %v11402_v50 }
 0x48a   : > { %10549 = vmatmul.mubr.f32.gmra.mrb[16].mxu1 %v5907_v11  ;;  %v13949_v11 = vld [vmem:[#allocation2 + $0xf4] sm:$0xff] }
 0x48b   : > { %10551 = vmatprep.mubr.f32.mxu1 %v5908_v54  ;;  %v13952_v54 = vld [vmem:[#allocation2 + $0xfc] sm:$0xff] }
 0x48e   : > { %10552 = vmatmul.mubr.f32.gmra.mrb[18].mxu1 %v5909_v12  ;;  %v13955_v12 = vld [vmem:[#allocation2 + $0x104] sm:$0xff] }
 0x48f   : > { %10554 = vmatprep.mubr.f32.mxu1 %v5910_v14  ;;  %v13958_v14 = vld [vmem:[#allocation2 + $0x10c] sm:$0xff] }
 0x492   : > { %10555 = vmatmul.mubr.f32.gmra.mrb[20].mxu1 %v5911_v16  ;;  %v13961_v16 = vld [vmem:[#allocation2 + $0x114] sm:$0xff] }
 0x493   : > { %10557 = vmatprep.mubr.f32.mxu1 %v5912_v57  ;;  %v13964_v57 = vld [vmem:[#allocation2 + $0x11c] sm:$0xff] }
 0x496   : > { %10558 = vmatmul.mubr.f32.gmra.mrb[22].mxu1 %v5913_v58  ;;  %v13967_v58 = vld [vmem:[#allocation2 + $0x124] sm:$0xff] }
 0x497   : > { %10560 = vmatprep.mubr.f32.mxu1 %v5914_v19  ;;  %v13970_v19 = vld [vmem:[#allocation2 + $0x12c] sm:$0xff] }
 0x49a   : > { %10561 = vmatmul.mubr.f32.gmra.mrb[24].mxu1 %v5915_v21  ;;  %v8404_v21 = vld [vmem:[%s14229_s5 + $0x390] sm:$0xff] }
 0x49b   : > { %10563 = vmatprep.mubr.f32.mxu1 %v5916_v22  ;;  %v8405_v22 = vld [vmem:[%s14229_s5 + $0x398] sm:$0xff] }
 0x49e   : > { %10564 = vmatmul.mubr.f32.gmra.mrb[26].mxu1 %v5917_v23  ;;  %v11438_v23 = vpack.c.bf16 %v8405_v22, %v8404_v21  ;;  %v7125_v21 = vld [vmem:[#allocation2 + $0xad] sm:$0xff]  ;;  %v7126_v22 = vld [vmem:[#allocation2 + $0xb5] sm:$0xff] }
 0x49f   : > { %10566 = vmatprep.mubr.f32.mxu1 %v13457_v20  ;;  %v8389_v20 = vld [vmem:[%s14229_s5 + $0x318] sm:$0xff] }
 0x4a2   : > { %10567 = vmatmul.mubr.f32.gmra.mrb[28].mxu1 %v5919_v15  ;;  %v8406_v15 = vld [vmem:[%s14229_s5 + $0x3a0] sm:$0xff] }
 0x4a3   : > { %10569 = vmatprep.mubr.f32.mxu1 %v13466_v30  ;;  %v11406_v30 = vpack.c.bf16 %v8389_v20, %v8388_v24  ;;  %v8407_v24 = vld [vmem:[%s14229_s5 + $0x3a8] sm:$0xff] }
 0x4a4   : > { %v11442_v20 = vpack.c.bf16 %v8407_v24, %v8406_v15  ;;  %v7128_v15 = vld [vmem:[#allocation2 + $0xc5] sm:$0xff]  ;;  %v7129_v24 = vld [vmem:[#allocation2 + $0xcd] sm:$0xff] }
 0x4a6   : > { %10570 = vmatmul.mubr.f32.gmra.mrb[30].mxu1 %v13463_v28  ;;  %v6297_v28 = vld [vmem:[#allocation2 + $0x1c] sm:$0xff] }
 0x4a7   : > { %10572 = vmatprep.mubr.f32.mxu1 %v13476_v43  ;;  %v8391_v43 = vld [vmem:[%s14229_s5 + $0x328] sm:$0xff] }
 0x4aa   : > { %10573 = vmatmul.mubr.f32.gmra.mrb[32].mxu1 %v13473_v13  ;;  %v8390_v13 = vld [vmem:[%s14229_s5 + $0x320] sm:$0xff] }
 0x4ab   : > { %10575 = vmatprep.mubr.f32.mxu1 %v13483_v52  ;;  %v13835_v52 = vld [vmem:[#allocation2 + $0x24] sm:$0xff] }
 0x4ae   : > { %10576 = vmatmul.mubr.f32.gmra.mrb[34].mxu1 %v13481_v51  ;;  %v11410_v51 = vpack.c.bf16 %v8391_v43, %v8390_v13  ;;  %v8410_v13 = vld [vmem:[%s14229_s5 + $0x3c0] sm:$0xff]  ;;  %v8411_v43 = vld [vmem:[%s14229_s5 + $0x3c8] sm:$0xff] }
 0x4af   : > { %10610 = vmatprep.mubr.f32.mxu1 %v6296_v18  ;;  %v8408_v18 = vld [vmem:[%s14229_s5 + $0x3b0] sm:$0xff] }
 0x4b2   : > { %10611 = vmatmul.mubr.f32.vlgmr.msra.gmra.mrb[0].mxu1 %v6297_v28 }
 0x4b3   : > { %10613 = vmatprep.mubr.f32.mxu1 %v13835_v52  ;;  %11405 = vmatpush3.bf16.msra.mxu1 %v11402_v50  ;;  %v13940_v50 = vld [vmem:[#allocation2 + $0xdc] sm:$0xff] }
 0x4b4   : > { %11407 = vmatprep.subr.bf16.mxu1 %v11406_v30 }
 0x4b6   : > { %10614 = vmatmul.mubr.f32.gmra.mrb[2].mxu1 %v13838_v25 }
 0x4b7   : > { %10616 = vmatprep.mubr.f32.mxu1 %v13847_v29  ;;  %11409 = vmatpush3.bf16.msra.mxu1 %v11406_v30  ;;  %v8409_v30 = vld [vmem:[%s14229_s5 + $0x3b8] sm:$0xff] }
 0x4b8   : > { %11411 = vmatprep.subr.bf16.mxu1 %v11410_v51  ;;  %v11446_v28 = vpack.c.bf16 %v8409_v30, %v8408_v18  ;;  %v7131_v18 = vld [vmem:[#allocation2 + $0xdd] sm:$0xff]  ;;  %v7132_v30 = vld [vmem:[#allocation2 + $0xe5] sm:$0xff] }
 0x4ba   : > { %10617 = vmatmul.mubr.f32.gmra.mrb[4].mxu1 %v13850_v32 }
 0x4bb   : > { %10619 = vmatprep.mubr.f32.mxu1 %v13859_v2  ;;  %11413 = vmatpush3.bf16.msra.mxu1 %v11410_v51  ;;  %v8412_v51 = vld [vmem:[%s14229_s5 + $0x3d0] sm:$0xff] }
 0x4bc   : > { %11415 = vmatprep.subr.bf16.mxu1 %v11414_v0 }
 0x4be   : > { %10620 = vmatmul.mubr.f32.gmra.mrb[6].mxu1 %v13862_v38 }
 0x4bf   : > { %10622 = vmatprep.mubr.f32.mxu1 %v13871_v40  ;;  %11417 = vmatpush3.bf16.msra.mxu1 %v11414_v0 }
 0x4c0   : > { %11419 = vmatprep.subr.bf16.mxu1 %v11418_v37 }
 0x4c2   : > { %10623 = vmatmul.mubr.f32.gmra.mrb[8].mxu1 %v13874_v42 }
 0x4c3   : > { %10625 = vmatprep.mubr.f32.mxu1 %v13883_v45  ;;  %11421 = vmatpush3.bf16.msra.mxu1 %v11418_v37  ;;  %v8419_v37 = vld [vmem:[%s14229_s5 + $0x408] sm:$0xff] }
 0x4c4   : > { %11423 = vmatprep.subr.bf16.mxu1 %v11422_v41 }
 0x4c6   : > { %10626 = vmatmul.mubr.f32.gmra.mrb[10].mxu1 %v13886_v47 }
 0x4c7   : > { %10628 = vmatprep.mubr.f32.mxu1 %v13895_v53  ;;  %11425 = vmatpush3.bf16.msra.mxu1 %v11422_v41  ;;  %v8421_v41 = vld [vmem:[%s14229_s5 + $0x418] sm:$0xff] }
 0x4c8   : > { %11427 = vmatprep.subr.bf16.mxu1 %v11426_v46 }
 0x4ca   : > { %10629 = vmatmul.mubr.f32.gmra.mrb[12].mxu1 %v13898_v60 }
 0x4cb   : > { %10631 = vmatprep.mubr.f32.mxu1 %v13907_v63  ;;  %11429 = vmatpush3.bf16.msra.mxu1 %v11426_v46  ;;  %v8423_v46 = vld [vmem:[%s14229_s5 + $0x428] sm:$0xff] }
 0x4cc   : > { %11431 = vmatprep.subr.bf16.mxu1 %v11430_v61 }
 0x4ce   : > { %10632 = vmatmul.mubr.f32.gmra.mrb[14].mxu1 %v13910_v34 }
 0x4cf   : > { %10634 = vmatprep.mubr.f32.mxu1 %v13913_v3  ;;  %11433 = vmatpush3.bf16.msra.mxu1 %v11430_v61  ;;  %v8425_v61 = vld [vmem:[%s14229_s5 + $0x438] sm:$0xff] }
 0x4d0   : > { %11435 = vmatprep.subr.bf16.mxu1 %v11434_v1 }
 0x4d2   : > { %10635 = vmatmul.mubr.f32.gmra.mrb[16].mxu1 %v13916_v55 }
 0x4d3   : > { %10637 = vmatprep.mubr.f32.mxu1 %v13919_v4 }
 0x4d6   : > { %10638 = vmatmul.mubr.f32.gmra.mrb[18].mxu1 %v13922_v5 }
 0x4d7   : > { %10640 = vmatprep.mubr.f32.mxu1 %v13925_v56 }
 0x4da   : > { %10641 = vmatmul.mubr.f32.gmra.mrb[20].mxu1 %v13928_v6 }
 0x4db   : > { %10643 = vmatprep.mubr.f32.mxu1 %v13931_v8 }
 0x4de   : > { %10644 = vmatmul.mubr.f32.gmra.mrb[22].mxu1 %v13934_v10 }
 0x4df   : > { %10646 = vmatprep.mubr.f32.mxu1 %v13937_v7 }
 0x4e2   : > { %10647 = vmatmul.mubr.f32.gmra.mrb[24].mxu1 %v13940_v50 }
 0x4e3   : > { %10649 = vmatprep.mubr.f32.mxu1 %v13943_v9 }
 0x4e6   : > { %10650 = vmatmul.mubr.f32.gmra.mrb[26].mxu1 %v13946_v48 }
 0x4e7   : > { %10652 = vmatprep.mubr.f32.mxu1 %v13949_v11 }
 0x4ea   : > { %10653 = vmatmul.mubr.f32.gmra.mrb[28].mxu1 %v13952_v54 }
 0x4eb   : > { %10655 = vmatprep.mubr.f32.mxu1 %v13955_v12 }
 0x4ee   : > { %10656 = vmatmul.mubr.f32.gmra.mrb[30].mxu1 %v13958_v14 }
 0x4ef   : > { %10658 = vmatprep.mubr.f32.mxu1 %v13961_v16 }
 0x4f2   : > { %10659 = vmatmul.mubr.f32.gmra.mrb[32].mxu1 %v13964_v57 }
 0x4f3   : > { %10661 = vmatprep.mubr.f32.mxu1 %v13967_v58 }
 0x4f6   : > { %10662 = vmatmul.mubr.f32.gmra.mrb[34].mxu1 %v13970_v19 }
 0x4f7   : > { %10696 = vmatprep.mubr.f32.mxu1 %v13835_v52  ;;  %v11450_v52 = vpack.c.bf16 %v8411_v43, %v8410_v13  ;;  %v7134_v13 = vld [vmem:[#allocation2 + $0xf5] sm:$0xff]  ;;  %v7135_v43 = vld [vmem:[#allocation2 + $0xfd] sm:$0xff] }
 0x4fa   : > { %10697 = vmatmul.mubr.f32.vlgmr.msra.gmra.mrb[0].mxu1 %v13838_v25  ;;  %v8413_v25 = vld [vmem:[%s14229_s5 + $0x3d8] sm:$0xff] }
 0x4fb   : > { %10699 = vmatprep.mubr.f32.mxu1 %v13847_v29  ;;  %11437 = vmatpush3.bf16.msra.mxu1 %v11434_v1  ;;  %v11454_v26 = vpack.c.bf16 %v8413_v25, %v8412_v51  ;;  %v8415_v29 = vld [vmem:[%s14229_s5 + $0x3e8] sm:$0xff]  ;;  %v7138_v25 = vld [vmem:[#allocation2 + $0x115] sm:$0xff] }
 0x4fc   : > { %11439 = vmatprep.subr.bf16.mxu1 %v11438_v23  ;;  %v11458_v0 = vpack.c.bf16 %v8415_v29, %v8414_v27  ;;  %v8427_v1 = vld [vmem:[%s14229_s5 + $0x448] sm:$0xff]  ;;  %v7142_v29 = vld [vmem:[#allocation2 + $0x135] sm:$0xff] }
 0x4fd   : > { %v7137_v51 = vld [vmem:[#allocation2 + $0x10d] sm:$0xff]  ;;  %v7140_v27 = vld [vmem:[#allocation2 + $0x125] sm:$0xff] }
 0x4fe   : > { %10700 = vmatmul.mubr.f32.gmra.mrb[2].mxu1 %v13850_v32  ;;  %v8416_v32 = vld [vmem:[%s14229_s5 + $0x3f0] sm:$0xff] }
 0x4ff   : > { %10702 = vmatprep.mubr.f32.mxu1 %v13859_v2  ;;  %11441 = vmatpush3.bf16.msra.mxu1 %v11438_v23  ;;  %v11462_v35 = vpack.c.bf16 %v8417_v33, %v8416_v32  ;;  %v8418_v2 = vld [vmem:[%s14229_s5 + $0x400] sm:$0xff] }
 0x500   : > { %11443 = vmatprep.subr.bf16.mxu1 %v11442_v20  ;;  %v7127_v23 = vld [vmem:[#allocation2 + $0xbd] sm:$0xff]  ;;  %v7514_v33 = vld [vmem:[#allocation2 + $0x26] sm:$0xff] }
 0x501   : > { %v7143_v32 = vld [vmem:[#allocation2 + $0x13d] sm:$0xff] }
 0x502   : > { %10703 = vmatmul.mubr.f32.gmra.mrb[4].mxu1 %v13862_v38  ;;  %v11466_v38 = vpack.c.bf16 %v8419_v37, %v8418_v2  ;;  %v7516_v2 = vld [vmem:[#allocation2 + $0x36] sm:$0xff]  ;;  %v7517_v37 = vld [vmem:[#allocation2 + $0x3e] sm:$0xff] }
 0x503   : > { %10705 = vmatprep.mubr.f32.mxu1 %v13871_v40  ;;  %11445 = vmatpush3.bf16.msra.mxu1 %v11442_v20  ;;  %v8420_v40 = vld [vmem:[%s14229_s5 + $0x410] sm:$0xff] }
 0x504   : > { %11447 = vmatprep.subr.bf16.mxu1 %v11446_v28  ;;  %v11470_v17 = vpack.c.bf16 %v8421_v41, %v8420_v40  ;;  %v7130_v20 = vld [vmem:[#allocation2 + $0xd5] sm:$0xff]  ;;  %v7521_v40 = vld [vmem:[#allocation2 + $0x5e] sm:$0xff]  ;;  %v7522_v41 = vld [vmem:[#allocation2 + $0x66] sm:$0xff] }
 0x506   : > { %10706 = vmatmul.mubr.f32.gmra.mrb[6].mxu1 %v13874_v42  ;;  %v7108_v42 = vld [vmem:[#allocation2 + $0x25] sm:$0xff] }
 0x507   : > { %10708 = vmatprep.mubr.f32.mxu1 %v13883_v45  ;;  %11449 = vmatpush3.bf16.msra.mxu1 %v11446_v28  ;;  %v8422_v45 = vld [vmem:[%s14229_s5 + $0x420] sm:$0xff]  ;;  %v7133_v28 = vld [vmem:[#allocation2 + $0xed] sm:$0xff] }
 0x508   : > { %11451 = vmatprep.subr.bf16.mxu1 %v11450_v52  ;;  %v11474_v49 = vpack.c.bf16 %v8423_v46, %v8422_v45  ;;  %v7526_v45 = vld [vmem:[#allocation2 + $0x86] sm:$0xff]  ;;  %v7527_v46 = vld [vmem:[#allocation2 + $0x8e] sm:$0xff] }
 0x50a   : > { %10709 = vmatmul.mubr.f32.gmra.mrb[8].mxu1 %v13886_v47  ;;  %v7110_v47 = vld [vmem:[#allocation2 + $0x35] sm:$0xff] }
 0x50b   : > { %10711 = vmatprep.mubr.f32.mxu1 %v13895_v53  ;;  %11453 = vmatpush3.bf16.msra.mxu1 %v11450_v52  ;;  %v8424_v53 = vld [vmem:[%s14229_s5 + $0x430] sm:$0xff]  ;;  %v7136_v52 = vld [vmem:[#allocation2 + $0x105] sm:$0xff] }
 0x50c   : > { %11455 = vmatprep.subr.bf16.mxu1 %v11454_v26  ;;  %v11478_v62 = vpack.c.bf16 %v8425_v61, %v8424_v53  ;;  %v7531_v53 = vld [vmem:[#allocation2 + $0xae] sm:$0xff]  ;;  %v7532_v61 = vld [vmem:[#allocation2 + $0xb6] sm:$0xff] }
 0x50e   : > { %10712 = vmatmul.mubr.f32.gmra.mrb[10].mxu1 %v13898_v60  ;;  %v7112_v60 = vld [vmem:[#allocation2 + $0x45] sm:$0xff] }
 0x50f   : > { %10714 = vmatprep.mubr.f32.mxu1 %v13907_v63  ;;  %11457 = vmatpush3.bf16.msra.mxu1 %v11454_v26  ;;  %v8426_v63 = vld [vmem:[%s14229_s5 + $0x440] sm:$0xff] }
 0x510   : > { %11459 = vmatprep.subr.bf16.mxu1 %v11458_v0  ;;  %v7139_v26 = vld [vmem:[#allocation2 + $0x11d] sm:$0xff] }
 0x512   : > { %10715 = vmatmul.mubr.f32.gmra.mrb[12].mxu1 %v13910_v34  ;;  %v7114_v34 = vld [vmem:[#allocation2 + $0x55] sm:$0xff] }
 0x513   : > { %10717 = vmatprep.mubr.f32.mxu1 %v13913_v3  ;;  %11461 = vmatpush3.bf16.msra.mxu1 %v11458_v0  ;;  %v11482_v3 = vpack.c.bf16 %v8427_v1, %v8426_v63  ;;  %v7141_v0 = vld [vmem:[#allocation2 + $0x12d] sm:$0xff]  ;;  %v7536_v63 = vld [vmem:[#allocation2 + $0xd6] sm:$0xff]  ;;  %v7537_v1 = vld [vmem:[#allocation2 + $0xde] sm:$0xff] }
 0x514   : > { %11463 = vmatprep.subr.bf16.mxu1 %v11462_v35 }
 0x516   : > { %10718 = vmatmul.mubr.f32.gmra.mrb[14].mxu1 %v13916_v55  ;;  %v7115_v55 = vld [vmem:[#allocation2 + $0x5d] sm:$0xff] }
 0x517   : > { %10720 = vmatprep.mubr.f32.mxu1 %v13919_v4  ;;  %11465 = vmatpush3.bf16.msra.mxu1 %v11462_v35  ;;  %v8428_v4 = vld [vmem:[%s14229_s5 + $0x450] sm:$0xff] }
 0x518   : > { %11467 = vmatprep.subr.bf16.mxu1 %v11466_v38  ;;  %v7515_v35 = vld [vmem:[#allocation2 + $0x2e] sm:$0xff] }
 0x51a   : > { %10721 = vmatmul.mubr.f32.gmra.mrb[16].mxu1 %v13922_v5  ;;  %v8429_v5 = vld [vmem:[%s14229_s5 + $0x458] sm:$0xff] }
 0x51b   : > { %10723 = vmatprep.mubr.f32.mxu1 %v13925_v56  ;;  %v7116_v56 = vld [vmem:[#allocation2 + $0x65] sm:$0xff] }
 0x51e   : > { %10724 = vmatmul.mubr.f32.gmra.mrb[18].mxu1 %v13928_v6  ;;  %v11486_v6 = vpack.c.bf16 %v8429_v5, %v8428_v4  ;;  %v7541_v4 = vld [vmem:[#allocation2 + $0xfe] sm:$0xff]  ;;  %v7542_v5 = vld [vmem:[#allocation2 + $0x106] sm:$0xff] }
 0x51f   : > { %10726 = vmatprep.mubr.f32.mxu1 %v13931_v8  ;;  %v7117_v8 = vld [vmem:[#allocation2 + $0x6d] sm:$0xff] }
 0x522   : > { %10727 = vmatmul.mubr.f32.gmra.mrb[20].mxu1 %v13934_v10  ;;  %v8430_v10 = vld [vmem:[%s14229_s5 + $0x460] sm:$0xff] }
 0x523   : > { %10729 = vmatprep.mubr.f32.mxu1 %v13937_v7  ;;  %v8431_v7 = vld [vmem:[%s14229_s5 + $0x468] sm:$0xff] }
 0x526   : > { %10730 = vmatmul.mubr.f32.gmra.mrb[22].mxu1 %v13940_v50  ;;  %v7118_v50 = vld [vmem:[#allocation2 + $0x75] sm:$0xff] }
 0x527   : > { %10732 = vmatprep.mubr.f32.mxu1 %v13943_v9  ;;  %v11490_v9 = vpack.c.bf16 %v8431_v7, %v8430_v10  ;;  %v7546_v10 = vld [vmem:[#allocation2 + $0x126] sm:$0xff]  ;;  %v7548_v7 = vld [vmem:[#allocation2 + $0x136] sm:$0xff] }
 0x52a   : > { %10733 = vmatmul.mubr.f32.gmra.mrb[24].mxu1 %v13946_v48  ;;  %v7119_v48 = vld [vmem:[#allocation2 + $0x7d] sm:$0xff] }
 0x52b   : > { %10735 = vmatprep.mubr.f32.mxu1 %v13949_v11  ;;  %v8432_v11 = vld [vmem:[%s14229_s5 + $0x470] sm:$0xff] }
 0x52e   : > { %10736 = vmatmul.mubr.f32.gmra.mrb[26].mxu1 %v13952_v54  ;;  %v8433_v54 = vld [vmem:[%s14229_s5 + $0x478] sm:$0xff] }
 0x52f   : > { %10738 = vmatprep.mubr.f32.mxu1 %v13955_v12  ;;  %v7120_v12 = vld [vmem:[#allocation2 + $0x85] sm:$0xff] }
 0x532   : > { %10739 = vmatmul.mubr.f32.gmra.mrb[28].mxu1 %v13958_v14  ;;  %v11494_v14 = vpack.c.bf16 %v8433_v54, %v8432_v11  ;;  %v14106_v54 = vld [vmem:[%s14231_s7] ss:$0 sm:$0xff] }
 0x533   : > { %10741 = vmatprep.mubr.f32.mxu1 %v13961_v16  ;;  %v7121_v16 = vld [vmem:[#allocation2 + $0x8d] sm:$0xff] }
 0x536   : > { %10742 = vmatmul.mubr.f32.gmra.mrb[30].mxu1 %v13964_v57  ;;  %v7122_v57 = vld [vmem:[#allocation2 + $0x95] sm:$0xff] }
 0x537   : > { %10744 = vmatprep.mubr.f32.mxu1 %v13967_v58  ;;  %v7123_v58 = vld [vmem:[#allocation2 + $0x9d] sm:$0xff] }
 0x53a   : > { %10745 = vmatmul.mubr.f32.gmra.mrb[32].mxu1 %v13970_v19  ;;  %v7124_v19 = vld [vmem:[#allocation2 + $0xa5] sm:$0xff] }
 0x53b   : > { %10747 = vmatprep.mubr.f32.mxu1 %v6736_v36  ;;  %v7519_v36 = vld [vmem:[#allocation2 + $0x4e] sm:$0xff] }
 0x53e   : > { %10748 = vmatmul.mubr.f32.gmra.mrb[34].mxu1 %v6737_v39  ;;  %v7520_v39 = vld [vmem:[#allocation2 + $0x56] sm:$0xff] }
 0x53f   : > { %10782 = vmatprep.mubr.f32.mxu1 %v7108_v42  ;;  %v7523_v42 = vld [vmem:[#allocation2 + $0x6e] sm:$0xff] }
 0x542   : > { %10783 = vmatmul.mubr.f32.vlgmr.msra.gmra.mrb[0].mxu1 %v7109_v44  ;;  %v7525_v44 = vld [vmem:[#allocation2 + $0x7e] sm:$0xff] }
 0x543   : > { %10785 = vmatprep.mubr.f32.mxu1 %v7110_v47  ;;  %11469 = vmatpush3.bf16.msra.mxu1 %v11466_v38  ;;  %v7518_v38 = vld [vmem:[#allocation2 + $0x46] sm:$0xff]  ;;  %v7528_v47 = vld [vmem:[#allocation2 + $0x96] sm:$0xff] }
 0x544   : > { %11471 = vmatprep.subr.bf16.mxu1 %v11470_v17 }
 0x546   : > { %10786 = vmatmul.mubr.f32.gmra.mrb[2].mxu1 %v7111_v59  ;;  %v7530_v59 = vld [vmem:[#allocation2 + $0xa6] sm:$0xff] }
 0x547   : > { %10788 = vmatprep.mubr.f32.mxu1 %v7112_v60  ;;  %11473 = vmatpush3.bf16.msra.mxu1 %v11470_v17  ;;  %v7524_v17 = vld [vmem:[#allocation2 + $0x76] sm:$0xff]  ;;  %v7533_v60 = vld [vmem:[#allocation2 + $0xbe] sm:$0xff] }
 0x548   : > { %11475 = vmatprep.subr.bf16.mxu1 %v11474_v49 }
 0x54a   : > { %10789 = vmatmul.mubr.f32.gmra.mrb[4].mxu1 %v7113_v31  ;;  %v7535_v31 = vld [vmem:[#allocation2 + $0xce] sm:$0xff] }
 0x54b   : > { %10791 = vmatprep.mubr.f32.mxu1 %v7114_v34  ;;  %11477 = vmatpush3.bf16.msra.mxu1 %v11474_v49  ;;  %v7529_v49 = vld [vmem:[#allocation2 + $0x9e] sm:$0xff]  ;;  %v7538_v34 = vld [vmem:[#allocation2 + $0xe6] sm:$0xff] }
 0x54c   : > { %11479 = vmatprep.subr.bf16.mxu1 %v11478_v62 }
 0x54e   : > { %10792 = vmatmul.mubr.f32.gmra.mrb[6].mxu1 %v7115_v55  ;;  %v7540_v55 = vld [vmem:[#allocation2 + $0xf6] sm:$0xff] }
 0x54f   : > { %10794 = vmatprep.mubr.f32.mxu1 %v7116_v56  ;;  %11481 = vmatpush3.bf16.msra.mxu1 %v11478_v62  ;;  %v7534_v62 = vld [vmem:[#allocation2 + $0xc6] sm:$0xff]  ;;  %v7543_v56 = vld [vmem:[#allocation2 + $0x10e] sm:$0xff] }
 0x550   : > { %11483 = vmatprep.subr.bf16.mxu1 %v11482_v3 }
 0x552   : > { %10795 = vmatmul.mubr.f32.gmra.mrb[8].mxu1 %v7117_v8  ;;  %v7545_v8 = vld [vmem:[#allocation2 + $0x11e] sm:$0xff] }
 0x553   : > { %10797 = vmatprep.mubr.f32.mxu1 %v7118_v50  ;;  %11485 = vmatpush3.bf16.msra.mxu1 %v11482_v3  ;;  %v7539_v3 = vld [vmem:[#allocation2 + $0xee] sm:$0xff] }
 0x554   : > { %11487 = vmatprep.subr.bf16.mxu1 %v11486_v6  ;;  %v7547_v50 = vld [vmem:[#allocation2 + $0x12e] sm:$0xff] }
 0x556   : > { %10798 = vmatmul.mubr.f32.gmra.mrb[10].mxu1 %v7119_v48  ;;  %v14100_v48 = vld [vmem:[%s14230_s6] ss:$0 sm:$0xff] }
 0x557   : > { %10800 = vmatprep.mubr.f32.mxu1 %v7120_v12  ;;  %11489 = vmatpush3.bf16.msra.mxu1 %v11486_v6  ;;  %v7544_v6 = vld [vmem:[#allocation2 + $0x116] sm:$0xff] }
 0x558   : > { %11491 = vmatprep.subr.bf16.mxu1 %v11490_v9 }
 0x55a   : > { %10801 = vmatmul.mubr.f32.gmra.mrb[12].mxu1 %v7121_v16 }
 0x55b   : > { %10803 = vmatprep.mubr.f32.mxu1 %v7122_v57  ;;  %11493 = vmatpush3.bf16.msra.mxu1 %v11490_v9  ;;  %v7549_v9 = vld [vmem:[#allocation2 + $0x13e] sm:$0xff] }
 0x55c   : > { %11495 = vmatprep.subr.bf16.mxu1 %v11494_v14 }
 0x55e   : > { %10804 = vmatmul.mubr.f32.gmra.mrb[14].mxu1 %v7123_v58 }
 0x55f   : > { %10806 = vmatprep.mubr.f32.mxu1 %v7124_v19  ;;  %11497 = vmatpush3.bf16.msra.mxu1 %v11494_v14 }
 0x562   : > { %10807 = vmatmul.mubr.f32.gmra.mrb[16].mxu1 %v7125_v21 }
 0x563   : > { %10809 = vmatprep.mubr.f32.mxu1 %v7126_v22 }
 0x566   : > { %10810 = vmatmul.mubr.f32.gmra.mrb[18].mxu1 %v7127_v23 }
 0x567   : > { %10812 = vmatprep.mubr.f32.mxu1 %v7128_v15 }
 0x56a   : > { %10813 = vmatmul.mubr.f32.gmra.mrb[20].mxu1 %v7129_v24 }
 0x56b   : > { %10815 = vmatprep.mubr.f32.mxu1 %v7130_v20 }
 0x56e   : > { %10816 = vmatmul.mubr.f32.gmra.mrb[22].mxu1 %v7131_v18 }
 0x56f   : > { %10818 = vmatprep.mubr.f32.mxu1 %v7132_v30 }
 0x572   : > { %10819 = vmatmul.mubr.f32.gmra.mrb[24].mxu1 %v7133_v28 }
 0x573   : > { %10821 = vmatprep.mubr.f32.mxu1 %v7134_v13 }
 0x576   : > { %10822 = vmatmul.mubr.f32.gmra.mrb[26].mxu1 %v7135_v43 }
 0x577   : > { %10824 = vmatprep.mubr.f32.mxu1 %v7136_v52 }
 0x57a   : > { %10825 = vmatmul.mubr.f32.gmra.mrb[28].mxu1 %v7137_v51 }
 0x57b   : > { %10827 = vmatprep.mubr.f32.mxu1 %v7138_v25 }
 0x57e   : > { %10828 = vmatmul.mubr.f32.gmra.mrb[30].mxu1 %v7139_v26 }
 0x57f   : > { %10830 = vmatprep.mubr.f32.mxu1 %v7140_v27 }
 0x582   : > { %10831 = vmatmul.mubr.f32.gmra.mrb[32].mxu1 %v7141_v0 }
 0x583   : > { %10833 = vmatprep.mubr.f32.mxu1 %v7142_v29 }
 0x586   : > { %10834 = vmatmul.mubr.f32.gmra.mrb[34].mxu1 %v7143_v32 }
 0x587   : > { %10868 = vmatprep.mubr.f32.mxu1 %v7514_v33 }
 0x58a   : > { %10869 = vmatmul.mubr.f32.vlgmr.msra.gmra.mrb[0].mxu1 %v7515_v35 }
 0x58b   : > { %10871 = vmatprep.mubr.f32.mxu1 %v7516_v2 }
 0x58e   : > { %10872 = vmatmul.mubr.f32.gmra.mrb[2].mxu1 %v7517_v37 }
 0x58f   : > { %10874 = vmatprep.mubr.f32.mxu1 %v7518_v38 }
 0x592   : > { %10875 = vmatmul.mubr.f32.gmra.mrb[4].mxu1 %v7519_v36 }
 0x593   : > { %10877 = vmatprep.mubr.f32.mxu1 %v7520_v39 }
 0x596   : > { %10878 = vmatmul.mubr.f32.gmra.mrb[6].mxu1 %v7521_v40 }
 0x597   : > { %10880 = vmatprep.mubr.f32.mxu1 %v7522_v41 }
 0x59a   : > { %10881 = vmatmul.mubr.f32.gmra.mrb[8].mxu1 %v7523_v42 }
 0x59b   : > { %10883 = vmatprep.mubr.f32.mxu1 %v7524_v17 }
 0x59e   : > { %10884 = vmatmul.mubr.f32.gmra.mrb[10].mxu1 %v7525_v44 }
 0x59f   : > { %10886 = vmatprep.mubr.f32.mxu1 %v7526_v45 }
 0x5a2   : > { %10887 = vmatmul.mubr.f32.gmra.mrb[12].mxu1 %v7527_v46 }
 0x5a3   : > { %10889 = vmatprep.mubr.f32.mxu1 %v7528_v47 }
 0x5a6   : > { %10890 = vmatmul.mubr.f32.gmra.mrb[14].mxu1 %v7529_v49 }
 0x5a7   : > { %10892 = vmatprep.mubr.f32.mxu1 %v7530_v59 }
 0x5aa   : > { %10893 = vmatmul.mubr.f32.gmra.mrb[16].mxu1 %v7531_v53 }
 0x5ab   : > { %10895 = vmatprep.mubr.f32.mxu1 %v7532_v61 }
 0x5ae   : > { %10896 = vmatmul.mubr.f32.gmra.mrb[18].mxu1 %v7533_v60 }
 0x5af   : > { %10898 = vmatprep.mubr.f32.mxu1 %v7534_v62 }
 0x5b2   : > { %10899 = vmatmul.mubr.f32.gmra.mrb[20].mxu1 %v7535_v31 }
 0x5b3   : > { %10901 = vmatprep.mubr.f32.mxu1 %v7536_v63 }
 0x5b6   : > { %10902 = vmatmul.mubr.f32.gmra.mrb[22].mxu1 %v7537_v1 }
 0x5b7   : > { %10904 = vmatprep.mubr.f32.mxu1 %v7538_v34 }
 0x5ba   : > { %10905 = vmatmul.mubr.f32.gmra.mrb[24].mxu1 %v7539_v3 }
 0x5bb   : > { %10907 = vmatprep.mubr.f32.mxu1 %v7540_v55 }
 0x5be   : > { %10908 = vmatmul.mubr.f32.gmra.mrb[26].mxu1 %v7541_v4 }
 0x5bf   : > { %10910 = vmatprep.mubr.f32.mxu1 %v7542_v5 }
 0x5c2   : > { %10911 = vmatmul.mubr.f32.gmra.mrb[28].mxu1 %v7543_v56 }
 0x5c3   : > { %10913 = vmatprep.mubr.f32.mxu1 %v7544_v6 }
 0x5c6   : > { %10914 = vmatmul.mubr.f32.gmra.mrb[30].mxu1 %v7545_v8 }
 0x5c7   : > { %10916 = vmatprep.mubr.f32.mxu1 %v7546_v10 }
 0x5ca   : > { %10917 = vmatmul.mubr.f32.gmra.mrb[32].mxu1 %v7547_v50 }
 0x5cb   : > { %10919 = vmatprep.mubr.f32.mxu1 %v7548_v7 }
 0x5ce   : > { %10920 = vmatmul.mubr.f32.gmra.mrb[34].mxu1 %v7549_v9 }
 0x65d   : > { %v10870_v11 = vpop.f32.mrb[0].mxu1 }
 0x65e   : > { %v7964_v12 = vmul.f32 %v10870_v11, %v14100_v48  ;;  %v7633_v14 = vpop.f32.mrb[1].mxu1 }
 0x65f   : > { %v7963_v16 = vmul.f32 %v14100_v48, %v7633_v14 }
 0x660   : > { %v8007_v57 = vadd.f32 %v14106_v54, %v7964_v12 }
 0x661   : > { %v8006_v58 = vadd.f32 %v14106_v54, %v7963_v16  ;;  %v10873_v19 = vpop.f32.mrb[2].mxu1 }
 0x662   : > { %v8043_v21 = vmax.f32 %v8007_v57, 0.0  ;;  %v7966_v22 = vmul.f32 %v10873_v19, %v14100_v48  ;;  %v7643_v23 = vpop.f32.mrb[3].mxu1 }
 0x663   : > { %v8042_v15 = vmax.f32 %v8006_v58, 0.0  ;;  %v7965_v24 = vmul.f32 %v14100_v48, %v7643_v23 }
 0x664   : > { %8079 = vst [vmem:[%s14114_s9 + $0x8] sm:$0xff] %v8043_v21  ;;  %v8009_v20 = vadd.f32 %v14106_v54, %v7966_v22 }
 0x665   : > { %8078 = vst [vmem:[%s14114_s9] sm:$0xff] %v8042_v15  ;;  %v8008_v18 = vadd.f32 %v14106_v54, %v7965_v24  ;;  %v10876_v30 = vpop.f32.mrb[4].mxu1 }
 0x666   : > { %v8045_v28 = vmax.f32 %v8009_v20, 0.0  ;;  %v7968_v13 = vmul.f32 %v10876_v30, %v14100_v48  ;;  %v7653_v43 = vpop.f32.mrb[5].mxu1 }
 0x667   : > { %v8044_v52 = vmax.f32 %v8008_v18, 0.0  ;;  %v7967_v51 = vmul.f32 %v14100_v48, %v7653_v43 }
 0x668   : > { %8081 = vst [vmem:[%s14114_s9 + $0x18] sm:$0xff] %v8045_v28  ;;  %v8011_v25 = vadd.f32 %v14106_v54, %v7968_v13 }
 0x669   : > { %8080 = vst [vmem:[%s14114_s9 + $0x10] sm:$0xff] %v8044_v52  ;;  %v8010_v26 = vadd.f32 %v14106_v54, %v7967_v51  ;;  %v10879_v27 = vpop.f32.mrb[6].mxu1 }
 0x66a   : > { %v8047_v29 = vmax.f32 %v8011_v25, 0.0  ;;  %v7970_v0 = vmul.f32 %v10879_v27, %v14100_v48  ;;  %v7663_v32 = vpop.f32.mrb[7].mxu1 }
 0x66b   : > { %v8046_v33 = vmax.f32 %v8010_v26, 0.0  ;;  %v7969_v35 = vmul.f32 %v14100_v48, %v7663_v32 }
 0x66c   : > { %8083 = vst [vmem:[%s14114_s9 + $0x28] sm:$0xff] %v8047_v29  ;;  %v8013_v2 = vadd.f32 %v14106_v54, %v7970_v0 }
 0x66d   : > { %8082 = vst [vmem:[%s14114_s9 + $0x20] sm:$0xff] %v8046_v33  ;;  %v8012_v37 = vadd.f32 %v14106_v54, %v7969_v35  ;;  %v10882_v38 = vpop.f32.mrb[8].mxu1 }
 0x66e   : > { %v8049_v36 = vmax.f32 %v8013_v2, 0.0  ;;  %v7972_v39 = vmul.f32 %v10882_v38, %v14100_v48  ;;  %v7673_v40 = vpop.f32.mrb[9].mxu1 }
 0x66f   : > { %v8048_v41 = vmax.f32 %v8012_v37, 0.0  ;;  %v7971_v42 = vmul.f32 %v14100_v48, %v7673_v40 }
 0x670   : > { %8085 = vst [vmem:[%s14114_s9 + $0x38] sm:$0xff] %v8049_v36  ;;  %v8015_v17 = vadd.f32 %v14106_v54, %v7972_v39 }
 0x671   : > { %8084 = vst [vmem:[%s14114_s9 + $0x30] sm:$0xff] %v8048_v41  ;;  %v8014_v44 = vadd.f32 %v14106_v54, %v7971_v42  ;;  %v10885_v45 = vpop.f32.mrb[10].mxu1 }
 0x672   : > { %v8051_v46 = vmax.f32 %v8015_v17, 0.0  ;;  %v7974_v47 = vmul.f32 %v10885_v45, %v14100_v48  ;;  %v7683_v49 = vpop.f32.mrb[11].mxu1 }
 0x673   : > { %v8050_v59 = vmax.f32 %v8014_v44, 0.0  ;;  %v7973_v53 = vmul.f32 %v14100_v48, %v7683_v49 }
 0x674   : > { %8087 = vst [vmem:[%s14114_s9 + $0x48] sm:$0xff] %v8051_v46  ;;  %v8017_v61 = vadd.f32 %v14106_v54, %v7974_v47 }
 0x675   : > { %8086 = vst [vmem:[%s14114_s9 + $0x40] sm:$0xff] %v8050_v59  ;;  %v8016_v60 = vadd.f32 %v14106_v54, %v7973_v53  ;;  %v10888_v62 = vpop.f32.mrb[12].mxu1 }
 0x676   : > { %v8053_v31 = vmax.f32 %v8017_v61, 0.0  ;;  %v7976_v63 = vmul.f32 %v10888_v62, %v14100_v48  ;;  %v7693_v1 = vpop.f32.mrb[13].mxu1 }
 0x677   : > { %v8052_v34 = vmax.f32 %v8016_v60, 0.0  ;;  %v7975_v3 = vmul.f32 %v14100_v48, %v7693_v1 }
 0x678   : > { %8089 = vst [vmem:[%s14114_s9 + $0x58] sm:$0xff] %v8053_v31  ;;  %v8019_v55 = vadd.f32 %v14106_v54, %v7976_v63 }
 0x679   : > { %8088 = vst [vmem:[%s14114_s9 + $0x50] sm:$0xff] %v8052_v34  ;;  %v8018_v4 = vadd.f32 %v14106_v54, %v7975_v3  ;;  %v10891_v5 = vpop.f32.mrb[14].mxu1 }
 0x67a   : > { %v8055_v56 = vmax.f32 %v8019_v55, 0.0  ;;  %v7978_v6 = vmul.f32 %v10891_v5, %v14100_v48  ;;  %v7703_v8 = vpop.f32.mrb[15].mxu1 }
 0x67b   : > { %v8054_v10 = vmax.f32 %v8018_v4, 0.0  ;;  %v7977_v7 = vmul.f32 %v14100_v48, %v7703_v8 }
 0x67c   : > { %8091 = vst [vmem:[%s14114_s9 + $0x68] sm:$0xff] %v8055_v56  ;;  %v8021_v50 = vadd.f32 %v14106_v54, %v7978_v6 }
 0x67d   : > { %8090 = vst [vmem:[%s14114_s9 + $0x60] sm:$0xff] %v8054_v10  ;;  %v8020_v9 = vadd.f32 %v14106_v54, %v7977_v7  ;;  %v10894_v11 = vpop.f32.mrb[16].mxu1 }
 0x67e   : > { %v8057_v12 = vmax.f32 %v8021_v50, 0.0  ;;  %v7980_v14 = vmul.f32 %v10894_v11, %v14100_v48  ;;  %v7713_v16 = vpop.f32.mrb[17].mxu1 }
 0x67f   : > { %v8056_v57 = vmax.f32 %v8020_v9, 0.0  ;;  %v7979_v58 = vmul.f32 %v14100_v48, %v7713_v16 }
 0x680   : > { %8093 = vst [vmem:[%s14114_s9 + $0x78] sm:$0xff] %v8057_v12  ;;  %v8023_v19 = vadd.f32 %v14106_v54, %v7980_v14 }
 0x681   : > { %8092 = vst [vmem:[%s14114_s9 + $0x70] sm:$0xff] %v8056_v57  ;;  %v8022_v21 = vadd.f32 %v14106_v54, %v7979_v58  ;;  %v10897_v22 = vpop.f32.mrb[18].mxu1 }
 0x682   : > { %v8059_v23 = vmax.f32 %v8023_v19, 0.0  ;;  %v7982_v15 = vmul.f32 %v10897_v22, %v14100_v48  ;;  %v7723_v24 = vpop.f32.mrb[19].mxu1 }
 0x683   : > { %v8058_v20 = vmax.f32 %v8022_v21, 0.0  ;;  %v7981_v18 = vmul.f32 %v14100_v48, %v7723_v24 }
 0x684   : > { %8095 = vst [vmem:[%s14114_s9 + $0x88] sm:$0xff] %v8059_v23  ;;  %v8025_v30 = vadd.f32 %v14106_v54, %v7982_v15 }
 0x685   : > { %8094 = vst [vmem:[%s14114_s9 + $0x80] sm:$0xff] %v8058_v20  ;;  %v8024_v28 = vadd.f32 %v14106_v54, %v7981_v18  ;;  %v10900_v13 = vpop.f32.mrb[20].mxu1 }
 0x686   : > { %v8061_v43 = vmax.f32 %v8025_v30, 0.0  ;;  %v7984_v52 = vmul.f32 %v10900_v13, %v14100_v48  ;;  %v7733_v51 = vpop.f32.mrb[21].mxu1 }
 0x687   : > { %v8060_v25 = vmax.f32 %v8024_v28, 0.0  ;;  %v7983_v26 = vmul.f32 %v14100_v48, %v7733_v51 }
 0x688   : > { %8097 = vst [vmem:[%s14114_s9 + $0x98] sm:$0xff] %v8061_v43  ;;  %v8027_v27 = vadd.f32 %v14106_v54, %v7984_v52 }
 0x689   : > { %8096 = vst [vmem:[%s14114_s9 + $0x90] sm:$0xff] %v8060_v25  ;;  %v8026_v29 = vadd.f32 %v14106_v54, %v7983_v26  ;;  %v10903_v0 = vpop.f32.mrb[22].mxu1 }
 0x68a   : > { %v8063_v32 = vmax.f32 %v8027_v27, 0.0  ;;  %v7986_v33 = vmul.f32 %v10903_v0, %v14100_v48  ;;  %v7743_v35 = vpop.f32.mrb[23].mxu1 }
 0x68b   : > { %v8062_v2 = vmax.f32 %v8026_v29, 0.0  ;;  %v7985_v37 = vmul.f32 %v14100_v48, %v7743_v35 }
 0x68c   : > { %8099 = vst [vmem:[%s14114_s9 + $0xa8] sm:$0xff] %v8063_v32  ;;  %v8029_v38 = vadd.f32 %v14106_v54, %v7986_v33 }
 0x68d   : > { %8098 = vst [vmem:[%s14114_s9 + $0xa0] sm:$0xff] %v8062_v2  ;;  %v8028_v36 = vadd.f32 %v14106_v54, %v7985_v37  ;;  %v10906_v39 = vpop.f32.mrb[24].mxu1 }
 0x68e   : > { %v8065_v40 = vmax.f32 %v8029_v38, 0.0  ;;  %v7988_v41 = vmul.f32 %v10906_v39, %v14100_v48  ;;  %v7753_v42 = vpop.f32.mrb[25].mxu1 }
 0x68f   : > { %v8064_v17 = vmax.f32 %v8028_v36, 0.0  ;;  %v7987_v44 = vmul.f32 %v14100_v48, %v7753_v42 }
 0x690   : > { %8101 = vst [vmem:[%s14114_s9 + $0xb8] sm:$0xff] %v8065_v40  ;;  %v8031_v45 = vadd.f32 %v14106_v54, %v7988_v41 }
 0x691   : > { %8100 = vst [vmem:[%s14114_s9 + $0xb0] sm:$0xff] %v8064_v17  ;;  %v8030_v46 = vadd.f32 %v14106_v54, %v7987_v44  ;;  %v10909_v47 = vpop.f32.mrb[26].mxu1 }
 0x692   : > { %v8067_v49 = vmax.f32 %v8031_v45, 0.0  ;;  %v7990_v59 = vmul.f32 %v10909_v47, %v14100_v48  ;;  %v7763_v53 = vpop.f32.mrb[27].mxu1 }
 0x693   : > { %v8066_v61 = vmax.f32 %v8030_v46, 0.0  ;;  %v7989_v60 = vmul.f32 %v14100_v48, %v7763_v53 }
 0x694   : > { %8103 = vst [vmem:[%s14114_s9 + $0xc8] sm:$0xff] %v8067_v49  ;;  %v8033_v62 = vadd.f32 %v14106_v54, %v7990_v59 }
 0x695   : > { %8102 = vst [vmem:[%s14114_s9 + $0xc0] sm:$0xff] %v8066_v61  ;;  %v8032_v31 = vadd.f32 %v14106_v54, %v7989_v60  ;;  %v10912_v63 = vpop.f32.mrb[28].mxu1 }
 0x696   : > { %v8069_v1 = vmax.f32 %v8033_v62, 0.0  ;;  %v7992_v34 = vmul.f32 %v10912_v63, %v14100_v48  ;;  %v7773_v3 = vpop.f32.mrb[29].mxu1 }
 0x697   : > { %v8068_v55 = vmax.f32 %v8032_v31, 0.0  ;;  %v7991_v4 = vmul.f32 %v14100_v48, %v7773_v3 }
 0x698   : > { %8105 = vst [vmem:[%s14114_s9 + $0xd8] sm:$0xff] %v8069_v1  ;;  %v8035_v5 = vadd.f32 %v14106_v54, %v7992_v34 }
 0x699   : > { %8104 = vst [vmem:[%s14114_s9 + $0xd0] sm:$0xff] %v8068_v55  ;;  %v8034_v56 = vadd.f32 %v14106_v54, %v7991_v4  ;;  %v10915_v6 = vpop.f32.mrb[30].mxu1 }
 0x69a   : > { %v8071_v8 = vmax.f32 %v8035_v5, 0.0  ;;  %v7994_v10 = vmul.f32 %v10915_v6, %v14100_v48  ;;  %v7783_v7 = vpop.f32.mrb[31].mxu1 }
 0x69b   : > { %v8070_v50 = vmax.f32 %v8034_v56, 0.0  ;;  %v7993_v9 = vmul.f32 %v14100_v48, %v7783_v7 }
 0x69c   : > { %8107 = vst [vmem:[%s14114_s9 + $0xe8] sm:$0xff] %v8071_v8  ;;  %v8037_v11 = vadd.f32 %v14106_v54, %v7994_v10 }
 0x69d   : > { %8106 = vst [vmem:[%s14114_s9 + $0xe0] sm:$0xff] %v8070_v50  ;;  %v8036_v12 = vadd.f32 %v14106_v54, %v7993_v9  ;;  %v10918_v14 = vpop.f32.mrb[32].mxu1 }
 0x69e   : > { %v8073_v16 = vmax.f32 %v8037_v11, 0.0  ;;  %v7996_v57 = vmul.f32 %v10918_v14, %v14100_v48  ;;  %v7793_v58 = vpop.f32.mrb[33].mxu1 }
 0x69f   : > { %v8072_v19 = vmax.f32 %v8036_v12, 0.0  ;;  %v7995_v21 = vmul.f32 %v14100_v48, %v7793_v58 }
 0x6a0   : > { %8109 = vst [vmem:[%s14114_s9 + $0xf8] sm:$0xff] %v8073_v16  ;;  %v8039_v22 = vadd.f32 %v14106_v54, %v7996_v57 }
 0x6a1   : > { %8108 = vst [vmem:[%s14114_s9 + $0xf0] sm:$0xff] %v8072_v19  ;;  %v8038_v23 = vadd.f32 %v14106_v54, %v7995_v21  ;;  %v10921_v15 = vpop.f32.mrb[34].mxu1 }
 0x6a2   : > { %v8075_v24 = vmax.f32 %v8039_v22, 0.0  ;;  %v7998_v20 = vmul.f32 %v10921_v15, %v14100_v48  ;;  %v7803_v18 = vpop.f32.mrb[35].mxu1 }
 0x6a3   : > { %v8074_v30 = vmax.f32 %v8038_v23, 0.0  ;;  %v7997_v28 = vmul.f32 %v14100_v48, %v7803_v18 }
 0x6a4   : > { %8111 = vst [vmem:[%s14114_s9 + $0x108] sm:$0xff] %v8075_v24  ;;  %v8041_v13 = vadd.f32 %v14106_v54, %v7998_v20 }
 0x6a5   : > { %8110 = vst [vmem:[%s14114_s9 + $0x100] sm:$0xff] %v8074_v30  ;;  %v8040_v43 = vadd.f32 %v14106_v54, %v7997_v28 }
 0x6a6   : > { %v8077_v52 = vmax.f32 %v8041_v13, 0.0 }
 0x6a7   : > { %v8076_v51 = vmax.f32 %v8040_v43, 0.0 }
 0x6a8   : > { %8113 = vst [vmem:[%s14114_s9 + $0x118] sm:$0xff] %v8077_v52 }
 0x6a9   : > { %8112 = vst [vmem:[%s14114_s9 + $0x110] sm:$0xff] %v8076_v51 }
 0x6aa PF: > { %s18_s27 = sadd.s32 1, %s12094_s27  }
 0x6ab   : > { %p15_p4 = scmp.ge.s32.totalorder %s18_s27, 4  }
 0x6ad   :  { %17 = sbr.rel (!%p15_p4) target bundleno = 1 (0x1), region = 98 }

</bundles_post_ra>
